<compile_context>
chip_gen: v6e
topology: v6e:2x2x1
jax: 0.10.0
libtpu: 0.0.40
codegen_flags: <defaults>
</compile_context>

<pallas_src>
import functools

import jax
import jax.numpy as jnp
import numpy as np
from jax import lax
from jax.experimental import pallas as pl
from jax.experimental.pallas import tpu as pltpu


# ------------------------------ kernel ------------------------------------- #

def _seg_decoder_kernel(code_ref, x_ref,
                        w2_ref, b2_ref, w3_ref, b3_ref,
                        w4_ref, b4_ref, w5_ref, b5_ref,
                        o_ref, *, row_stride):
    """One grid step = Nb images; the whole 4-layer chain stays in VMEM values.

    Layout: activations are (C, M) with channels on sublanes and the flat
    row-major padded pixel index (images stacked along it) on lanes.
    """
    s = row_stride                                     # = Wp = W + 2
    offs = [(dy - 1) * s + (dx - 1) for dy in range(3) for dx in range(3)]
    code = code_ref[...]                               # (1, M) int32 halo classes

    def shift(v, k):
        # result[:, p] = v[:, p + k].  Wrap-around only ever lands on positions
        # that are either rebuilt by the reflection refill or never read as
        # taps of a valid interior output, so it is harmless.
        return jnp.roll(v, -k, axis=1) if k else v

    def conv(act, w_ref, b_ref):
        # act: (Cin, M) bf16 -> (Cout, M) f32 with bias + ReLU applied.
        patch = jnp.concatenate([shift(act, o) for o in offs], axis=0)
        acc = jnp.dot(w_ref[...], patch, preferred_element_type=jnp.float32)
        return jnp.maximum(acc + b_ref[...], 0.0)

    def refill(a):
        # Rebuild the 1-px reflection halo of the next layer's input in value
        # space: columns first, then rows (corners pick up the already-fixed
        # column halos).  Cast to bf16 once for the next MXU matmul.
        cc = jnp.broadcast_to(code, a.shape)
        b = jnp.where(cc == 1, shift(a, 2),
                      jnp.where(cc == 2, shift(a, -2), a))
        p = jnp.where(cc == 3, shift(b, 2 * s),
                      jnp.where(cc == 4, shift(b, -2 * s), b))
        return p.astype(jnp.bfloat16)

    a = x_ref[0]                                       # (64, M) bf16, halos pre-filled
    a = refill(conv(a, w2_ref, b2_ref))                # (64, M)
    a = refill(conv(a, w3_ref, b3_ref))                # (32, M)
    a = refill(conv(a, w4_ref, b4_ref))                # (16, M)
    o_ref[...] = conv(a, w5_ref, b5_ref)[None]         # (1, Cout_pad, M) f32, lane-dense


# ------------------------------ wrapper ------------------------------------ #

def _prep_w(w):
    """(3, 3, Cin, Cout) f32 -> (Cout, 9*Cin) bf16 ("NT" form for the kernel)."""
    kh, kw, cin, cout = w.shape
    return w.reshape(kh * kw * cin, cout).T.astype(jnp.bfloat16)


def _halo_code(hp, wp, nb):
    """int32 (1, nb*hp*wp): 0 interior, 1 left, 2 right, 3 top, 4 bottom halo."""
    r, c = np.meshgrid(np.arange(hp), np.arange(wp), indexing="ij")
    code = np.zeros((hp, wp), np.int32)
    code[(c == 0) & (r >= 1) & (r <= hp - 2)] = 1
    code[(c == wp - 1) & (r >= 1) & (r <= hp - 2)] = 2
    code[r == 0] = 3
    code[r == hp - 1] = 4
    return jnp.asarray(np.tile(code.reshape(-1), nb)[None, :])


@jax.jit
def seg_decoder_forward(f_en_nchw, params):
    """f_en_nchw: (N, 64, H, W) f32 -> (N, output_nc, H, W) f32 (NCHW)."""
    N, C0, H, W = f_en_nchw.shape
    Hp, Wp = H + 2, W + 2
    m_img = Hp * Wp

    # Nb images per grid step, but keep >= 2 grid steps when N >= 2 so both
    # v7x TensorCores get work ("parallel" grid axis shards across cores).
    nb = max(1, min(4, -(-N // 2)))
    g = -(-N // nb)
    n_pad = g * nb
    m_tot = nb * m_img

    # ---- input prep (XLA): reflection pad, NCHW -> (C, flat padded), bf16 ----
    xp = jnp.pad(f_en_nchw, ((0, 0), (0, 0), (1, 1), (1, 1)), mode="reflect")
    xp = xp.reshape(N, C0, m_img).astype(jnp.bfloat16)
    if n_pad > N:
        xp = jnp.pad(xp, ((0, n_pad - N), (0, 0), (0, 0)))
    xp = xp.reshape(g, nb, C0, m_img).transpose(0, 2, 1, 3).reshape(g, C0, m_tot)

    code = _halo_code(Hp, Wp, nb)                              # (1, m_tot) int32

    (w2, b2), (w3, b3) = params["conv2"], params["conv3"]
    (w4, b4), (w5, b5) = params["conv4"], params["conv5"]
    w2f, w3f, w4f = _prep_w(w2), _prep_w(w3), _prep_w(w4)
    b2c = b2.reshape(-1, 1).astype(jnp.float32)
    b3c = b3.reshape(-1, 1).astype(jnp.float32)
    b4c = b4.reshape(-1, 1).astype(jnp.float32)

    # Pad conv5's single output channel up to 8 rows (zero weights / bias) so
    # the last matmul and the output store use >= 8 sublanes.
    cout = w5.shape[-1]
    cpad = max(cout, 8)
    w5f = jnp.pad(_prep_w(w5), ((0, cpad - cout), (0, 0)))
    b5c = jnp.pad(b5.reshape(-1, 1).astype(jnp.float32), ((0, cpad - cout), (0, 0)))

    out = pl.pallas_call(
        functools.partial(_seg_decoder_kernel, row_stride=Wp),
        out_shape=jax.ShapeDtypeStruct((g, cpad, m_tot), jnp.float32),
        grid=(g,),
        in_specs=[
            pl.BlockSpec(code.shape, lambda gi: (0, 0)),
            pl.BlockSpec((1, C0, m_tot), lambda gi: (gi, 0, 0)),
            pl.BlockSpec(w2f.shape, lambda gi: (0, 0)),
            pl.BlockSpec(b2c.shape, lambda gi: (0, 0)),
            pl.BlockSpec(w3f.shape, lambda gi: (0, 0)),
            pl.BlockSpec(b3c.shape, lambda gi: (0, 0)),
            pl.BlockSpec(w4f.shape, lambda gi: (0, 0)),
            pl.BlockSpec(b4c.shape, lambda gi: (0, 0)),
            pl.BlockSpec(w5f.shape, lambda gi: (0, 0)),
            pl.BlockSpec(b5c.shape, lambda gi: (0, 0)),
        ],
        out_specs=pl.BlockSpec((1, cpad, m_tot), lambda gi: (gi, 0, 0)),
        compiler_params=pltpu.CompilerParams(
            dimension_semantics=("parallel",),
        ),
    )(code, xp, w2f, b2c, w3f, b3c, w4f, b4c, w5f, b5c)

    # ---- output un-flatten (XLA): (g, Cpad, nb*m) -> (N, Cout, H, W) ----
    out = out.reshape(g, cpad, nb, Hp, Wp).transpose(0, 2, 1, 3, 4)
    out = out.reshape(n_pad, cpad, Hp, Wp)
    return out[:N, :cout, 1:H + 1, 1:W + 1]


# ------------------------- params & reference ------------------------------ #

def init_conv_params(key, cin, cout, k=3):
    """Uniform +-1/sqrt(fan_in) init, mirroring PyTorch Conv2d defaults."""
    kw_, kb_ = jax.random.split(key)
    fan_in = cin * k * k
    bound = 1.0 / np.sqrt(fan_in)
    w = jax.random.uniform(kw_, (k, k, cin, cout), jnp.float32, -bound, bound)
    b = jax.random.uniform(kb_, (1, cout), jnp.float32, -bound, bound)
    return w, b


def make_seg_decoder_params(output_nc=1, seed=0):
    nb_filter = [16, 64, 32, 16]
    key = jax.random.PRNGKey(seed)
    k2, k3, k4, k5 = jax.random.split(key, 4)
    return {
        "conv2": init_conv_params(k2, nb_filter[1], nb_filter[1]),
        "conv3": init_conv_params(k3, nb_filter[1], nb_filter[2]),
        "conv4": init_conv_params(k4, nb_filter[2], nb_filter[3]),
        "conv5": init_conv_params(k5, nb_filter[3], output_nc),
    }


@jax.jit
def seg_decoder_reference(f_en_nchw, params):
    """Pure-JAX f32 reference (jnp.pad reflect + lax.conv) for validation."""
    x = jnp.transpose(f_en_nchw, (0, 2, 3, 1))
    for name in ("conv2", "conv3", "conv4", "conv5"):
        w, b = params[name]
        xp = jnp.pad(x, ((0, 0), (1, 1), (1, 1), (0, 0)), mode="reflect")
        y = lax.conv_general_dilated(
            xp, w, window_strides=(1, 1), padding="VALID",
            dimension_numbers=("NHWC", "HWIO", "NHWC"),
            preferred_element_type=jnp.float32)
        x = jnp.maximum(y + b.reshape(1, 1, 1, -1), 0.0)
    return jnp.transpose(x, (0, 3, 1, 2))


# ------------------------------ demo ---------------------------------------- #

if __name__ == "__main__":
    key = jax.random.PRNGKey(0)
    # seg_decoder's first layer expects nb_filter[1] = 64 input channels.
    N, C, H, W = 2, 64, 16, 16
    f_en = jax.random.normal(key, (N, C, H, W), dtype=jnp.float32)

    params = make_seg_decoder_params(output_nc=1, seed=0)
    out = jax.block_until_ready(seg_decoder_forward(f_en, params))

    assert out.shape == (N, 1, H, W), out.shape
    assert out.dtype == jnp.float32

    # Loose tolerance: the kernel uses bf16 MXU operands (f32 accumulation).
    ref = jax.block_until_ready(seg_decoder_reference(f_en, params))
    np.testing.assert_allclose(np.asarray(out), np.asarray(ref),
                               atol=1e-1, rtol=1e-1)
    print("KERNEL_OK")
</pallas_src>

<mosaic_0001>
module attributes {stable_mosaic.version = 11 : i64} {
  func.func @_seg_decoder_kernel(%arg0: i32, %arg1: memref<1x324xi32, #tpu.memory_space<vmem>>, %arg2: memref<1x64x324xbf16, #tpu.memory_space<vmem>>, %arg3: memref<64x576xbf16, #tpu.memory_space<vmem>>, %arg4: memref<64x1xf32, #tpu.memory_space<vmem>>, %arg5: memref<32x576xbf16, #tpu.memory_space<vmem>>, %arg6: memref<32x1xf32, #tpu.memory_space<vmem>>, %arg7: memref<16x288xbf16, #tpu.memory_space<vmem>>, %arg8: memref<16x1xf32, #tpu.memory_space<vmem>>, %arg9: memref<8x144xbf16, #tpu.memory_space<vmem>>, %arg10: memref<8x1xf32, #tpu.memory_space<vmem>>, %arg11: memref<1x8x324xf32, #tpu.memory_space<vmem>>) attributes {dimension_semantics = [#tpu.dimension_semantics<parallel>], iteration_bounds = array<i64: 2>, scalar_prefetch = 0 : i64, scratch_operands = 0 : i64, tpu.core_type = #tpu.core_type<tc>, window_params = [{pipeline_mode = #tpu.pipeline_mode<synchronous>, transform_indices = @transform_0, window_bounds = array<i64: 1, 324>}, {transform_indices = @transform_1, window_bounds = array<i64: 1, 64, 324>}, {pipeline_mode = #tpu.pipeline_mode<synchronous>, transform_indices = @transform_2, window_bounds = array<i64: 64, 576>}, {pipeline_mode = #tpu.pipeline_mode<synchronous>, transform_indices = @transform_3, window_bounds = array<i64: 64, 1>}, {pipeline_mode = #tpu.pipeline_mode<synchronous>, transform_indices = @transform_4, window_bounds = array<i64: 32, 576>}, {pipeline_mode = #tpu.pipeline_mode<synchronous>, transform_indices = @transform_5, window_bounds = array<i64: 32, 1>}, {pipeline_mode = #tpu.pipeline_mode<synchronous>, transform_indices = @transform_6, window_bounds = array<i64: 16, 288>}, {pipeline_mode = #tpu.pipeline_mode<synchronous>, transform_indices = @transform_7, window_bounds = array<i64: 16, 1>}, {pipeline_mode = #tpu.pipeline_mode<synchronous>, transform_indices = @transform_8, window_bounds = array<i64: 8, 144>}, {pipeline_mode = #tpu.pipeline_mode<synchronous>, transform_indices = @transform_9, window_bounds = array<i64: 8, 1>}, {transform_indices = @transform_10, window_bounds = array<i64: 1, 8, 324>}]} {
    %c0 = arith.constant 0 : index
    %c0_0 = arith.constant 0 : index
    %0 = vector.load %arg1[%c0, %c0_0] : memref<1x324xi32, #tpu.memory_space<vmem>>, vector<1x324xi32>
    %c0_1 = arith.constant 0 : index
    %c0_2 = arith.constant 0 : index
    %c0_3 = arith.constant 0 : index
    %1 = vector.load %arg2[%c0_1, %c0_2, %c0_3] : memref<1x64x324xbf16, #tpu.memory_space<vmem>>, vector<1x64x324xbf16>
    %2 = vector.shape_cast %1 : vector<1x64x324xbf16> to vector<64x324xbf16>
    %3 = vector.extract_strided_slice %2 {offsets = [0, 305], sizes = [64, 19], strides = [1, 1]} : vector<64x324xbf16> to vector<64x19xbf16>
    %4 = vector.extract_strided_slice %2 {offsets = [0, 0], sizes = [64, 305], strides = [1, 1]} : vector<64x324xbf16> to vector<64x305xbf16>
    %5 = tpu.concatenate %3, %4 in 1 : vector<64x19xbf16>, vector<64x305xbf16> -> vector<64x324xbf16>
    %6 = vector.extract_strided_slice %2 {offsets = [0, 306], sizes = [64, 18], strides = [1, 1]} : vector<64x324xbf16> to vector<64x18xbf16>
    %7 = vector.extract_strided_slice %2 {offsets = [0, 0], sizes = [64, 306], strides = [1, 1]} : vector<64x324xbf16> to vector<64x306xbf16>
    %8 = tpu.concatenate %6, %7 in 1 : vector<64x18xbf16>, vector<64x306xbf16> -> vector<64x324xbf16>
    %9 = vector.extract_strided_slice %2 {offsets = [0, 307], sizes = [64, 17], strides = [1, 1]} : vector<64x324xbf16> to vector<64x17xbf16>
    %10 = vector.extract_strided_slice %2 {offsets = [0, 0], sizes = [64, 307], strides = [1, 1]} : vector<64x324xbf16> to vector<64x307xbf16>
    %11 = tpu.concatenate %9, %10 in 1 : vector<64x17xbf16>, vector<64x307xbf16> -> vector<64x324xbf16>
    %12 = vector.extract_strided_slice %2 {offsets = [0, 323], sizes = [64, 1], strides = [1, 1]} : vector<64x324xbf16> to vector<64x1xbf16>
    %13 = vector.extract_strided_slice %2 {offsets = [0, 0], sizes = [64, 323], strides = [1, 1]} : vector<64x324xbf16> to vector<64x323xbf16>
    %14 = tpu.concatenate %12, %13 in 1 : vector<64x1xbf16>, vector<64x323xbf16> -> vector<64x324xbf16>
    %15 = vector.extract_strided_slice %2 {offsets = [0, 1], sizes = [64, 323], strides = [1, 1]} : vector<64x324xbf16> to vector<64x323xbf16>
    %16 = vector.extract_strided_slice %2 {offsets = [0, 0], sizes = [64, 1], strides = [1, 1]} : vector<64x324xbf16> to vector<64x1xbf16>
    %17 = tpu.concatenate %15, %16 in 1 : vector<64x323xbf16>, vector<64x1xbf16> -> vector<64x324xbf16>
    %18 = vector.extract_strided_slice %2 {offsets = [0, 17], sizes = [64, 307], strides = [1, 1]} : vector<64x324xbf16> to vector<64x307xbf16>
    %19 = vector.extract_strided_slice %2 {offsets = [0, 0], sizes = [64, 17], strides = [1, 1]} : vector<64x324xbf16> to vector<64x17xbf16>
    %20 = tpu.concatenate %18, %19 in 1 : vector<64x307xbf16>, vector<64x17xbf16> -> vector<64x324xbf16>
    %21 = vector.extract_strided_slice %2 {offsets = [0, 18], sizes = [64, 306], strides = [1, 1]} : vector<64x324xbf16> to vector<64x306xbf16>
    %22 = vector.extract_strided_slice %2 {offsets = [0, 0], sizes = [64, 18], strides = [1, 1]} : vector<64x324xbf16> to vector<64x18xbf16>
    %23 = tpu.concatenate %21, %22 in 1 : vector<64x306xbf16>, vector<64x18xbf16> -> vector<64x324xbf16>
    %24 = vector.extract_strided_slice %2 {offsets = [0, 19], sizes = [64, 305], strides = [1, 1]} : vector<64x324xbf16> to vector<64x305xbf16>
    %25 = vector.extract_strided_slice %2 {offsets = [0, 0], sizes = [64, 19], strides = [1, 1]} : vector<64x324xbf16> to vector<64x19xbf16>
    %26 = tpu.concatenate %24, %25 in 1 : vector<64x305xbf16>, vector<64x19xbf16> -> vector<64x324xbf16>
    %27 = tpu.concatenate %5, %8, %11, %14, %2, %17, %20, %23, %26 in 0 : vector<64x324xbf16>, vector<64x324xbf16>, vector<64x324xbf16>, vector<64x324xbf16>, vector<64x324xbf16>, vector<64x324xbf16>, vector<64x324xbf16>, vector<64x324xbf16>, vector<64x324xbf16> -> vector<576x324xbf16>
    %c0_4 = arith.constant 0 : index
    %c0_5 = arith.constant 0 : index
    %28 = vector.load %arg3[%c0_4, %c0_5] : memref<64x576xbf16, #tpu.memory_space<vmem>>, vector<64x576xbf16>
    %cst = arith.constant dense<0.000000e+00> : vector<64x324xf32>
    %29 = tpu.matmul %28, %27, %cst {dimension_numbers = #tpu.dot_dimension_numbers<[1], [0], [0], [1], [0, 0, 1, 1], [], []>} : vector<64x576xbf16>, vector<576x324xbf16>, vector<64x324xf32> -> vector<64x324xf32>
    %c0_6 = arith.constant 0 : index
    %c0_7 = arith.constant 0 : index
    %30 = vector.load %arg4[%c0_6, %c0_7] : memref<64x1xf32, #tpu.memory_space<vmem>>, vector<64x1xf32>
    %31 = vector.broadcast %30 : vector<64x1xf32> to vector<64x324xf32>
    %32 = arith.addf %29, %31 : vector<64x324xf32>
    %cst_8 = arith.constant 0.000000e+00 : f32
    %33 = vector.broadcast %cst_8 : f32 to vector<64x324xf32>
    %34 = arith.maximumf %32, %33 : vector<64x324xf32>
    %35 = vector.shape_cast %0 : vector<1x324xi32> to vector<1x324xi32>
    %36 = vector.broadcast %35 : vector<1x324xi32> to vector<64x324xi32>
    %c1_i32 = arith.constant 1 : i32
    %37 = vector.broadcast %c1_i32 : i32 to vector<64x324xi32>
    %38 = arith.cmpi eq, %36, %37 : vector<64x324xi32>
    %39 = vector.extract_strided_slice %34 {offsets = [0, 2], sizes = [64, 322], strides = [1, 1]} : vector<64x324xf32> to vector<64x322xf32>
    %40 = vector.extract_strided_slice %34 {offsets = [0, 0], sizes = [64, 2], strides = [1, 1]} : vector<64x324xf32> to vector<64x2xf32>
    %41 = tpu.concatenate %39, %40 in 1 : vector<64x322xf32>, vector<64x2xf32> -> vector<64x324xf32>
    %c2_i32 = arith.constant 2 : i32
    %42 = vector.broadcast %c2_i32 : i32 to vector<64x324xi32>
    %43 = arith.cmpi eq, %36, %42 : vector<64x324xi32>
    %44 = vector.extract_strided_slice %34 {offsets = [0, 322], sizes = [64, 2], strides = [1, 1]} : vector<64x324xf32> to vector<64x2xf32>
    %45 = vector.extract_strided_slice %34 {offsets = [0, 0], sizes = [64, 322], strides = [1, 1]} : vector<64x324xf32> to vector<64x322xf32>
    %46 = tpu.concatenate %44, %45 in 1 : vector<64x2xf32>, vector<64x322xf32> -> vector<64x324xf32>
    %47 = arith.select %43, %46, %34 : vector<64x324xi1>, vector<64x324xf32>
    %48 = arith.select %38, %41, %47 : vector<64x324xi1>, vector<64x324xf32>
    %c3_i32 = arith.constant 3 : i32
    %49 = vector.broadcast %c3_i32 : i32 to vector<64x324xi32>
    %50 = arith.cmpi eq, %36, %49 : vector<64x324xi32>
    %51 = vector.extract_strided_slice %48 {offsets = [0, 36], sizes = [64, 288], strides = [1, 1]} : vector<64x324xf32> to vector<64x288xf32>
    %52 = vector.extract_strided_slice %48 {offsets = [0, 0], sizes = [64, 36], strides = [1, 1]} : vector<64x324xf32> to vector<64x36xf32>
    %53 = tpu.concatenate %51, %52 in 1 : vector<64x288xf32>, vector<64x36xf32> -> vector<64x324xf32>
    %c4_i32 = arith.constant 4 : i32
    %54 = vector.broadcast %c4_i32 : i32 to vector<64x324xi32>
    %55 = arith.cmpi eq, %36, %54 : vector<64x324xi32>
    %56 = vector.extract_strided_slice %48 {offsets = [0, 288], sizes = [64, 36], strides = [1, 1]} : vector<64x324xf32> to vector<64x36xf32>
    %57 = vector.extract_strided_slice %48 {offsets = [0, 0], sizes = [64, 288], strides = [1, 1]} : vector<64x324xf32> to vector<64x288xf32>
    %58 = tpu.concatenate %56, %57 in 1 : vector<64x36xf32>, vector<64x288xf32> -> vector<64x324xf32>
    %59 = arith.select %55, %58, %48 : vector<64x324xi1>, vector<64x324xf32>
    %60 = arith.select %50, %53, %59 : vector<64x324xi1>, vector<64x324xf32>
    %61 = arith.truncf %60 : vector<64x324xf32> to vector<64x324xbf16>
    %62 = vector.extract_strided_slice %61 {offsets = [0, 305], sizes = [64, 19], strides = [1, 1]} : vector<64x324xbf16> to vector<64x19xbf16>
    %63 = vector.extract_strided_slice %61 {offsets = [0, 0], sizes = [64, 305], strides = [1, 1]} : vector<64x324xbf16> to vector<64x305xbf16>
    %64 = tpu.concatenate %62, %63 in 1 : vector<64x19xbf16>, vector<64x305xbf16> -> vector<64x324xbf16>
    %65 = vector.extract_strided_slice %61 {offsets = [0, 306], sizes = [64, 18], strides = [1, 1]} : vector<64x324xbf16> to vector<64x18xbf16>
    %66 = vector.extract_strided_slice %61 {offsets = [0, 0], sizes = [64, 306], strides = [1, 1]} : vector<64x324xbf16> to vector<64x306xbf16>
    %67 = tpu.concatenate %65, %66 in 1 : vector<64x18xbf16>, vector<64x306xbf16> -> vector<64x324xbf16>
    %68 = vector.extract_strided_slice %61 {offsets = [0, 307], sizes = [64, 17], strides = [1, 1]} : vector<64x324xbf16> to vector<64x17xbf16>
    %69 = vector.extract_strided_slice %61 {offsets = [0, 0], sizes = [64, 307], strides = [1, 1]} : vector<64x324xbf16> to vector<64x307xbf16>
    %70 = tpu.concatenate %68, %69 in 1 : vector<64x17xbf16>, vector<64x307xbf16> -> vector<64x324xbf16>
    %71 = vector.extract_strided_slice %61 {offsets = [0, 323], sizes = [64, 1], strides = [1, 1]} : vector<64x324xbf16> to vector<64x1xbf16>
    %72 = vector.extract_strided_slice %61 {offsets = [0, 0], sizes = [64, 323], strides = [1, 1]} : vector<64x324xbf16> to vector<64x323xbf16>
    %73 = tpu.concatenate %71, %72 in 1 : vector<64x1xbf16>, vector<64x323xbf16> -> vector<64x324xbf16>
    %74 = vector.extract_strided_slice %61 {offsets = [0, 1], sizes = [64, 323], strides = [1, 1]} : vector<64x324xbf16> to vector<64x323xbf16>
    %75 = vector.extract_strided_slice %61 {offsets = [0, 0], sizes = [64, 1], strides = [1, 1]} : vector<64x324xbf16> to vector<64x1xbf16>
    %76 = tpu.concatenate %74, %75 in 1 : vector<64x323xbf16>, vector<64x1xbf16> -> vector<64x324xbf16>
    %77 = vector.extract_strided_slice %61 {offsets = [0, 17], sizes = [64, 307], strides = [1, 1]} : vector<64x324xbf16> to vector<64x307xbf16>
    %78 = vector.extract_strided_slice %61 {offsets = [0, 0], sizes = [64, 17], strides = [1, 1]} : vector<64x324xbf16> to vector<64x17xbf16>
    %79 = tpu.concatenate %77, %78 in 1 : vector<64x307xbf16>, vector<64x17xbf16> -> vector<64x324xbf16>
    %80 = vector.extract_strided_slice %61 {offsets = [0, 18], sizes = [64, 306], strides = [1, 1]} : vector<64x324xbf16> to vector<64x306xbf16>
    %81 = vector.extract_strided_slice %61 {offsets = [0, 0], sizes = [64, 18], strides = [1, 1]} : vector<64x324xbf16> to vector<64x18xbf16>
    %82 = tpu.concatenate %80, %81 in 1 : vector<64x306xbf16>, vector<64x18xbf16> -> vector<64x324xbf16>
    %83 = vector.extract_strided_slice %61 {offsets = [0, 19], sizes = [64, 305], strides = [1, 1]} : vector<64x324xbf16> to vector<64x305xbf16>
    %84 = vector.extract_strided_slice %61 {offsets = [0, 0], sizes = [64, 19], strides = [1, 1]} : vector<64x324xbf16> to vector<64x19xbf16>
    %85 = tpu.concatenate %83, %84 in 1 : vector<64x305xbf16>, vector<64x19xbf16> -> vector<64x324xbf16>
    %86 = tpu.concatenate %64, %67, %70, %73, %61, %76, %79, %82, %85 in 0 : vector<64x324xbf16>, vector<64x324xbf16>, vector<64x324xbf16>, vector<64x324xbf16>, vector<64x324xbf16>, vector<64x324xbf16>, vector<64x324xbf16>, vector<64x324xbf16>, vector<64x324xbf16> -> vector<576x324xbf16>
    %c0_9 = arith.constant 0 : index
    %c0_10 = arith.constant 0 : index
    %87 = vector.load %arg5[%c0_9, %c0_10] : memref<32x576xbf16, #tpu.memory_space<vmem>>, vector<32x576xbf16>
    %cst_11 = arith.constant dense<0.000000e+00> : vector<32x324xf32>
    %88 = tpu.matmul %87, %86, %cst_11 {dimension_numbers = #tpu.dot_dimension_numbers<[1], [0], [0], [1], [0, 0, 1, 1], [], []>} : vector<32x576xbf16>, vector<576x324xbf16>, vector<32x324xf32> -> vector<32x324xf32>
    %c0_12 = arith.constant 0 : index
    %c0_13 = arith.constant 0 : index
    %89 = vector.load %arg6[%c0_12, %c0_13] : memref<32x1xf32, #tpu.memory_space<vmem>>, vector<32x1xf32>
    %90 = vector.broadcast %89 : vector<32x1xf32> to vector<32x324xf32>
    %91 = arith.addf %88, %90 : vector<32x324xf32>
    %cst_14 = arith.constant 0.000000e+00 : f32
    %92 = vector.broadcast %cst_14 : f32 to vector<32x324xf32>
    %93 = arith.maximumf %91, %92 : vector<32x324xf32>
    %94 = vector.shape_cast %0 : vector<1x324xi32> to vector<1x324xi32>
    %95 = vector.broadcast %94 : vector<1x324xi32> to vector<32x324xi32>
    %c1_i32_15 = arith.constant 1 : i32
    %96 = vector.broadcast %c1_i32_15 : i32 to vector<32x324xi32>
    %97 = arith.cmpi eq, %95, %96 : vector<32x324xi32>
    %98 = vector.extract_strided_slice %93 {offsets = [0, 2], sizes = [32, 322], strides = [1, 1]} : vector<32x324xf32> to vector<32x322xf32>
    %99 = vector.extract_strided_slice %93 {offsets = [0, 0], sizes = [32, 2], strides = [1, 1]} : vector<32x324xf32> to vector<32x2xf32>
    %100 = tpu.concatenate %98, %99 in 1 : vector<32x322xf32>, vector<32x2xf32> -> vector<32x324xf32>
    %c2_i32_16 = arith.constant 2 : i32
    %101 = vector.broadcast %c2_i32_16 : i32 to vector<32x324xi32>
    %102 = arith.cmpi eq, %95, %101 : vector<32x324xi32>
    %103 = vector.extract_strided_slice %93 {offsets = [0, 322], sizes = [32, 2], strides = [1, 1]} : vector<32x324xf32> to vector<32x2xf32>
    %104 = vector.extract_strided_slice %93 {offsets = [0, 0], sizes = [32, 322], strides = [1, 1]} : vector<32x324xf32> to vector<32x322xf32>
    %105 = tpu.concatenate %103, %104 in 1 : vector<32x2xf32>, vector<32x322xf32> -> vector<32x324xf32>
    %106 = arith.select %102, %105, %93 : vector<32x324xi1>, vector<32x324xf32>
    %107 = arith.select %97, %100, %106 : vector<32x324xi1>, vector<32x324xf32>
    %c3_i32_17 = arith.constant 3 : i32
    %108 = vector.broadcast %c3_i32_17 : i32 to vector<32x324xi32>
    %109 = arith.cmpi eq, %95, %108 : vector<32x324xi32>
    %110 = vector.extract_strided_slice %107 {offsets = [0, 36], sizes = [32, 288], strides = [1, 1]} : vector<32x324xf32> to vector<32x288xf32>
    %111 = vector.extract_strided_slice %107 {offsets = [0, 0], sizes = [32, 36], strides = [1, 1]} : vector<32x324xf32> to vector<32x36xf32>
    %112 = tpu.concatenate %110, %111 in 1 : vector<32x288xf32>, vector<32x36xf32> -> vector<32x324xf32>
    %c4_i32_18 = arith.constant 4 : i32
    %113 = vector.broadcast %c4_i32_18 : i32 to vector<32x324xi32>
    %114 = arith.cmpi eq, %95, %113 : vector<32x324xi32>
    %115 = vector.extract_strided_slice %107 {offsets = [0, 288], sizes = [32, 36], strides = [1, 1]} : vector<32x324xf32> to vector<32x36xf32>
    %116 = vector.extract_strided_slice %107 {offsets = [0, 0], sizes = [32, 288], strides = [1, 1]} : vector<32x324xf32> to vector<32x288xf32>
    %117 = tpu.concatenate %115, %116 in 1 : vector<32x36xf32>, vector<32x288xf32> -> vector<32x324xf32>
    %118 = arith.select %114, %117, %107 : vector<32x324xi1>, vector<32x324xf32>
    %119 = arith.select %109, %112, %118 : vector<32x324xi1>, vector<32x324xf32>
    %120 = arith.truncf %119 : vector<32x324xf32> to vector<32x324xbf16>
    %121 = vector.extract_strided_slice %120 {offsets = [0, 305], sizes = [32, 19], strides = [1, 1]} : vector<32x324xbf16> to vector<32x19xbf16>
    %122 = vector.extract_strided_slice %120 {offsets = [0, 0], sizes = [32, 305], strides = [1, 1]} : vector<32x324xbf16> to vector<32x305xbf16>
    %123 = tpu.concatenate %121, %122 in 1 : vector<32x19xbf16>, vector<32x305xbf16> -> vector<32x324xbf16>
    %124 = vector.extract_strided_slice %120 {offsets = [0, 306], sizes = [32, 18], strides = [1, 1]} : vector<32x324xbf16> to vector<32x18xbf16>
    %125 = vector.extract_strided_slice %120 {offsets = [0, 0], sizes = [32, 306], strides = [1, 1]} : vector<32x324xbf16> to vector<32x306xbf16>
    %126 = tpu.concatenate %124, %125 in 1 : vector<32x18xbf16>, vector<32x306xbf16> -> vector<32x324xbf16>
    %127 = vector.extract_strided_slice %120 {offsets = [0, 307], sizes = [32, 17], strides = [1, 1]} : vector<32x324xbf16> to vector<32x17xbf16>
    %128 = vector.extract_strided_slice %120 {offsets = [0, 0], sizes = [32, 307], strides = [1, 1]} : vector<32x324xbf16> to vector<32x307xbf16>
    %129 = tpu.concatenate %127, %128 in 1 : vector<32x17xbf16>, vector<32x307xbf16> -> vector<32x324xbf16>
    %130 = vector.extract_strided_slice %120 {offsets = [0, 323], sizes = [32, 1], strides = [1, 1]} : vector<32x324xbf16> to vector<32x1xbf16>
    %131 = vector.extract_strided_slice %120 {offsets = [0, 0], sizes = [32, 323], strides = [1, 1]} : vector<32x324xbf16> to vector<32x323xbf16>
    %132 = tpu.concatenate %130, %131 in 1 : vector<32x1xbf16>, vector<32x323xbf16> -> vector<32x324xbf16>
    %133 = vector.extract_strided_slice %120 {offsets = [0, 1], sizes = [32, 323], strides = [1, 1]} : vector<32x324xbf16> to vector<32x323xbf16>
    %134 = vector.extract_strided_slice %120 {offsets = [0, 0], sizes = [32, 1], strides = [1, 1]} : vector<32x324xbf16> to vector<32x1xbf16>
    %135 = tpu.concatenate %133, %134 in 1 : vector<32x323xbf16>, vector<32x1xbf16> -> vector<32x324xbf16>
    %136 = vector.extract_strided_slice %120 {offsets = [0, 17], sizes = [32, 307], strides = [1, 1]} : vector<32x324xbf16> to vector<32x307xbf16>
    %137 = vector.extract_strided_slice %120 {offsets = [0, 0], sizes = [32, 17], strides = [1, 1]} : vector<32x324xbf16> to vector<32x17xbf16>
    %138 = tpu.concatenate %136, %137 in 1 : vector<32x307xbf16>, vector<32x17xbf16> -> vector<32x324xbf16>
    %139 = vector.extract_strided_slice %120 {offsets = [0, 18], sizes = [32, 306], strides = [1, 1]} : vector<32x324xbf16> to vector<32x306xbf16>
    %140 = vector.extract_strided_slice %120 {offsets = [0, 0], sizes = [32, 18], strides = [1, 1]} : vector<32x324xbf16> to vector<32x18xbf16>
    %141 = tpu.concatenate %139, %140 in 1 : vector<32x306xbf16>, vector<32x18xbf16> -> vector<32x324xbf16>
    %142 = vector.extract_strided_slice %120 {offsets = [0, 19], sizes = [32, 305], strides = [1, 1]} : vector<32x324xbf16> to vector<32x305xbf16>
    %143 = vector.extract_strided_slice %120 {offsets = [0, 0], sizes = [32, 19], strides = [1, 1]} : vector<32x324xbf16> to vector<32x19xbf16>
    %144 = tpu.concatenate %142, %143 in 1 : vector<32x305xbf16>, vector<32x19xbf16> -> vector<32x324xbf16>
    %145 = tpu.concatenate %123, %126, %129, %132, %120, %135, %138, %141, %144 in 0 : vector<32x324xbf16>, vector<32x324xbf16>, vector<32x324xbf16>, vector<32x324xbf16>, vector<32x324xbf16>, vector<32x324xbf16>, vector<32x324xbf16>, vector<32x324xbf16>, vector<32x324xbf16> -> vector<288x324xbf16>
    %c0_19 = arith.constant 0 : index
    %c0_20 = arith.constant 0 : index
    %146 = vector.load %arg7[%c0_19, %c0_20] : memref<16x288xbf16, #tpu.memory_space<vmem>>, vector<16x288xbf16>
    %cst_21 = arith.constant dense<0.000000e+00> : vector<16x324xf32>
    %147 = tpu.matmul %146, %145, %cst_21 {dimension_numbers = #tpu.dot_dimension_numbers<[1], [0], [0], [1], [0, 0, 1, 1], [], []>} : vector<16x288xbf16>, vector<288x324xbf16>, vector<16x324xf32> -> vector<16x324xf32>
    %c0_22 = arith.constant 0 : index
    %c0_23 = arith.constant 0 : index
    %148 = vector.load %arg8[%c0_22, %c0_23] : memref<16x1xf32, #tpu.memory_space<vmem>>, vector<16x1xf32>
    %149 = vector.broadcast %148 : vector<16x1xf32> to vector<16x324xf32>
    %150 = arith.addf %147, %149 : vector<16x324xf32>
    %cst_24 = arith.constant 0.000000e+00 : f32
    %151 = vector.broadcast %cst_24 : f32 to vector<16x324xf32>
    %152 = arith.maximumf %150, %151 : vector<16x324xf32>
    %153 = vector.shape_cast %0 : vector<1x324xi32> to vector<1x324xi32>
    %154 = vector.broadcast %153 : vector<1x324xi32> to vector<16x324xi32>
    %c1_i32_25 = arith.constant 1 : i32
    %155 = vector.broadcast %c1_i32_25 : i32 to vector<16x324xi32>
    %156 = arith.cmpi eq, %154, %155 : vector<16x324xi32>
    %157 = vector.extract_strided_slice %152 {offsets = [0, 2], sizes = [16, 322], strides = [1, 1]} : vector<16x324xf32> to vector<16x322xf32>
    %158 = vector.extract_strided_slice %152 {offsets = [0, 0], sizes = [16, 2], strides = [1, 1]} : vector<16x324xf32> to vector<16x2xf32>
    %159 = tpu.concatenate %157, %158 in 1 : vector<16x322xf32>, vector<16x2xf32> -> vector<16x324xf32>
    %c2_i32_26 = arith.constant 2 : i32
    %160 = vector.broadcast %c2_i32_26 : i32 to vector<16x324xi32>
    %161 = arith.cmpi eq, %154, %160 : vector<16x324xi32>
    %162 = vector.extract_strided_slice %152 {offsets = [0, 322], sizes = [16, 2], strides = [1, 1]} : vector<16x324xf32> to vector<16x2xf32>
    %163 = vector.extract_strided_slice %152 {offsets = [0, 0], sizes = [16, 322], strides = [1, 1]} : vector<16x324xf32> to vector<16x322xf32>
    %164 = tpu.concatenate %162, %163 in 1 : vector<16x2xf32>, vector<16x322xf32> -> vector<16x324xf32>
    %165 = arith.select %161, %164, %152 : vector<16x324xi1>, vector<16x324xf32>
    %166 = arith.select %156, %159, %165 : vector<16x324xi1>, vector<16x324xf32>
    %c3_i32_27 = arith.constant 3 : i32
    %167 = vector.broadcast %c3_i32_27 : i32 to vector<16x324xi32>
    %168 = arith.cmpi eq, %154, %167 : vector<16x324xi32>
    %169 = vector.extract_strided_slice %166 {offsets = [0, 36], sizes = [16, 288], strides = [1, 1]} : vector<16x324xf32> to vector<16x288xf32>
    %170 = vector.extract_strided_slice %166 {offsets = [0, 0], sizes = [16, 36], strides = [1, 1]} : vector<16x324xf32> to vector<16x36xf32>
    %171 = tpu.concatenate %169, %170 in 1 : vector<16x288xf32>, vector<16x36xf32> -> vector<16x324xf32>
    %c4_i32_28 = arith.constant 4 : i32
    %172 = vector.broadcast %c4_i32_28 : i32 to vector<16x324xi32>
    %173 = arith.cmpi eq, %154, %172 : vector<16x324xi32>
    %174 = vector.extract_strided_slice %166 {offsets = [0, 288], sizes = [16, 36], strides = [1, 1]} : vector<16x324xf32> to vector<16x36xf32>
    %175 = vector.extract_strided_slice %166 {offsets = [0, 0], sizes = [16, 288], strides = [1, 1]} : vector<16x324xf32> to vector<16x288xf32>
    %176 = tpu.concatenate %174, %175 in 1 : vector<16x36xf32>, vector<16x288xf32> -> vector<16x324xf32>
    %177 = arith.select %173, %176, %166 : vector<16x324xi1>, vector<16x324xf32>
    %178 = arith.select %168, %171, %177 : vector<16x324xi1>, vector<16x324xf32>
    %179 = arith.truncf %178 : vector<16x324xf32> to vector<16x324xbf16>
    %180 = vector.extract_strided_slice %179 {offsets = [0, 305], sizes = [16, 19], strides = [1, 1]} : vector<16x324xbf16> to vector<16x19xbf16>
    %181 = vector.extract_strided_slice %179 {offsets = [0, 0], sizes = [16, 305], strides = [1, 1]} : vector<16x324xbf16> to vector<16x305xbf16>
    %182 = tpu.concatenate %180, %181 in 1 : vector<16x19xbf16>, vector<16x305xbf16> -> vector<16x324xbf16>
    %183 = vector.extract_strided_slice %179 {offsets = [0, 306], sizes = [16, 18], strides = [1, 1]} : vector<16x324xbf16> to vector<16x18xbf16>
    %184 = vector.extract_strided_slice %179 {offsets = [0, 0], sizes = [16, 306], strides = [1, 1]} : vector<16x324xbf16> to vector<16x306xbf16>
    %185 = tpu.concatenate %183, %184 in 1 : vector<16x18xbf16>, vector<16x306xbf16> -> vector<16x324xbf16>
    %186 = vector.extract_strided_slice %179 {offsets = [0, 307], sizes = [16, 17], strides = [1, 1]} : vector<16x324xbf16> to vector<16x17xbf16>
    %187 = vector.extract_strided_slice %179 {offsets = [0, 0], sizes = [16, 307], strides = [1, 1]} : vector<16x324xbf16> to vector<16x307xbf16>
    %188 = tpu.concatenate %186, %187 in 1 : vector<16x17xbf16>, vector<16x307xbf16> -> vector<16x324xbf16>
    %189 = vector.extract_strided_slice %179 {offsets = [0, 323], sizes = [16, 1], strides = [1, 1]} : vector<16x324xbf16> to vector<16x1xbf16>
    %190 = vector.extract_strided_slice %179 {offsets = [0, 0], sizes = [16, 323], strides = [1, 1]} : vector<16x324xbf16> to vector<16x323xbf16>
    %191 = tpu.concatenate %189, %190 in 1 : vector<16x1xbf16>, vector<16x323xbf16> -> vector<16x324xbf16>
    %192 = vector.extract_strided_slice %179 {offsets = [0, 1], sizes = [16, 323], strides = [1, 1]} : vector<16x324xbf16> to vector<16x323xbf16>
    %193 = vector.extract_strided_slice %179 {offsets = [0, 0], sizes = [16, 1], strides = [1, 1]} : vector<16x324xbf16> to vector<16x1xbf16>
    %194 = tpu.concatenate %192, %193 in 1 : vector<16x323xbf16>, vector<16x1xbf16> -> vector<16x324xbf16>
    %195 = vector.extract_strided_slice %179 {offsets = [0, 17], sizes = [16, 307], strides = [1, 1]} : vector<16x324xbf16> to vector<16x307xbf16>
    %196 = vector.extract_strided_slice %179 {offsets = [0, 0], sizes = [16, 17], strides = [1, 1]} : vector<16x324xbf16> to vector<16x17xbf16>
    %197 = tpu.concatenate %195, %196 in 1 : vector<16x307xbf16>, vector<16x17xbf16> -> vector<16x324xbf16>
    %198 = vector.extract_strided_slice %179 {offsets = [0, 18], sizes = [16, 306], strides = [1, 1]} : vector<16x324xbf16> to vector<16x306xbf16>
    %199 = vector.extract_strided_slice %179 {offsets = [0, 0], sizes = [16, 18], strides = [1, 1]} : vector<16x324xbf16> to vector<16x18xbf16>
    %200 = tpu.concatenate %198, %199 in 1 : vector<16x306xbf16>, vector<16x18xbf16> -> vector<16x324xbf16>
    %201 = vector.extract_strided_slice %179 {offsets = [0, 19], sizes = [16, 305], strides = [1, 1]} : vector<16x324xbf16> to vector<16x305xbf16>
    %202 = vector.extract_strided_slice %179 {offsets = [0, 0], sizes = [16, 19], strides = [1, 1]} : vector<16x324xbf16> to vector<16x19xbf16>
    %203 = tpu.concatenate %201, %202 in 1 : vector<16x305xbf16>, vector<16x19xbf16> -> vector<16x324xbf16>
    %204 = tpu.concatenate %182, %185, %188, %191, %179, %194, %197, %200, %203 in 0 : vector<16x324xbf16>, vector<16x324xbf16>, vector<16x324xbf16>, vector<16x324xbf16>, vector<16x324xbf16>, vector<16x324xbf16>, vector<16x324xbf16>, vector<16x324xbf16>, vector<16x324xbf16> -> vector<144x324xbf16>
    %c0_29 = arith.constant 0 : index
    %c0_30 = arith.constant 0 : index
    %205 = vector.load %arg9[%c0_29, %c0_30] : memref<8x144xbf16, #tpu.memory_space<vmem>>, vector<8x144xbf16>
    %cst_31 = arith.constant dense<0.000000e+00> : vector<8x324xf32>
    %206 = tpu.matmul %205, %204, %cst_31 {dimension_numbers = #tpu.dot_dimension_numbers<[1], [0], [0], [1], [0, 0, 1, 1], [], []>} : vector<8x144xbf16>, vector<144x324xbf16>, vector<8x324xf32> -> vector<8x324xf32>
    %c0_32 = arith.constant 0 : index
    %c0_33 = arith.constant 0 : index
    %207 = vector.load %arg10[%c0_32, %c0_33] : memref<8x1xf32, #tpu.memory_space<vmem>>, vector<8x1xf32>
    %208 = vector.broadcast %207 : vector<8x1xf32> to vector<8x324xf32>
    %209 = arith.addf %206, %208 : vector<8x324xf32>
    %cst_34 = arith.constant 0.000000e+00 : f32
    %210 = vector.broadcast %cst_34 : f32 to vector<8x324xf32>
    %211 = arith.maximumf %209, %210 : vector<8x324xf32>
    %212 = vector.shape_cast %211 : vector<8x324xf32> to vector<1x8x324xf32>
    %c0_35 = arith.constant 0 : index
    %c0_36 = arith.constant 0 : index
    %c0_37 = arith.constant 0 : index
    %213 = vector.load %arg11[%c0_35, %c0_36, %c0_37] : memref<1x8x324xf32, #tpu.memory_space<vmem>>, vector<1x8x324xf32>
    tpu.vector_store %arg11[%c0_35, %c0_36, %c0_37], %212 {strides = array<i32>} : memref<1x8x324xf32, #tpu.memory_space<vmem>>, vector<1x8x324xf32>,
    return
  }
  func.func @transform_0(%arg0: i32) -> (i32, i32) {
    %c0_i32 = arith.constant 0 : i32
    %c0_i32_0 = arith.constant 0 : i32
    %c0_i32_1 = arith.constant 0 : i32
    return %c0_i32, %c0_i32_0 : i32, i32
  }
  func.func @transform_1(%arg0: i32) -> (i32, i32, i32) {
    %c0_i32 = arith.constant 0 : i32
    %c0_i32_0 = arith.constant 0 : i32
    %c0_i32_1 = arith.constant 0 : i32
    return %arg0, %c0_i32, %c0_i32_0 : i32, i32, i32
  }
  func.func @transform_2(%arg0: i32) -> (i32, i32) {
    %c0_i32 = arith.constant 0 : i32
    %c0_i32_0 = arith.constant 0 : i32
    %c0_i32_1 = arith.constant 0 : i32
    return %c0_i32, %c0_i32_0 : i32, i32
  }
  func.func @transform_3(%arg0: i32) -> (i32, i32) {
    %c0_i32 = arith.constant 0 : i32
    %c0_i32_0 = arith.constant 0 : i32
    %c0_i32_1 = arith.constant 0 : i32
    return %c0_i32, %c0_i32_0 : i32, i32
  }
  func.func @transform_4(%arg0: i32) -> (i32, i32) {
    %c0_i32 = arith.constant 0 : i32
    %c0_i32_0 = arith.constant 0 : i32
    %c0_i32_1 = arith.constant 0 : i32
    return %c0_i32, %c0_i32_0 : i32, i32
  }
  func.func @transform_5(%arg0: i32) -> (i32, i32) {
    %c0_i32 = arith.constant 0 : i32
    %c0_i32_0 = arith.constant 0 : i32
    %c0_i32_1 = arith.constant 0 : i32
    return %c0_i32, %c0_i32_0 : i32, i32
  }
  func.func @transform_6(%arg0: i32) -> (i32, i32) {
    %c0_i32 = arith.constant 0 : i32
    %c0_i32_0 = arith.constant 0 : i32
    %c0_i32_1 = arith.constant 0 : i32
    return %c0_i32, %c0_i32_0 : i32, i32
  }
  func.func @transform_7(%arg0: i32) -> (i32, i32) {
    %c0_i32 = arith.constant 0 : i32
    %c0_i32_0 = arith.constant 0 : i32
    %c0_i32_1 = arith.constant 0 : i32
    return %c0_i32, %c0_i32_0 : i32, i32
  }
  func.func @transform_8(%arg0: i32) -> (i32, i32) {
    %c0_i32 = arith.constant 0 : i32
    %c0_i32_0 = arith.constant 0 : i32
    %c0_i32_1 = arith.constant 0 : i32
    return %c0_i32, %c0_i32_0 : i32, i32
  }
  func.func @transform_9(%arg0: i32) -> (i32, i32) {
    %c0_i32 = arith.constant 0 : i32
    %c0_i32_0 = arith.constant 0 : i32
    %c0_i32_1 = arith.constant 0 : i32
    return %c0_i32, %c0_i32_0 : i32, i32
  }
  func.func @transform_10(%arg0: i32) -> (i32, i32, i32) {
    %c0_i32 = arith.constant 0 : i32
    %c0_i32_0 = arith.constant 0 : i32
    %c0_i32_1 = arith.constant 0 : i32
    return %arg0, %c0_i32, %c0_i32_0 : i32, i32, i32
  }
}

</mosaic_0001>

<bundles_post_ra>
// kernel: seg_decoder_forward.1
= control target key start
LH: loop header
LB: loop body
LE: loop exit
PB: predicated region body
PF: predicated region fallthrough
CT: control target
= control target key end

     0   :  { %s5471_s13 = smov 0   ;;  %s8655_s0 = inlined_call_operand.vmem [shape: s32[1,324], index: 0, kind: input, shape index: {}]   ;;  %s8656_s1 = inlined_call_operand.vmem [shape: bf16[2,64,324], index: 1, kind: input, shape index: {}]   ;;  %s8657_s2 = inlined_call_operand.vmem [shape: bf16[64,576], index: 2, kind: input, shape index: {}]   ;;  %s8658_s3 = inlined_call_operand.vmem [shape: f32[64,1], index: 3, kind: input, shape index: {}]   ;;  %s8659_s4 = inlined_call_operand.vmem [shape: bf16[32,576], index: 4, kind: input, shape index: {}]   ;;  %s8660_s5 = inlined_call_operand.vmem [shape: f32[32,1], index: 5, kind: input, shape index: {}]   ;;  %s8661_s6 = inlined_call_operand.vmem [shape: bf16[16,288], index: 6, kind: input, shape index: {}]   ;;  %s8662_s7 = inlined_call_operand.vmem [shape: f32[16,1], index: 7, kind: input, shape index: {}]   ;;  %s8663_s8 = inlined_call_operand.vmem [shape: bf16[8,144], index: 8, kind: input, shape index: {}]   ;;  %s8664_s9 = inlined_call_operand.vmem [shape: f32[8,1], index: 9, kind: input, shape index: {}]   ;;  %s8665_s10 = inlined_call_operand.vmem [shape: f32[2,8,324], index: 10, kind: output, shape index: {}]  }
   0x1   :  { %8773 = sst [smem:[#allocation34_spill]] %s8655_s0 }
   0x2   :  { %8774 = sst [smem:[#allocation35_spill]] %s8656_s1 }
   0x3   :  { %8775 = sst [smem:[#allocation36_spill]] %s8657_s2 }
   0x4 LB: > { %s4431_s14 = sadd.s32 4294967295, %s5387_s13   ;;  %p4435_p0 = scmp.ge.s32.totalorder %s5387_s13, 1  ;;  %s5387_s13 = sphi %s5471_s13, %s20_s13  }
   0x5   : > { %p312_p1 = scmp.lt.s32.totalorder %s5387_s13, 3 }
   0x7   : > { %p313_p2 = pnand %p4435_p0, %p312_p1 }
   0x9   : > { %316 = sbr.rel (%p313_p2) target bundleno = 2815 (0xaff), region = 60 }
   0xe   : > { %p350_p3 = scmp.lt.s32.totalorder %s4431_s14, 1  ;;  %s8776_s1 = sld [smem:[#allocation35_spill]]  ;;  %vm8758_vm0 = vcmask 146432   ;;  %vm8757_vm1 = vcmask 154624   ;;  %vm8753_vm2 = vcmask 1039360   ;;  %vm8756_vm3 = vcmask 7168  }
   0xf   : > { %s8716_s19 = smov 78   ;;  %s8742_s20 = smov 18   ;;  %vm8759_vm4 = vcmask 138240   ;;  %vm8754_vm5 = vcmask 900096   ;;  %vm8760_vm6 = vcmask 908288   ;;  %vm8696_vm7 = vcmask 891904  }
  0x10   : > { %s9056_s14 = smov (!%p350_p3, %s4431_s14), 1  ;;  %s8740_s21 = smov 19   ;;  %vm8693_vm8 = vcmask 523264   ;;  %vm8694_vm9 = vcmask 547840   ;;  %vm8695_vm10 = vcmask 408576   ;;  %vm8692_vm11 = vcmask 416768  }
  0x11   : > { %s4714_s15 = smul.u32 96, %s9056_s14  ;;  %s8712_s22 = smov 79   ;;  %vm8691_vm12 = vcmask 400384   ;;  %vm8705_vm13 = vcmask 15360   ;;  %vm8704_vm15 = vcmask 1031168  }
  0x12   : > { %s8710_s23 = smov 127   ;;  %s8770_s24 = smov 1  }
  0x13   : > { %s8746_s25 = smov 61   ;;  %s8748_s26 = smov 17  }
  0x14   : > { %s5485_s18 = scalar_lea.vmem %s8776_s1, %s4714_s15  ;;  %s8674_s27 = smov 77  }
  0x15   : > { %v5488_v0 = vld [vmem:[%s5485_s18 + $0x50] ss:$12 sps:$4 sm:$0xff]   ;;  %v5491_v1 = vld [vmem:[%s5485_s18 + $0x48] ss:$12 sps:$4 sm:$0xff]   ;;  %v5498_v2 = vld [vmem:[%s5485_s18 + $0x4c] ss:$12 sps:$4 sm:$0xff]  }
  0x16   : > { %502 = vrot.lane.b32.xlu1 %v5488_v0, %s8716_s19  ;;  %522 = vrot.lane.b32.xlu0 %v5491_v1, %s8742_s20  ;;  %v5501_v3 = vld [vmem:[%s5485_s18 + $0x30] ss:$12 sps:$4 sm:$0xff]   ;;  %v5506_v4 = vld [vmem:[%s5485_s18 + $0x38] ss:$12 sps:$4 sm:$0xff]   ;;  %s8714_s28 = smov 110   ;;  %s8678_s29 = smov 111  }
  0x17   : > { %v5511_v5 = vld [vmem:[%s5485_s18 + $0x34] ss:$12 sps:$4 sm:$0xff]   ;;  %v5514_v6 = vld [vmem:[%s5485_s18 + $0x1c] ss:$12 sps:$4 sm:$0xff]   ;;  %v5517_v7 = vld [vmem:[%s5485_s18 + $0x18] ss:$12 sps:$4 sm:$0xff]  }
  0x18   : > { %v5524_v8 = vld [vmem:[%s5485_s18] ss:$12 sps:$4 sm:$0xff]   ;;  %v5536_v10 = vld [vmem:[%s5485_s18 + $0x8] ss:$12 sps:$4 sm:$0xff]   ;;  %v5541_v11 = vld [vmem:[%s5485_s18 + $0x4] ss:$12 sps:$4 sm:$0xff]  }
  0x19   : > { %v5527_v9 = vld [vmem:[%s5485_s18 + $0x20] ss:$12 sps:$4 sm:$0xff]   ;;  %s8777_s2 = sld [smem:[#allocation36_spill]]  ;;  %s8670_s12 = smov 109  }
  0x1a   : > { %516 = vrot.lane.b32.xlu1 %v5501_v3, %s8742_s20  ;;  %524 = vrot.lane.b32.xlu0 %v5498_v2, %s8742_s20  ;;  %s8666_s17 = smov 67   ;;  %s8668_s30 = smov 50  }
  0x1b   : > { %s8672_s11 = smov 51   ;;  %s8783_s0 = sld [smem:[#allocation34_spill]] }
  0x1c   : > { %s8761_s15 = smov 96   ;;  %s8708_s16 = smov 92  }
  0x1d   : > { %s8997_s1 = smov 2  }
  0x1e   : > { %500 = vrot.lane.b32.xlu1 %v5506_v4, %s8716_s19  ;;  %518 = vrot.lane.b32.xlu0 %v5511_v5, %s8742_s20 }
  0x1f   : > { %v5710_v44 = vld [vmem:[%s8777_s2 + $0x4] ss:$20 sps:$4 sm:$0xff]   ;;  %v5744_v58 = vld [vmem:[%s8777_s2 + $0xc] ss:$20 sps:$4 sm:$0xff]  }
  0x20   : > { %1187 = vmatprep.mubr.bf16.mxu0 %v5710_v44  ;;  %1260 = vmatprep.mubr.bf16.mxu1 %v5744_v58 }
  0x22   : > { %512 = vrot.lane.b32.xlu1 %v5514_v6, %s8742_s20  ;;  %510 = vrot.lane.b32.xlu0 %v5517_v7, %s8742_s20 }
  0x26   : > { %504 = vrot.lane.b32.xlu1 %v5524_v8, %s8742_s20  ;;  %498 = vrot.lane.b32.xlu0 %v5527_v9, %s8716_s19 }
  0x2a   : > { %496 = vrot.lane.b32.xlu1 %v5536_v10, %s8716_s19  ;;  %506 = vrot.lane.b32.xlu0 %v5541_v11, %s8742_s20 }
  0x2e   : > { %458 = vrot.lane.b32.xlu1 %v5498_v2, %s8740_s21  ;;  %456 = vrot.lane.b32.xlu0 %v5491_v1, %s8740_s21 }
  0x32   : > { %450 = vrot.lane.b32.xlu1 %v5501_v3, %s8740_s21  ;;  %404 = vrot.lane.b32.xlu0 %v5488_v0, %s8712_s22 }
  0x36   : > { %402 = vrot.lane.b32.xlu1 %v5506_v4, %s8712_s22  ;;  %452 = vrot.lane.b32.xlu0 %v5511_v5, %s8740_s21 }
  0x3a   : > { %716 = vrot.lane.b32.xlu1 %v5488_v0, %s8710_s23  ;;  %714 = vrot.lane.b32.xlu0 %v5498_v2, %s8710_s23 }
  0x3e   : > { %444 = vrot.lane.b32.xlu1 %v5517_v7, %s8740_s21  ;;  %712 = vrot.lane.b32.xlu0 %v5491_v1, %s8710_s23 }
  0x42   : > { %400 = vrot.lane.b32.xlu1 %v5527_v9, %s8712_s22  ;;  %446 = vrot.lane.b32.xlu0 %v5514_v6, %s8740_s21 }
  0x46   : > { %710 = vrot.lane.b32.xlu1 %v5506_v4, %s8710_s23  ;;  %708 = vrot.lane.b32.xlu0 %v5511_v5, %s8710_s23 }
  0x4a   : > { %438 = vrot.lane.b32.xlu1 %v5524_v8, %s8740_s21  ;;  %706 = vrot.lane.b32.xlu0 %v5501_v3, %s8710_s23 }
  0x4e   : > { %398 = vrot.lane.b32.xlu1 %v5536_v10, %s8712_s22  ;;  %440 = vrot.lane.b32.xlu0 %v5541_v11, %s8740_s21 }
  0x52   : > { %704 = vrot.lane.b32.xlu1 %v5527_v9, %s8710_s23  ;;  %702 = vrot.lane.b32.xlu0 %v5514_v6, %s8710_s23 }
  0x56   : > { %654 = vrot.lane.b32.xlu1 %v5491_v1, %s8770_s24  ;;  %700 = vrot.lane.b32.xlu0 %v5517_v7, %s8710_s23 }
  0x5a   : > { %634 = vrot.lane.b32.xlu1 %v5488_v0, %s8746_s25  ;;  %656 = vrot.lane.b32.xlu0 %v5498_v2, %s8770_s24 }
  0x5e   : > { %698 = vrot.lane.b32.xlu1 %v5536_v10, %s8710_s23  ;;  %696 = vrot.lane.b32.xlu0 %v5541_v11, %s8710_s23 }
  0x62   : > { %648 = vrot.lane.b32.xlu1 %v5501_v3, %s8770_s24  ;;  %694 = vrot.lane.b32.xlu0 %v5524_v8, %s8710_s23 }
  0x66   : > { %632 = vrot.lane.b32.xlu1 %v5506_v4, %s8746_s25  ;;  %650 = vrot.lane.b32.xlu0 %v5511_v5, %s8770_s24 }
  0x6a   : > { %644 = vrot.lane.b32.xlu1 %v5514_v6, %s8770_s24  ;;  %642 = vrot.lane.b32.xlu0 %v5517_v7, %s8770_s24 }
  0x6e   : > { %636 = vrot.lane.b32.xlu1 %v5524_v8, %s8770_s24  ;;  %630 = vrot.lane.b32.xlu0 %v5527_v9, %s8746_s25 }
  0x72   : > { %628 = vrot.lane.b32.xlu1 %v5536_v10, %s8746_s25  ;;  %638 = vrot.lane.b32.xlu0 %v5541_v11, %s8770_s24 }
  0x76   : > { %590 = vrot.lane.b32.xlu1 %v5498_v2, %s8748_s26  ;;  %588 = vrot.lane.b32.xlu0 %v5491_v1, %s8748_s26 }
  0x7a   : > { %582 = vrot.lane.b32.xlu1 %v5501_v3, %s8748_s26  ;;  %568 = vrot.lane.b32.xlu0 %v5488_v0, %s8674_s27 }
  0x7e   : > { %566 = vrot.lane.b32.xlu1 %v5506_v4, %s8674_s27  ;;  %584 = vrot.lane.b32.xlu0 %v5511_v5, %s8748_s26 }
  0x82   : > { %848 = vrot.lane.b32.xlu1 %v5488_v0, %s8714_s28  ;;  %846 = vrot.lane.b32.xlu0 %v5498_v2, %s8714_s28 }
  0x86   : > { %576 = vrot.lane.b32.xlu1 %v5517_v7, %s8748_s26  ;;  %844 = vrot.lane.b32.xlu0 %v5491_v1, %s8714_s28 }
  0x88   : > { %v503_v12 = vpop.permute.xlu1 %502  ;;  %v523_v13 = vpop.permute.xlu0 %522 }
  0x89   : > { %v560_v17 = vsel %vm8758_vm0, %v503_v12, %v523_v13 }
  0x8a   : > { %564 = vrot.lane.b32.xlu1 %v5527_v9, %s8674_s27  ;;  %578 = vrot.lane.b32.xlu0 %v5514_v6, %s8748_s26 }
  0x8c   : > { %v517_v14 = vpop.permute.xlu1 %516  ;;  %v5643_v15 = vpop.permute.xlu0 %524 }
  0x8d   : > { %v535_v16 = vsel %vm8758_vm0, %v523_v13, %v5643_v15 }
  0x8e   : > { %842 = vrot.lane.b32.xlu1 %v5506_v4, %s8714_s28  ;;  %1155 = vmatprep.subr.bf16.mxu0 %v535_v16 }
  0x8f   : > { %840 = vrot.lane.b32.xlu0 %v5511_v5, %s8714_s28  ;;  %1156 = vmatpush1.bf16.msra.mxu0 %v560_v17 }
  0x90   : > { %v501_v18 = vpop.permute.xlu1 %500  ;;  %v5652_v19 = vpop.permute.xlu0 %518 }
  0x91   : > { %v556_v20 = vsel %vm8758_vm0, %v501_v18, %v517_v14  ;;  %v533_v21 = vsel %vm8758_vm0, %v517_v14, %v5652_v19 }
  0x92   : > { %570 = vrot.lane.b32.xlu1 %v5524_v8, %s8748_s26  ;;  %1157 = vmatprep.subr.bf16.mxu0 %v533_v21 }
  0x93   : > { %838 = vrot.lane.b32.xlu0 %v5501_v3, %s8714_s28  ;;  %1158 = vmatpush1.bf16.msra.mxu0 %v556_v20 }
  0x94   : > { %v5661_v22 = vpop.permute.xlu1 %512  ;;  %v511_v23 = vpop.permute.xlu0 %510 }
  0x95   : > { %v531_v24 = vsel %vm8758_vm0, %v511_v23, %v5661_v22 }
  0x96   : > { %562 = vrot.lane.b32.xlu1 %v5536_v10, %s8674_s27  ;;  %1159 = vmatprep.subr.bf16.mxu0 %v531_v24  ;;  %s8767_s27 = smov 62  }
  0x97   : > { %572 = vrot.lane.b32.xlu0 %v5541_v11, %s8748_s26 }
  0x98   : > { %v505_v25 = vpop.permute.xlu1 %504  ;;  %v499_v26 = vpop.permute.xlu0 %498 }
  0x99   : > { %v552_v27 = vsel %vm8758_vm0, %v499_v26, %v511_v23 }
  0x9a   : > { %836 = vrot.lane.b32.xlu1 %v5527_v9, %s8714_s28  ;;  %1160 = vmatpush1.bf16.msra.mxu0 %v552_v27 }
  0x9b   : > { %834 = vrot.lane.b32.xlu0 %v5514_v6, %s8714_s28 }
  0x9c   : > { %v497_v28 = vpop.permute.xlu1 %496  ;;  %v5674_v29 = vpop.permute.xlu0 %506 }
  0x9d   : > { %v548_v30 = vsel %vm8758_vm0, %v497_v28, %v505_v25  ;;  %v529_v31 = vsel %vm8758_vm0, %v505_v25, %v5674_v29  ;;  %v8680_v28 = vmov 0  }
  0x9e   : > { %828 = vrot.lane.b32.xlu1 %v5541_v11, %s8714_s28  ;;  %1161 = vmatprep.subr.bf16.mxu0 %v529_v31 }
  0x9f   : > { %832 = vrot.lane.b32.xlu0 %v5517_v7, %s8714_s28  ;;  %1162 = vmatpush1.bf16.msra.mxu0 %v548_v30 }
  0xa0   : > { %v5683_v32 = vpop.permute.xlu1 %458  ;;  %v457_v33 = vpop.permute.xlu0 %456  ;;  %4751 = vset.pattern.permute.xlu0 %v8680_v28  ;;  %4752 = vset.pattern.permute.xlu1 %v8680_v28 }
  0xa1   : > { %v469_v34 = vsel %vm8757_vm1, %v457_v33, %v5683_v32 }
  0xa2   : > { %826 = vrot.lane.b32.xlu1 %v5524_v8, %s8714_s28  ;;  %1163 = vmatprep.subr.bf16.mxu0 %v469_v34 }
  0xa3   : > { %830 = vrot.lane.b32.xlu0 %v5536_v10, %s8714_s28 }
  0xa4   : > { %v451_v35 = vpop.permute.xlu1 %450  ;;  %v405_v36 = vpop.permute.xlu0 %404 }
  0xa5   : > { %v494_v37 = vsel %vm8757_vm1, %v405_v36, %v457_v33 }
  0xa6   : > { %782 = vrot.lane.b32.xlu1 %v5488_v0, %s8678_s29  ;;  %1164 = vmatpush1.bf16.msra.mxu0 %v494_v37 }
  0xa7   : > { %780 = vrot.lane.b32.xlu0 %v5498_v2, %s8678_s29 }
  0xa8   : > { %v403_v38 = vpop.permute.xlu1 %402  ;;  %v5696_v39 = vpop.permute.xlu0 %452 }
  0xa9   : > { %v490_v40 = vsel %vm8757_vm1, %v403_v38, %v451_v35  ;;  %v467_v41 = vsel %vm8757_vm1, %v451_v35, %v5696_v39 }
  0xaa   : > { %774 = vrot.lane.b32.xlu1 %v5511_v5, %s8678_s29  ;;  %1165 = vmatprep.subr.bf16.mxu0 %v467_v41 }
  0xab   : > { %778 = vrot.lane.b32.xlu0 %v5491_v1, %s8678_s29  ;;  %1166 = vmatpush1.bf16.msra.mxu0 %v490_v40 }
  0xac   : > { %v5705_v42 = vpop.permute.xlu1 %716  ;;  %v715_v43 = vpop.permute.xlu0 %714 }
  0xad   : > { %v726_v45 = vsel %vm8753_vm2, %v715_v43, %v5705_v42 }
  0xae   : > { %772 = vrot.lane.b32.xlu1 %v5501_v3, %s8678_s29  ;;  %1228 = vmatprep.subr.bf16.mxu1 %v726_v45 }
  0xaf   : > { %776 = vrot.lane.b32.xlu0 %v5506_v4, %s8678_s29 }
  0xb0   : > { %v445_v46 = vpop.permute.xlu1 %444  ;;  %v713_v47 = vpop.permute.xlu0 %712 }
  0xb1   : > { %v725_v48 = vsel %vm8753_vm2, %v713_v47, %v715_v43 }
  0xb2   : > { %770 = vrot.lane.b32.xlu1 %v5527_v9, %s8678_s29  ;;  %1229 = vmatpush1.bf16.msra.mxu1 %v725_v48 }
  0xb3   : > { %768 = vrot.lane.b32.xlu0 %v5514_v6, %s8678_s29 }
  0xb4   : > { %v401_v49 = vpop.permute.xlu1 %400  ;;  %v5724_v50 = vpop.permute.xlu0 %446 }
  0xb5   : > { %v486_v51 = vsel %vm8757_vm1, %v401_v49, %v445_v46  ;;  %v465_v52 = vsel %vm8757_vm1, %v445_v46, %v5724_v50 }
  0xb6   : > { %912 = vrot.lane.b32.xlu1 %v5498_v2, %s8670_s12  ;;  %1167 = vmatprep.subr.bf16.mxu0 %v465_v52 }
  0xb7   : > { %766 = vrot.lane.b32.xlu0 %v5517_v7, %s8678_s29  ;;  %1168 = vmatpush1.bf16.msra.mxu0 %v486_v51 }
  0xb8   : > { %v5733_v53 = vpop.permute.xlu1 %710  ;;  %v709_v54 = vpop.permute.xlu0 %708 }
  0xb9   : > { %v724_v55 = vsel %vm8753_vm2, %v709_v54, %v5733_v53 }
  0xba   : > { %910 = vrot.lane.b32.xlu1 %v5491_v1, %s8670_s12  ;;  %1230 = vmatprep.subr.bf16.mxu1 %v724_v55 }
  0xbb   : > { %914 = vrot.lane.b32.xlu0 %v5488_v0, %s8670_s12 }
  0xbc   : > { %v439_v56 = vpop.permute.xlu1 %438  ;;  %v707_v57 = vpop.permute.xlu0 %706 }
  0xbd   : > { %v723_v59 = vsel %vm8753_vm2, %v707_v57, %v709_v54 }
  0xbe   : > { %764 = vrot.lane.b32.xlu1 %v5536_v10, %s8678_s29  ;;  %1231 = vmatpush1.bf16.msra.mxu1 %v723_v59 }
  0xbf   : > { %762 = vrot.lane.b32.xlu0 %v5541_v11, %s8678_s29 }
  0xc0   : > { %v399_v60 = vpop.permute.xlu1 %398  ;;  %v5752_v61 = vpop.permute.xlu0 %440 }
  0xc1   : > { %v482_v62 = vsel %vm8757_vm1, %v399_v60, %v439_v56  ;;  %v463_v63 = vsel %vm8757_vm1, %v439_v56, %v5752_v61 }
  0xc2   : > { %906 = vrot.lane.b32.xlu1 %v5511_v5, %s8670_s12  ;;  %1169 = vmatprep.subr.bf16.mxu0 %v463_v63 }
  0xc3   : > { %760 = vrot.lane.b32.xlu0 %v5524_v8, %s8678_s29  ;;  %1170 = vmatpush1.bf16.msra.mxu0 %v482_v62  ;;  %s8706_s29 = smov 32  }
  0xc4   : > { %v5761_v12 = vpop.permute.xlu1 %704  ;;  %v703_v13 = vpop.permute.xlu0 %702 }
  0xc5   : > { %v722_v14 = vsel %vm8753_vm2, %v703_v13, %v5761_v12 }
  0xc6   : > { %904 = vrot.lane.b32.xlu1 %v5501_v3, %s8670_s12  ;;  %1232 = vmatprep.subr.bf16.mxu1 %v722_v14 }
  0xc7   : > { %908 = vrot.lane.b32.xlu0 %v5506_v4, %s8670_s12 }
  0xc8   : > { %v655_v16 = vpop.permute.xlu1 %654  ;;  %v701_v17 = vpop.permute.xlu0 %700 }
  0xc9   : > { %v721_v18 = vsel %vm8753_vm2, %v701_v17, %v703_v13 }
  0xca   : > { %526 = vrot.lane.b32.xlu1 %v5488_v0, %s8742_s20  ;;  %1233 = vmatpush1.bf16.msra.mxu1 %v721_v18 }
  0xcb   : > { %658 = vrot.lane.b32.xlu0 %v5488_v0, %s8770_s24 }
  0xcc   : > { %v635_v20 = vpop.permute.xlu1 %634  ;;  %v5774_v21 = vpop.permute.xlu0 %656 }
  0xcd   : > { %v692_v23 = vsel %vm8756_vm3, %v635_v20, %v655_v16  ;;  %v667_v24 = vsel %vm8756_vm3, %v655_v16, %v5774_v21 }
  0xce   : > { %902 = vrot.lane.b32.xlu1 %v5527_v9, %s8670_s12  ;;  %1171 = vmatprep.subr.bf16.mxu0 %v667_v24 }
  0xcf   : > { %900 = vrot.lane.b32.xlu0 %v5514_v6, %s8670_s12  ;;  %1172 = vmatpush2.bf16.msra.mxu0 %v692_v23 }
  0xd0   : > { %v5783_v25 = vpop.permute.xlu1 %698  ;;  %v697_v26 = vpop.permute.xlu0 %696 }
  0xd1   : > { %v720_v27 = vsel %vm8753_vm2, %v697_v26, %v5783_v25 }
  0xd2   : > { %652 = vrot.lane.b32.xlu1 %v5506_v4, %s8770_s24  ;;  %1234 = vmatprep.subr.bf16.mxu1 %v720_v27 }
  0xd3   : > { %898 = vrot.lane.b32.xlu0 %v5517_v7, %s8670_s12 }
  0xd4   : > { %v649_v30 = vpop.permute.xlu1 %648  ;;  %v695_v31 = vpop.permute.xlu0 %694 }
  0xd5   : > { %v719_v33 = vsel %vm8753_vm2, %v695_v31, %v697_v26 }
  0xd6   : > { %894 = vrot.lane.b32.xlu1 %v5541_v11, %s8670_s12  ;;  %1235 = vmatpush1.bf16.msra.mxu1 %v719_v33 }
  0xd7   : > { %520 = vrot.lane.b32.xlu0 %v5506_v4, %s8742_s20  ;;  %1236 = vmatprep.subr.bf16.mxu1 %v5498_v2 }
  0xd8   : > { %v633_v34 = vpop.permute.xlu1 %632  ;;  %v5799_v35 = vpop.permute.xlu0 %650 }
  0xd9   : > { %v688_v36 = vsel %vm8756_vm3, %v633_v34, %v649_v30  ;;  %v665_v37 = vsel %vm8756_vm3, %v649_v30, %v5799_v35 }
  0xda   : > { %892 = vrot.lane.b32.xlu1 %v5524_v8, %s8670_s12  ;;  %1173 = vmatprep.subr.bf16.mxu0 %v665_v37 }
  0xdb   : > { %896 = vrot.lane.b32.xlu0 %v5536_v10, %s8670_s12  ;;  %1174 = vmatpush2.bf16.msra.mxu0 %v688_v36  ;;  %s8676_s12 = smov 49  }
  0xdc   : > { %v5808_v38 = vpop.permute.xlu1 %644  ;;  %1237 = vmatpush1.bf16.msra.mxu1 %v5491_v1  ;;  %v643_v2 = vpop.permute.xlu0 %642 }
  0xdd   : > { %1238 = vmatprep.subr.bf16.mxu1 %v5511_v5  ;;  %v663_v40 = vsel %vm8756_vm3, %v643_v2, %v5808_v38 }
  0xde   : > { %514 = vrot.lane.b32.xlu1 %v5527_v9, %s8742_s20  ;;  %1175 = vmatprep.subr.bf16.mxu0 %v663_v40 }
  0xdf   : > { %646 = vrot.lane.b32.xlu0 %v5527_v9, %s8770_s24 }
  0xe0   : > { %v637_v41 = vpop.permute.xlu1 %636  ;;  %1239 = vmatpush1.bf16.msra.mxu1 %v5501_v3  ;;  %v631_v43 = vpop.permute.xlu0 %630 }
  0xe1   : > { %1240 = vmatprep.subr.bf16.mxu1 %v5514_v6  ;;  %v684_v5 = vsel %vm8756_vm3, %v631_v43, %v643_v2  ;;  %v5913_v2 = vld [vmem:[%s8777_s2 + $0x2c] ss:$20 sps:$4 sm:$0xff]  }
  0xe2   : > { %741 = vrot.lane.b32.xlu1 %v5491_v1, %s8666_s17  ;;  %1176 = vmatpush2.bf16.msra.mxu0 %v684_v5 }
  0xe3   : > { %873 = vrot.lane.b32.xlu0 %v5491_v1, %s8668_s30 }
  0xe4   : > { %v629_v45 = vpop.permute.xlu1 %628  ;;  %1241 = vmatpush1.bf16.msra.mxu1 %v5517_v7  ;;  %v5826_v46 = vpop.permute.xlu0 %638 }
  0xe5   : > { %v680_v47 = vsel %vm8756_vm3, %v629_v45, %v637_v41  ;;  %1242 = vmatprep.subr.bf16.mxu1 %v5541_v11  ;;  %v661_v6 = vsel %vm8756_vm3, %v637_v41, %v5826_v46  ;;  %v5934_v45 = vld [vmem:[%s8777_s2 + $0x28] ss:$20 sps:$4 sm:$0xff]  }
  0xe6   : > { %508 = vrot.lane.b32.xlu1 %v5536_v10, %s8742_s20  ;;  %1177 = vmatprep.subr.bf16.mxu0 %v661_v6 }
  0xe7   : > { %640 = vrot.lane.b32.xlu0 %v5536_v10, %s8770_s24  ;;  %1178 = vmatpush2.bf16.msra.mxu0 %v680_v47 }
  0xe8   : > { %v5836_v48 = vpop.permute.xlu1 %590  ;;  %1243 = vmatpush1.bf16.msra.mxu1 %v5524_v8  ;;  %v589_v49 = vpop.permute.xlu0 %588 }
  0xe9   : > { %v601_v11 = vsel %vm8759_vm4, %v589_v49, %v5836_v48 }
  0xea   : > { %739 = vrot.lane.b32.xlu1 %v5501_v3, %s8666_s17  ;;  %1179 = vmatprep.subr.bf16.mxu0 %v601_v11  ;;  %v998_v11 = vld [vmem:[%s8658_s3 + $0x20] sm:$0xff] }
  0xeb   : > { %871 = vrot.lane.b32.xlu0 %v5501_v3, %s8668_s30 }
  0xec   : > { %v583_v51 = vpop.permute.xlu1 %582  ;;  %v569_v52 = vpop.permute.xlu0 %568 }
  0xed   : > { %v626_v54 = vsel %vm8759_vm4, %v569_v52, %v589_v49  ;;  %v999_v52 = vld [vmem:[%s8658_s3 + $0x28] sm:$0xff] }
  0xee   : > { %460 = vrot.lane.b32.xlu1 %v5488_v0, %s8740_s21  ;;  %1180 = vmatpush2.bf16.msra.mxu0 %v626_v54 }
  0xef   : > { %592 = vrot.lane.b32.xlu0 %v5488_v0, %s8748_s26 }
  0xf0   : > { %v567_v55 = vpop.permute.xlu1 %566  ;;  %v5850_v56 = vpop.permute.xlu0 %584 }
  0xf1   : > { %v622_v57 = vsel %vm8759_vm4, %v567_v55, %v583_v51  ;;  %v599_v59 = vsel %vm8759_vm4, %v583_v51, %v5850_v56 }
  0xf2   : > { %737 = vrot.lane.b32.xlu1 %v5517_v7, %s8666_s17  ;;  %1181 = vmatprep.subr.bf16.mxu0 %v599_v59 }
  0xf3   : > { %869 = vrot.lane.b32.xlu0 %v5517_v7, %s8668_s30  ;;  %1182 = vmatpush2.bf16.msra.mxu0 %v622_v57  ;;  %v996_v57 = vld [vmem:[%s8658_s3 + $0x10] sm:$0xff] }
  0xf4   : > { %v5859_v60 = vpop.permute.xlu1 %848  ;;  %v847_v0 = vpop.permute.xlu0 %846 }
  0xf5   : > { %v858_v62 = vsel %vm8754_vm5, %v847_v0, %v5859_v60 }
  0xf6   : > { %454 = vrot.lane.b32.xlu1 %v5506_v4, %s8740_s21  ;;  %1244 = vmatprep.subr.bf16.mxu1 %v858_v62  ;;  %v997_v62 = vld [vmem:[%s8658_s3 + $0x18] sm:$0xff] }
  0xf7   : > { %586 = vrot.lane.b32.xlu0 %v5506_v4, %s8748_s26 }
  0xf8   : > { %v577_v63 = vpop.permute.xlu1 %576  ;;  %v845_v13 = vpop.permute.xlu0 %844 }
  0xf9   : > { %v857_v14 = vsel %vm8754_vm5, %v845_v13, %v847_v0  ;;  %v5967_v0 = vld [vmem:[%s8777_s2 + $0x50] ss:$20 sps:$4 sm:$0xff]  }
  0xfa   : > { %735 = vrot.lane.b32.xlu1 %v5524_v8, %s8666_s17  ;;  %1245 = vmatpush2.bf16.msra.mxu1 %v857_v14  ;;  %v5975_v13 = vld [vmem:[%s8777_s2 + $0x7c] ss:$20 sps:$4 sm:$0xff]   ;;  %s8765_s17 = smov 126  }
  0xfb   : > { %867 = vrot.lane.b32.xlu0 %v5524_v8, %s8668_s30  ;;  %s8764_s30 = smov 66  }
  0xfc   : > { %v565_v16 = vpop.permute.xlu1 %564  ;;  %v5872_v17 = vpop.permute.xlu0 %578 }
  0xfd   : > { %v618_v18 = vsel %vm8759_vm4, %v565_v16, %v577_v63  ;;  %v597_v4 = vsel %vm8759_vm4, %v577_v63, %v5872_v17  ;;  %v994_v16 = vld [vmem:[%s8658_s3] sm:$0xff] }
  0xfe   : > { %448 = vrot.lane.b32.xlu1 %v5527_v9, %s8740_s21  ;;  %1183 = vmatprep.subr.bf16.mxu0 %v597_v4  ;;  %v995_v4 = vld [vmem:[%s8658_s3 + $0x8] sm:$0xff] }
  0xff   : > { %580 = vrot.lane.b32.xlu0 %v5527_v9, %s8748_s26  ;;  %1184 = vmatpush2.bf16.msra.mxu0 %v618_v18 }
 0x100   : > { %v5881_v20 = vpop.permute.xlu1 %842 }
 0x101   : > { %v841_v23 = vpop.permute.xlu0 %840 }
 0x102   : > { %574 = vrot.lane.b32.xlu1 %v5536_v10, %s8748_s26  ;;  %v856_v24 = vsel %vm8754_vm5, %v841_v23, %v5881_v20 }
 0x103   : > { %807 = vrot.lane.b32.xlu0 %v5491_v1, %s8672_s11  ;;  %1246 = vmatprep.subr.bf16.mxu1 %v856_v24 }
 0x104   : > { %v571_v26 = vpop.permute.xlu1 %570 }
 0x105   : > { %v839_v27 = vpop.permute.xlu0 %838 }
 0x106   : > { %805 = vrot.lane.b32.xlu1 %v5501_v3, %s8672_s11  ;;  %v855_v9 = vsel %vm8754_vm5, %v839_v27, %v841_v23 }
 0x107   : > { %442 = vrot.lane.b32.xlu0 %v5536_v10, %s8740_s21  ;;  %1247 = vmatpush2.bf16.msra.mxu1 %v855_v9  ;;  %v5908_v10 = vld [vmem:[%s8777_s2] ss:$20 sps:$4 sm:$0xff]   ;;  %v5996_v9 = vld [vmem:[%s8777_s2 + $0x78] ss:$20 sps:$4 sm:$0xff]  }
 0x108   : > { %v563_v30 = vpop.permute.xlu1 %562 }
 0x109   : > { %v5894_v31 = vpop.permute.xlu0 %572  ;;  %v614_v33 = vsel %vm8759_vm4, %v563_v30, %v571_v26 }
 0x10a   : > { %801 = vrot.lane.b32.xlu1 %v5524_v8, %s8672_s11  ;;  %v595_v34 = vsel %vm8759_vm4, %v571_v26, %v5894_v31 }
 0x10b   : > { %803 = vrot.lane.b32.xlu0 %v5517_v7, %s8672_s11  ;;  %1185 = vmatprep.subr.bf16.mxu0 %v595_v34  ;;  %s8762_s11 = smov 36  }
 0x10c   : > { %v5903_v36 = vpop.permute.xlu1 %836  ;;  %1186 = vmatpush2.bf16.msra.mxu0 %v614_v33 }
 0x10d   : > { %v835_v37 = vpop.permute.xlu0 %834 }
 0x10e   : > { %937 = vrot.lane.b32.xlu1 %v5501_v3, %s8676_s12  ;;  %v854_v40 = vsel %vm8754_vm5, %v835_v37, %v5903_v36 }
 0x10f   : > { %939 = vrot.lane.b32.xlu0 %v5491_v1, %s8676_s12  ;;  %1248 = vmatprep.subr.bf16.mxu1 %v854_v40  ;;  %v1001_v1 = vld [vmem:[%s8658_s3 + $0x38] sm:$0xff] }
 0x110   : > { %v829_v41 = vpop.permute.xlu1 %828  ;;  %1188 = vmatmul.mubr.bf16.vlgmr.msra.gmra.mxu0 %v5908_v10 }
 0x111   : > { %v833_v43 = vpop.permute.xlu0 %832  ;;  %1197 = vmatprep.mubr.bf16.mxu0 %v5913_v2 }
 0x112   : > { %933 = vrot.lane.b32.xlu1 %v5524_v8, %s8676_s12  ;;  %v853_v5 = vsel %vm8754_vm5, %v833_v43, %v835_v37  ;;  %v1000_v8 = vld [vmem:[%s8658_s3 + $0x30] sm:$0xff] }
 0x113   : > { %935 = vrot.lane.b32.xlu0 %v5517_v7, %s8676_s12  ;;  %1249 = vmatpush2.bf16.msra.mxu1 %v853_v5  ;;  %v5945_v7 = vld [vmem:[%s8777_s2 + $0x54] ss:$20 sps:$4 sm:$0xff]   ;;  %s8797_s12 = smov 111  }
 0x114   : > { %v827_v3 = vpop.permute.xlu1 %826 }
 0x115   : > { %v5939_v47 = vpop.permute.xlu0 %830  ;;  %v851_v6 = vsel %vm8754_vm5, %v827_v3, %v829_v41 }
 0x116   : > { %v852_v49 = vsel %vm8754_vm5, %v829_v41, %v5939_v47  ;;  %1039 = vperm.xlu1 %4752, %v1001_v1  }
 0x117   : > { %1250 = vmatprep.subr.bf16.mxu1 %v852_v49  ;;  %1034 = vperm.xlu0 %4751, %v1000_v8  }
 0x118   : > { %v5952_v51 = vpop.permute.xlu1 %782  ;;  %1251 = vmatpush2.bf16.msra.mxu1 %v851_v6  ;;  %1198 = vmatmul.mubr.bf16.gmra.mxu0 %v5934_v45 }
 0x119   : > { %v781_v54 = vpop.permute.xlu0 %780  ;;  %1207 = vmatprep.mubr.bf16.mxu0 %v5945_v7 }
 0x11a   : > { %v792_v55 = vsel %vm8760_vm6, %v781_v54, %v5952_v51  ;;  %1024 = vperm.xlu1 %4752, %v998_v11  }
 0x11b   : > { %1252 = vmatprep.subr.bf16.mxu1 %v792_v55  ;;  %1029 = vperm.xlu0 %4751, %v999_v52   ;;  %v6021_v55 = vld [vmem:[%s8777_s2 + $0x34] ss:$20 sps:$4 sm:$0xff]  }
 0x11c   : > { %v775_v59 = vpop.permute.xlu1 %774 }
 0x11d   : > { %v779_v63 = vpop.permute.xlu0 %778 }
 0x11e   : > { %v791_v14 = vsel %vm8760_vm6, %v779_v63, %v781_v54  ;;  %1014 = vperm.xlu1 %4752, %v996_v57   ;;  %v6016_v54 = vld [vmem:[%s8777_s2 + $0x8] ss:$20 sps:$4 sm:$0xff]  }
 0x11f   : > { %1253 = vmatpush2.bf16.msra.mxu1 %v791_v14  ;;  %1019 = vperm.xlu0 %4751, %v997_v62  }
 0x120   : > { %v773_v18 = vpop.permute.xlu1 %772  ;;  %1208 = vmatmul.mubr.bf16.gmra.mxu0 %v5967_v0 }
 0x121   : > { %v5985_v23 = vpop.permute.xlu0 %776  ;;  %v789_v24 = vsel %vm8760_vm6, %v773_v18, %v775_v59  ;;  %1217 = vmatprep.mubr.bf16.mxu0 %v5975_v13 }
 0x122   : > { %v790_v26 = vsel %vm8760_vm6, %v775_v59, %v5985_v23  ;;  %1004 = vperm.xlu1 %4752, %v994_v16  }
 0x123   : > { %1254 = vmatprep.subr.bf16.mxu1 %v790_v26  ;;  %1009 = vperm.xlu0 %4751, %v995_v4   ;;  %v6042_v26 = vld [vmem:[%s8777_s2 + $0x5c] ss:$20 sps:$4 sm:$0xff]  }
 0x124   : > { %v5991_v27 = vpop.permute.xlu1 %770  ;;  %1255 = vmatpush2.bf16.msra.mxu1 %v789_v24  ;;  %v6037_v24 = vld [vmem:[%s8777_s2 + $0x30] ss:$20 sps:$4 sm:$0xff]  }
 0x125   : > { %v769_v30 = vpop.permute.xlu0 %768 }
 0x126   : > { %v788_v33 = vsel %vm8760_vm6, %v769_v30, %v5991_v27 }
 0x127   : > { %1256 = vmatprep.subr.bf16.mxu1 %v788_v33 }
 0x128   : > { %v913_v34 = vpop.permute.xlu1 %912  ;;  %1218 = vmatmul.mubr.bf16.gmra.mxu0 %v5996_v9 }
 0x129   : > { %v767_v37 = vpop.permute.xlu0 %766  ;;  %1333 = vmatprep.mubr.bf16.mxu0 %v8680_v28 }
 0x12a   : > { %v787_v40 = vsel %vm8760_vm6, %v767_v37, %v769_v30 }
 0x12b   : > { %1257 = vmatpush2.bf16.msra.mxu1 %v787_v40 }
 0x12c   : > { %v911_v41 = vpop.permute.xlu1 %910 }
 0x12d   : > { %v6003_v43 = vpop.permute.xlu0 %914  ;;  %v923_v5 = vsel %vm8696_vm7, %v911_v41, %v913_v34  ;;  %v6056_v41 = vld [vmem:[%s8777_s2 + $0x58] ss:$20 sps:$4 sm:$0xff]  }
 0x12e   : > { %v924_v1 = vsel %vm8696_vm7, %v913_v34, %v6003_v43 }
 0x12f   : > { %1309 = vmatprep.subr.bf16.mxu0 %v924_v1 }
 0x130   : > { %v6008_v3 = vpop.permute.xlu1 %764  ;;  %1310 = vmatpush1.bf16.msra.mxu0 %v923_v5  ;;  %v6061_v5 = vld [vmem:[%s8777_s2 + $0x84] ss:$20 sps:$4 sm:$0xff]  }
 0x131   : > { %v763_v8 = vpop.permute.xlu0 %762 }
 0x132   : > { %v786_v6 = vsel %vm8760_vm6, %v763_v8, %v6008_v3 }
 0x133   : > { %1258 = vmatprep.subr.bf16.mxu1 %v786_v6 }
 0x134   : > { %v907_v49 = vpop.permute.xlu1 %906 }
 0x135   : > { %v761_v11 = vpop.permute.xlu0 %760 }
 0x136   : > { %v785_v52 = vsel %vm8760_vm6, %v761_v11, %v763_v8 }
 0x137   : > { %1259 = vmatpush2.bf16.msra.mxu1 %v785_v52 }
 0x138   : > { %v905_v57 = vpop.permute.xlu1 %904 }
 0x139   : > { %v6023_v59 = vpop.permute.xlu0 %908  ;;  %v921_v62 = vsel %vm8696_vm7, %v905_v57, %v907_v49  ;;  %v6075_v57 = vld [vmem:[%s8777_s2 + $0x80] ss:$20 sps:$4 sm:$0xff]  }
 0x13a   : > { %v922_v63 = vsel %vm8696_vm7, %v907_v49, %v6023_v59  ;;  %1261 = vmatmul.mubr.bf16.vlgmr.msra.gmra.mxu1 %v6016_v54 }
 0x13b   : > { %1311 = vmatprep.subr.bf16.mxu0 %v922_v63  ;;  %1270 = vmatprep.mubr.bf16.mxu1 %v6021_v55 }
 0x13c   : > { %v527_v14 = vpop.permute.xlu1 %526  ;;  %1312 = vmatpush1.bf16.msra.mxu0 %v921_v62 }
 0x13d   : > { %v659_v16 = vpop.permute.xlu0 %658  ;;  %v536_v18 = vsel %vm8758_vm0, %v5643_v15, %v527_v14 }
 0x13e   : > { %v668_v4 = vsel %vm8756_vm3, %v5774_v21, %v659_v16 }
 0x13f   : > { %4503 = vmatprep.subr.bf16.mxu1 %v668_v4 }
 0x140   : > { %4504 = vmatpush3.bf16.msra.mxu1 %v536_v18  ;;  %v6044_v30 = vpop.permute.xlu1 %902 }
 0x141   : > { %v901_v33 = vpop.permute.xlu0 %900 }
 0x142   : > { %v920_v15 = vsel %vm8696_vm7, %v901_v33, %v6044_v30  ;;  %1271 = vmatmul.mubr.bf16.gmra.mxu1 %v6037_v24 }
 0x143   : > { %1313 = vmatprep.subr.bf16.mxu0 %v920_v15  ;;  %1280 = vmatprep.mubr.bf16.mxu1 %v6042_v26 }
 0x144   : > { %v653_v21 = vpop.permute.xlu1 %652 }
 0x145   : > { %v899_v34 = vpop.permute.xlu0 %898  ;;  %v666_v37 = vsel %vm8756_vm3, %v5799_v35, %v653_v21 }
 0x146   : > { %v919_v40 = vsel %vm8696_vm7, %v899_v34, %v901_v33  ;;  %4505 = vmatprep.subr.bf16.mxu1 %v666_v37 }
 0x147   : > { %1314 = vmatpush1.bf16.msra.mxu0 %v919_v40 }
 0x148   : > { %v895_v1 = vpop.permute.xlu1 %894 }
 0x149   : > { %v521_v8 = vpop.permute.xlu0 %520 }
 0x14a   : > { %v534_v6 = vsel %vm8758_vm0, %v5652_v19, %v521_v8  ;;  %1281 = vmatmul.mubr.bf16.gmra.mxu1 %v6056_v41  ;;  %v6080_v19 = vld [vmem:[%s8777_s2 + $0x10] ss:$20 sps:$4 sm:$0xff]  }
 0x14b   : > { %4506 = vmatpush3.bf16.msra.mxu1 %v534_v6  ;;  %1290 = vmatprep.mubr.bf16.mxu1 %v6061_v5 }
 0x14c   : > { %v893_v35 = vpop.permute.xlu1 %892 }
 0x14d   : > { %v6067_v49 = vpop.permute.xlu0 %896  ;;  %v917_v11 = vsel %vm8696_vm7, %v893_v35, %v895_v1 }
 0x14e   : > { %v918_v52 = vsel %vm8696_vm7, %v895_v1, %v6067_v49 }
 0x14f   : > { %1315 = vmatprep.subr.bf16.mxu0 %v918_v52 }
 0x150   : > { %1316 = vmatpush1.bf16.msra.mxu0 %v917_v11  ;;  %v515_v62 = vpop.permute.xlu1 %514 }
 0x151   : > { %v647_v63 = vpop.permute.xlu0 %646  ;;  %v532_v14 = vsel %vm8758_vm0, %v5661_v22, %v515_v62 }
 0x152   : > { %v664_v16 = vsel %vm8756_vm3, %v5808_v38, %v647_v63  ;;  %1291 = vmatmul.mubr.bf16.gmra.mxu1 %v6075_v57  ;;  %v6098_v38 = vld [vmem:[%s8777_s2 + $0x38] ss:$20 sps:$4 sm:$0xff]  }
 0x153   : > { %4470 = vmatmul.mubr.msk.bf16.vlgmr.msra.gmra.mxu0 %vm8693_vm8, %v6080_v19  ;;  %4507 = vmatprep.subr.bf16.mxu1 %v664_v16 }
 0x154   : > { %4508 = vmatpush3.bf16.msra.mxu1 %v532_v14  ;;  %v742_v18 = vpop.permute.xlu1 %741  ;;  %1343 = vmatprep.mubr.bf16.mxu0 %v8680_v28 }
 0x155   : > { %v874_v4 = vpop.permute.xlu0 %873  ;;  %v758_v33 = vsel %vm8694_vm9, %v5705_v42, %v742_v18  ;;  %1406 = vmatprep.mubr.bf16.mxu1 %v5710_v44 }
 0x156   : > { %v890_v22 = vsel %vm8695_vm10, %v5859_v60, %v874_v4 }
 0x157   : > { %4543 = vmatprep.subr.bf16.mxu0 %v890_v22  ;;  %v5377_v22 = vld [vmem:[%s5485_s18 + $0x50] ss:$12 sps:$4 sm:$0xff]  }
 0x158   : > { %4544 = vmatpush3.bf16.msra.mxu0 %v758_v33  ;;  %v509_v15 = vpop.permute.xlu1 %508 }
 0x159   : > { %v641_v21 = vpop.permute.xlu0 %640  ;;  %v530_v34 = vsel %vm8758_vm0, %v5674_v29, %v509_v15  ;;  %v6114_v29 = vld [vmem:[%s8777_s2 + $0x60] ss:$20 sps:$4 sm:$0xff]  }
 0x15a   : > { %v662_v42 = vsel %vm8756_vm3, %v5826_v46, %v641_v21 }
 0x15b   : > { %4471 = vmatmul.mubr.msk.bf16.gmra.mxu0 %vm8693_vm8, %v6098_v38  ;;  %4509 = vmatprep.subr.bf16.mxu1 %v662_v42 }
 0x15c   : > { %4510 = vmatpush3.bf16.msra.mxu1 %v530_v34  ;;  %v740_v44 = vpop.permute.xlu1 %739  ;;  %1353 = vmatprep.mubr.bf16.mxu0 %v8680_v28  ;;  %v5378_v34 = vld [vmem:[%s5485_s18 + $0x38] ss:$12 sps:$4 sm:$0xff]  }
 0x15d   : > { %v872_v60 = vpop.permute.xlu0 %871  ;;  %v754_v37 = vsel %vm8694_vm9, %v5733_v53, %v740_v44 }
 0x15e   : > { %v886_v40 = vsel %vm8695_vm10, %v5881_v20, %v872_v60 }
 0x15f   : > { %4545 = vmatprep.subr.bf16.mxu0 %v886_v40 }
 0x160   : > { %4546 = vmatpush3.bf16.msra.mxu0 %v754_v37  ;;  %v461_v46 = vpop.permute.xlu1 %460 }
 0x161   : > { %v593_v1 = vpop.permute.xlu0 %592  ;;  %v470_v8 = vsel %vm8757_vm1, %v5683_v32, %v461_v46  ;;  %v6130_v32 = vld [vmem:[%s8777_s2 + $0x88] ss:$20 sps:$4 sm:$0xff]   ;;  %s8998_s2 = smov 62  }
 0x162   : > { %v602_v6 = vsel %vm8759_vm4, %v5836_v48, %v593_v1 }
 0x163   : > { %4472 = vmatmul.mubr.msk.bf16.gmra.mxu0 %vm8693_vm8, %v6114_v29  ;;  %4511 = vmatprep.subr.bf16.mxu1 %v602_v6 }
 0x164   : > { %4512 = vmatpush3.bf16.msra.mxu1 %v470_v8  ;;  %v738_v53 = vpop.permute.xlu1 %737  ;;  %1363 = vmatprep.mubr.bf16.mxu0 %v8680_v28 }
 0x165   : > { %v870_v20 = vpop.permute.xlu0 %869  ;;  %v750_v35 = vsel %vm8694_vm9, %v5761_v12, %v738_v53 }
 0x166   : > { %v882_v11 = vsel %vm8695_vm10, %v5903_v36, %v870_v20 }
 0x167   : > { %4547 = vmatprep.subr.bf16.mxu0 %v882_v11 }
 0x168   : > { %4548 = vmatpush3.bf16.msra.mxu0 %v750_v35  ;;  %v455_v48 = vpop.permute.xlu1 %454 }
 0x169   : > { %v587_v52 = vpop.permute.xlu0 %586  ;;  %v468_v62 = vsel %vm8757_vm1, %v5696_v39, %v455_v48 }
 0x16a   : > { %v600_v63 = vsel %vm8759_vm4, %v5850_v56, %v587_v52 }
 0x16b   : > { %4473 = vmatmul.mubr.msk.bf16.gmra.mxu0 %vm8693_vm8, %v6130_v32  ;;  %4513 = vmatprep.subr.bf16.mxu1 %v600_v63 }
 0x16c   : > { %4514 = vmatpush3.bf16.msra.mxu1 %v468_v62  ;;  %v736_v12 = vpop.permute.xlu1 %735  ;;  %1471 = vmatprep.mubr.bf16.mxu0 %v5744_v58 }
 0x16d   : > { %v868_v36 = vpop.permute.xlu0 %867  ;;  %v746_v14 = vsel %vm8694_vm9, %v5783_v25, %v736_v12 }
 0x16e   : > { %v878_v16 = vsel %vm8695_vm10, %v5939_v47, %v868_v36 }
 0x16f   : > { %4549 = vmatprep.subr.bf16.mxu0 %v878_v16 }
 0x170   : > { %4550 = vmatpush3.bf16.msra.mxu0 %v746_v14  ;;  %v449_v39 = vpop.permute.xlu1 %448 }
 0x171   : > { %v581_v56 = vpop.permute.xlu0 %580  ;;  %v466_v18 = vsel %vm8757_vm1, %v5724_v50, %v449_v39 }
 0x172   : > { %v598_v4 = vsel %vm8759_vm4, %v5872_v17, %v581_v56 }
 0x173   : > { %4515 = vmatprep.subr.bf16.mxu1 %v598_v4 }
 0x174   : > { %4516 = vmatpush3.bf16.msra.mxu1 %v466_v18  ;;  %v575_v58 = vpop.permute.xlu1 %574 }
 0x175   : > { %v808_v25 = vpop.permute.xlu0 %807  ;;  %v596_v47 = vsel %vm8759_vm4, %v5894_v31, %v575_v58 }
 0x176   : > { %4517 = vmatprep.subr.bf16.mxu1 %v596_v47  ;;  %v824_v33 = vsel %vm8692_vm11, %v5952_v51, %v808_v25 }
 0x177   : > { %4551 = vmatprep.subr.bf16.mxu0 %v824_v33 }
 0x178   : > { %4552 = vmatpush3.bf16.msra.mxu0 %v5377_v22  ;;  %v806_v50 = vpop.permute.xlu1 %805 }
 0x179   : > { %v443_v15 = vpop.permute.xlu0 %442  ;;  %v820_v17 = vsel %vm8692_vm11, %v5985_v23, %v806_v50  ;;  %v5379_v23 = vld [vmem:[%s5485_s18 + $0x20] ss:$12 sps:$4 sm:$0xff]  }
 0x17a   : > { %v464_v21 = vsel %vm8757_vm1, %v5752_v61, %v443_v15  ;;  %4553 = vmatprep.subr.bf16.mxu0 %v820_v17 }
 0x17b   : > { %4518 = vmatpush3.bf16.msra.mxu1 %v464_v21 }
 0x17c   : > { %4554 = vmatpush3.bf16.msra.mxu0 %v5378_v34  ;;  %v802_v31 = vpop.permute.xlu1 %801 }
 0x17d   : > { %v804_v42 = vpop.permute.xlu0 %803  ;;  %v812_v61 = vsel %vm8692_vm11, %v6008_v3, %v802_v31 }
 0x17e   : > { %1407 = vmatmul.mubr.bf16.vlgmr.msra.gmra.mxu1 %v5908_v10  ;;  %v816_v51 = vsel %vm8692_vm11, %v5991_v27, %v804_v42  ;;  %v5380_v10 = vld [vmem:[%s5485_s18 + $0x8] ss:$12 sps:$4 sm:$0xff]   ;;  %s8768_s18 = smov 2  }
 0x17f   : > { %4555 = vmatprep.subr.bf16.mxu0 %v816_v51  ;;  %1414 = vmatprep.mubr.bf16.mxu1 %v5913_v2 }
 0x180   : > { %4556 = vmatpush3.bf16.msra.mxu0 %v5379_v23  ;;  %v938_v60 = vpop.permute.xlu1 %937 }
 0x181   : > { %v940_v44 = vpop.permute.xlu0 %939  ;;  %4557 = vmatprep.subr.bf16.mxu0 %v812_v61  ;;  %v952_v27 = vsel %vm8691_vm12, %v6023_v59, %v938_v60 }
 0x182   : > { %v956_v37 = vsel %vm8691_vm12, %v6003_v43, %v940_v44 }
 0x183   : > { %4678 = vmatprep.subr.bf16.mxu1 %v956_v37 }
 0x184   : > { %4558 = vmatpush3.bf16.msra.mxu0 %v5380_v10  ;;  %4679 = vmatpush3.bf16.msra.mxu1 %v956_v37  ;;  %v934_v43 = vpop.permute.xlu1 %933 }
 0x185   : > { %v936_v40 = vpop.permute.xlu0 %935  ;;  %4680 = vmatprep.subr.bf16.mxu1 %v952_v27  ;;  %v944_v3 = vsel %vm8691_vm12, %v6067_v49, %v934_v43 }
 0x186   : > { %1415 = vmatmul.mubr.bf16.gmra.mxu1 %v5934_v45  ;;  %v948_v2 = vsel %vm8691_vm12, %v6044_v30, %v936_v40 }
 0x187   : > { %1472 = vmatmul.mubr.bf16.vlgmr.msra.gmra.mxu0 %v6016_v54  ;;  %1422 = vmatprep.mubr.bf16.mxu1 %v5945_v7 }
 0x188   : > { %4681 = vmatpush3.bf16.msra.mxu1 %v952_v27  ;;  %1479 = vmatprep.mubr.bf16.mxu0 %v6021_v55 }
 0x189   : > { %4682 = vmatprep.subr.bf16.mxu1 %v948_v2 }
 0x18c   : > { %4683 = vmatpush3.bf16.msra.mxu1 %v948_v2 }
 0x18d   : > { %4684 = vmatprep.subr.bf16.mxu1 %v944_v3 }
 0x18e   : > { %1423 = vmatmul.mubr.bf16.gmra.mxu1 %v5967_v0 }
 0x18f   : > { %1480 = vmatmul.mubr.bf16.gmra.mxu0 %v6037_v24  ;;  %1430 = vmatprep.mubr.bf16.mxu1 %v5975_v13 }
 0x190   : > { %4685 = vmatpush3.bf16.msra.mxu1 %v944_v3  ;;  %1487 = vmatprep.mubr.bf16.mxu0 %v6042_v26 }
 0x191   : > { %v6201_v49 = vpop.permute.xlu1 %1039 }
 0x192   : > { %v6193_v55 = vpop.permute.xlu0 %1034 }
 0x195   : > { %v6207_v46 = vpop.permute.xlu1 %1024 }
 0x196   : > { %1431 = vmatmul.mubr.bf16.gmra.mxu1 %v5996_v9  ;;  %v6195_v26 = vpop.permute.xlu0 %1029 }
 0x197   : > { %1488 = vmatmul.mubr.bf16.gmra.mxu0 %v6056_v41  ;;  %4686 = vmatprep.mubr.msk.bf16.mxu1 %vm8693_vm8, %v6080_v19 }
 0x198   : > { %1495 = vmatprep.mubr.bf16.mxu0 %v6061_v5 }
 0x19a   : > { %v6197_v41 = vpop.permute.xlu0 %1019 }
 0x19e   : > { %4687 = vmatmul.mubr.msk.bf16.vlgmr.msra.gmra.mxu1 %vm8693_vm8, %v6098_v38 }
 0x19f   : > { %1496 = vmatmul.mubr.bf16.gmra.mxu0 %v6075_v57  ;;  %4690 = vmatprep.mubr.msk.bf16.mxu1 %vm8693_vm8, %v6114_v29  ;;  %v6205_v29 = vpop.permute.xlu0 %1009 }
 0x1a6   : > { %4691 = vmatmul.mubr.msk.bf16.gmra.mxu1 %vm8693_vm8, %v6130_v32  ;;  %v6212_v32 = vpop.permute.xlu1 %1014  ;;  %vm8698_vm8 = vcmask 539648  }
 0x1aa   : > { %v6217_v36 = vpop.permute.xlu1 %1004 }
 0x1d0   : > { %v1189_v45 = vpop.f32.mrf.mxu0 }
 0x1d1   : > { %v1190_v56 = vadd.f32 %v1189_v45, %v6217_v36 }
 0x1d2   : > { %v1191_v7 = vpop.f32.mrf.mxu0 }
 0x1d3   : > { %v1192_v58 = vadd.f32 %v1191_v7, %v6217_v36 }
 0x1d4   : > { %v1193_v0 = vpop.f32.mrf.mxu0 }
 0x1d5   : > { %v1194_v22 = vadd.f32 %v1193_v0, %v6205_v29 }
 0x1d6   : > { %v1195_v13 = vpop.f32.mrf.mxu0 }
 0x1d7   : > { %v1196_v1 = vadd.f32 %v1195_v13, %v6205_v29 }
 0x1d8   : > { %v1199_v9 = vpop.f32.mrf.mxu0 }
 0x1d9   : > { %v1200_v42 = vadd.f32 %v1199_v9, %v6212_v32 }
 0x1da   : > { %v1201_v54 = vpop.f32.mrf.mxu0 }
 0x1db   : > { %v1202_v23 = vadd.f32 %v1201_v54, %v6212_v32 }
 0x1dc   : > { %v1203_v59 = vpop.f32.mrf.mxu0 }
 0x1dd   : > { %v1204_v40 = vadd.f32 %v1203_v59, %v6197_v41 }
 0x1de   : > { %v1205_v24 = vpop.f32.mrf.mxu0 }
 0x1df   : > { %v1206_v52 = vadd.f32 %v1205_v24, %v6197_v41 }
 0x1e0   : > { %v1209_v30 = vpop.f32.mrf.mxu0 }
 0x1e1   : > { %v1210_v13 = vadd.f32 %v1209_v30, %v6207_v46 }
 0x1e2   : > { %v6199_v5 = vpop.f32.mrf.mxu0 }
 0x1e4   : > { %v6203_v19 = vpop.f32.mrf.mxu0 }
 0x1e6   : > { %v1215_v6 = vpop.f32.mrf.mxu0 }
 0x1e7   : > { %v1216_v4 = vadd.f32 %v1215_v6, %v6195_v26 }
 0x1e8   : > { %v6210_v11 = vpop.f32.mrf.mxu0 }
 0x1ea   : > { %v6215_v63 = vpop.f32.mrf.mxu0 }
 0x1ec   : > { %v6219_v39 = vpop.f32.mrf.mxu0 }
 0x1ee   : > { %v6224_v47 = vpop.f32.mrf.mxu0 }
 0x1fa   : > { %v1262_v57 = vpop.f32.mrf.mxu1 }
 0x1fb   : > { %v1263_v33 = vadd.f32 %v1262_v57, %v1190_v56  ;;  %v1212_v57 = vadd.f32 %v6199_v5, %v6207_v46  ;;  %v1220_v56 = vadd.f32 %v6210_v11, %v6193_v55 }
 0x1fc   : > { %v1264_v38 = vpop.f32.mrf.mxu1 }
 0x1fd   : > { %v1265_v17 = vadd.f32 %v1264_v38, %v1192_v58 }
 0x1fe   : > { %v1266_v8 = vpop.f32.mrf.mxu1 }
 0x1ff   : > { %v1267_v31 = vadd.f32 %v1266_v8, %v1194_v22 }
 0x200   : > { %v1268_v53 = vpop.f32.mrf.mxu1 }
 0x201   : > { %v1269_v20 = vadd.f32 %v1268_v53, %v1196_v1 }
 0x202   : > { %v1272_v35 = vpop.f32.mrf.mxu1 }
 0x203   : > { %v1273_v27 = vadd.f32 %v1272_v35, %v1200_v42 }
 0x204   : > { %v1274_v48 = vpop.f32.mrf.mxu1 }
 0x205   : > { %v1275_v43 = vadd.f32 %v1274_v48, %v1202_v23 }
 0x206   : > { %v1276_v62 = vpop.f32.mrf.mxu1 }
 0x207   : > { %v1277_v54 = vadd.f32 %v1276_v62, %v1204_v40 }
 0x208   : > { %v1278_v12 = vpop.f32.mrf.mxu1 }
 0x209   : > { %v1279_v14 = vadd.f32 %v1278_v12, %v1206_v52 }
 0x20a   : > { %v1282_v16 = vpop.f32.mrf.mxu1 }
 0x20b   : > { %v1283_v53 = vadd.f32 %v1282_v16, %v1210_v13 }
 0x20c   : > { %v1284_v18 = vpop.f32.mrf.mxu1 }
 0x20d   : > { %v1285_v48 = vadd.f32 %v1284_v18, %v1212_v57  ;;  %v1222_v18 = vadd.f32 %v6215_v63, %v6193_v55 }
 0x20e   : > { %v1286_v25 = vpop.f32.mrf.mxu1 }
 0x210   : > { %v1288_v50 = vpop.f32.mrf.mxu1 }
 0x211   : > { %v6227_v15 = vadd.f32 %v1288_v50, %v1216_v4 }
 0x212   : > { %v1292_v12 = vpop.f32.mrf.mxu1 }
 0x213   : > { %v1335_v21 = vpop.f32.mrf.mxu0 }
 0x214   : > { %v1336_v34 = vadd.f32 %v1335_v21, %v1263_v33  ;;  %v1294_v50 = vpop.f32.mrf.mxu1 }
 0x215   : > { %v1337_v51 = vpop.f32.mrf.mxu0  ;;  %v1295_v42 = vadd.f32 %v1294_v50, %v1222_v18 }
 0x216   : > { %v6231_v61 = vmax.f32 %v1336_v34, 0.0  ;;  %v6233_v44 = vadd.f32 %v1337_v51, %v1265_v17  ;;  %v1224_v17 = vadd.f32 %v6219_v39, %v6201_v49  ;;  %v1293_v34 = vadd.f32 %v1292_v12, %v1220_v56 }
 0x217   : > { %v1339_v60 = vpop.f32.mrf.mxu0 }
 0x218   : > { %v8685_v37 = vmax.f32 %v6233_v44, 0.0  ;;  %v1340_v10 = vadd.f32 %v1339_v60, %v1267_v31 }
 0x219   : > { %v1341_v2 = vpop.f32.mrf.mxu0 }
 0x21a   : > { %v4758_v3 = vpack.i.bf16 %v8685_v37, %v6231_v61  ;;  %v6240_v45 = vmax.f32 %v1340_v10, 0.0  ;;  %v6242_v7 = vadd.f32 %v1341_v2, %v1269_v20  ;;  %v1214_v20 = vadd.f32 %v6203_v19, %v6195_v26  ;;  %v1296_v10 = vpop.f32.mrf.mxu1 }
 0x21b   : > { %v1345_v0 = vpop.f32.mrf.mxu0  ;;  %v1297_v40 = vadd.f32 %v1296_v10, %v1224_v17 }
 0x21c   : > { %v1346_v9 = vadd.f32 %v1345_v0, %v1273_v27  ;;  %4754 = vrot.lane.b32.xlu0 %v4758_v3, %s8768_s18  ;;  %v4763_v59 = vpack.i.bf16 %v6240_v45, %v6231_v61  ;;  %4759 = vrot.lane.b32.xlu1 %v4758_v3, %s8765_s17  ;;  %v1287_v16 = vadd.f32 %v1286_v25, %v1214_v20 }
 0x21d   : > { %v1347_v24 = vpop.f32.mrf.mxu0 }
 0x21e   : > { %v6251_v38 = vmax.f32 %v1346_v9, 0.0  ;;  %v6253_v1 = vadd.f32 %v1347_v24, %v1275_v43  ;;  %v6310_v24 = vpop.f32.mrf.mxu1 }
 0x21f   : > { %v1349_v30 = vpop.f32.mrf.mxu0 }
 0x220   : > { %8778 = vst [vmem:[#allocation2_spill] sm:$0xff] %v6253_v1  ;;  %v8684_v8 = vmax.f32 %v6253_v1, 0.0  ;;  %v1350_v6 = vadd.f32 %v1349_v30, %v1277_v54  ;;  %4764 = vrot.lane.b32.xlu0 %v4763_v59, %s8764_s30 }
 0x221   : > { %v1351_v35 = vpop.f32.mrf.mxu0 }
 0x222   : > { %v4773_v5 = vpack.i.bf16 %v8684_v8, %v6251_v38  ;;  %v6262_v52 = vmax.f32 %v1350_v6, 0.0  ;;  %v6264_v62 = vadd.f32 %v1351_v35, %v1279_v14 }
 0x223   : > { %v1355_v4 = vpop.f32.mrf.mxu0 }
 0x224   : > { %v1356_v58 = vadd.f32 %v1355_v4, %v1283_v53  ;;  %4769 = vrot.lane.b32.xlu0 %v4773_v5, %s8768_s18  ;;  %v4778_v19 = vpack.i.bf16 %v6262_v52, %v6251_v38  ;;  %4774 = vrot.lane.b32.xlu1 %v4773_v5, %s8765_s17 }
 0x225   : > { %v1357_v33 = vpop.f32.mrf.mxu0 }
 0x226   : > { %v6274_v14 = vmax.f32 %v1356_v58, 0.0  ;;  %v6276_v22 = vadd.f32 %v1357_v33, %v1285_v48 }
 0x227   : > { %v1359_v11 = vpop.f32.mrf.mxu0 }
 0x228   : > { %8779 = vst [vmem:[#allocation3_spill] sm:$0xff] %v6274_v14  ;;  %8780 = vst [vmem:[#allocation4_spill] sm:$0xff] %v6276_v22  ;;  %v8683_v25 = vmax.f32 %v6276_v22, 0.0  ;;  %v1360_v21 = vadd.f32 %v1359_v11, %v1287_v16  ;;  %4779 = vrot.lane.b32.xlu0 %v4778_v19, %s8764_s30 }
 0x229   : > { %v1361_v31 = vpop.f32.mrf.mxu0 }
 0x22a   : > { %v4788_v63 = vpack.i.bf16 %v8683_v25, %v6274_v14  ;;  %v6285_v51 = vmax.f32 %v1360_v21, 0.0  ;;  %v6288_v23 = vadd.f32 %v1361_v31, %v6227_v15 }
 0x22b   : > { %v1365_v60 = vpop.f32.mrf.mxu0 }
 0x22c   : > { %v1366_v39 = vadd.f32 %v1365_v60, %v1293_v34  ;;  %4784 = vrot.lane.b32.xlu0 %v4788_v63, %s8768_s18  ;;  %v4793_v27 = vpack.i.bf16 %v6285_v51, %v6274_v14  ;;  %4789 = vrot.lane.b32.xlu1 %v4788_v63, %s8765_s17 }
 0x22d   : > { %v1367_v2 = vpop.f32.mrf.mxu0 }
 0x22e   : > { %v6294_v43 = vmax.f32 %v1366_v39, 0.0  ;;  %v6296_v3 = vadd.f32 %v1367_v2, %v1295_v42 }
 0x22f   : > { %v1369_v0 = vpop.f32.mrf.mxu0 }
 0x230   : > { %8781 = vst [vmem:[#allocation5_spill] sm:$0xff] %v6294_v43  ;;  %8782 = vst [vmem:[#allocation6_spill] sm:$0xff] %v6296_v3  ;;  %v8682_v15 = vmax.f32 %v6296_v3, 0.0  ;;  %4794 = vrot.lane.b32.xlu0 %v4793_v27, %s8764_s30  ;;  %v1370_v13 = vadd.f32 %v1369_v0, %v1297_v40 }
 0x231   : > { %v6312_v20 = vpop.f32.mrf.mxu0 }
 0x232   : > { %v4803_v9 = vpack.i.bf16 %v8682_v15, %v6294_v43  ;;  %v6303_v54 = vmax.f32 %v1370_v13, 0.0 }
 0x234   : > { %4799 = vrot.lane.b32.xlu0 %v4803_v9, %s8768_s18  ;;  %4804 = vrot.lane.b32.xlu1 %v4803_v9, %s8765_s17  ;;  %v4808_v59 = vpack.i.bf16 %v6303_v54, %v6294_v43 }
 0x238   : > { %4809 = vrot.lane.b32.xlu0 %v4808_v59, %s8764_s30 }
 0x23e   : > { %v4519_v57 = vpop.f32.mrf.mxu1 }
 0x240   : > { %v4520_v30 = vpop.f32.mrf.mxu1 }
 0x241   : > { %v4521_v60 = vadd.f32 %v4520_v30, %v4519_v57 }
 0x242   : > { %v4522_v6 = vpop.f32.mrf.mxu1 }
 0x243   : > { %v1409_v0 = vadd.f32 %v4521_v60, %v6217_v36 }
 0x244   : > { %v4523_v53 = vpop.f32.mrf.mxu1 }
 0x245   : > { %v4524_v13 = vadd.f32 %v4523_v53, %v4522_v6 }
 0x246   : > { %v4525_v35 = vpop.f32.mrf.mxu1 }
 0x247   : > { %v4559_v48 = vpop.f32.mrf.mxu0  ;;  %v1412_v43 = vadd.f32 %v4524_v13, %v6205_v29 }
 0x248   : > { %v4526_v5 = vpop.f32.mrf.mxu1 }
 0x249   : > { %v4560_v12 = vpop.f32.mrf.mxu0  ;;  %v4527_v9 = vadd.f32 %v4526_v5, %v4525_v35 }
 0x24a   : > { %v4528_v56 = vpop.f32.mrf.mxu1  ;;  %v4561_v27 = vadd.f32 %v4560_v12, %v4559_v48 }
 0x24b   : > { %v4562_v4 = vpop.f32.mrf.mxu0  ;;  %v1417_v57 = vadd.f32 %v4527_v9, %v6212_v32  ;;  %v1573_v32 = vmax.f32 %v6242_v7, 0.0 }
 0x24c   : > { %v4529_v58 = vpop.f32.mrf.mxu1  ;;  %v1474_v8 = vadd.f32 %v4561_v27, %v1409_v0 }
 0x24d   : > { %v4563_v16 = vpop.f32.mrf.mxu0  ;;  %v4530_v37 = vadd.f32 %v4529_v58, %v4528_v56 }
 0x24e   : > { %v4531_v19 = vpop.f32.mrf.mxu1  ;;  %v4564_v15 = vadd.f32 %v4563_v16, %v4562_v4 }
 0x24f   : > { %v4565_v18 = vpop.f32.mrf.mxu0  ;;  %v1420_v6 = vadd.f32 %v4530_v37, %v6197_v41 }
 0x250   : > { %v4532_v33 = vpop.f32.mrf.mxu1  ;;  %v1477_v36 = vadd.f32 %v4564_v15, %v1412_v43 }
 0x251   : > { %v4566_v50 = vpop.f32.mrf.mxu0  ;;  %v4533_v53 = vadd.f32 %v4532_v33, %v4531_v19 }
 0x252   : > { %v4534_v11 = vpop.f32.mrf.mxu1  ;;  %v4567_v25 = vadd.f32 %v4566_v50, %v4565_v18 }
 0x253   : > { %v4568_v17 = vpop.f32.mrf.mxu0  ;;  %v1425_v41 = vadd.f32 %v4533_v53, %v6207_v46 }
 0x254   : > { %v4535_v21 = vpop.f32.mrf.mxu1  ;;  %v1482_v14 = vadd.f32 %v4567_v25, %v1417_v57 }
 0x255   : > { %v4569_v34 = vpop.f32.mrf.mxu0  ;;  %v4536_v37 = vadd.f32 %v4535_v21, %v4534_v11 }
 0x256   : > { %v4537_v31 = vpop.f32.mrf.mxu1  ;;  %v4570_v12 = vadd.f32 %v4569_v34, %v4568_v17 }
 0x257   : > { %v4571_v42 = vpop.f32.mrf.mxu0  ;;  %v1428_v46 = vadd.f32 %v4536_v37, %v6195_v26 }
 0x258   : > { %v4538_v63 = vpop.f32.mrf.mxu1 }
 0x259   : > { %v4572_v10 = vpop.f32.mrf.mxu0  ;;  %v4539_v19 = vadd.f32 %v4538_v63, %v4537_v31 }
 0x25a   : > { %v4540_v39 = vpop.f32.mrf.mxu1 }
 0x25b   : > { %v4574_v40 = vpop.f32.mrf.mxu0  ;;  %v1433_v31 = vadd.f32 %v4539_v19, %v6193_v55  ;;  %v1226_v55 = vadd.f32 %v6224_v47, %v6201_v49 }
 0x25c   : > { %v4541_v2 = vpop.f32.mrf.mxu1 }
 0x25d   : > { %v4575_v59 = vpop.f32.mrf.mxu0  ;;  %v4542_v27 = vadd.f32 %v4541_v2, %v4540_v39  ;;  %v1299_v47 = vadd.f32 %v6310_v24, %v1226_v55 }
 0x25e   : > { %v4688_v28 = vpop.f32.mrf.mxu1  ;;  %v4576_v50 = vadd.f32 %v4575_v59, %v4574_v40 }
 0x25f   : > { %v4577_v22 = vpop.f32.mrf.mxu0  ;;  %v1547_v5 = vadd.f32 %v4688_v28, %v1482_v14  ;;  %v1436_v59 = vadd.f32 %v4542_v27, %v6201_v49  ;;  %v6372_v53 = vadd.f32 %v6312_v20, %v1299_v47  ;;  %v8787_v47 = vmax.f32 %v6233_v44, 0.0 }
 0x260   : > { %v1538_v3 = vpop.f32.mrf.mxu1  ;;  %v1493_v40 = vadd.f32 %v4576_v50, %v1428_v46  ;;  %v361_v50 = vld [vmem:[%s8783_s0] sm:$0x7]  ;;  %s8999_s0 = smov 126  }
 0x261   : > { %v1539_v30 = vadd.f32 %v1538_v3, %v1474_v8  ;;  %v4578_v29 = vpop.f32.mrf.mxu0  ;;  %v4573_v8 = vadd.f32 %v4572_v10, %v4571_v42  ;;  %v1485_v3 = vadd.f32 %v4570_v12, %v1420_v6  ;;  %v6328_v14 = vmax.f32 %v1547_v5, 0.0 }
 0x262   : > { %v4689_v48 = vpop.f32.mrf.mxu1  ;;  %v4579_v11 = vadd.f32 %v4578_v29, %v4577_v22  ;;  %v1579_v10 = vmax.f32 %v6264_v62, 0.0  ;;  %v1585_v12 = vmax.f32 %v6288_v23, 0.0  ;;  %v1591_v5 = vmax.f32 %v6372_v53, 0.0 }
 0x263   : > { %v6317_v1 = vmax.f32 %v1539_v30, 0.0  ;;  %v1550_v25 = vadd.f32 %v4689_v48, %v1485_v3  ;;  %v4580_v18 = vpop.f32.mrf.mxu0  ;;  %v1490_v17 = vadd.f32 %v4573_v8, %v1425_v41  ;;  %v4843_v42 = vpack.i.bf16 %v6262_v52, %v6328_v14 }
 0x264   : > { %v1541_v35 = vpop.f32.mrf.mxu1  ;;  %v1498_v26 = vadd.f32 %v4579_v11, %v1433_v31 }
 0x265   : > { %v1542_v4 = vadd.f32 %v1541_v35, %v1477_v36  ;;  %v4813_v56 = vpack.i.bf16 %v6240_v45, %v6317_v1  ;;  %v6338_v21 = vmax.f32 %v1550_v25, 0.0  ;;  %v4581_v63 = vpop.f32.mrf.mxu0 }
 0x266   : > { %v4692_v58 = vpop.f32.mrf.mxu1  ;;  %v4582_v22 = vadd.f32 %v4581_v63, %v4580_v18 }
 0x267   : > { %v6323_v16 = vmax.f32 %v1542_v4, 0.0  ;;  %4814 = vrot.lane.b32.xlu1 %v4813_v56, %s8768_s18  ;;  %4819 = vrot.lane.b32.xlu0 %v4813_v56, %s8765_s17  ;;  %v4853_v9 = vpack.i.bf16 %v6338_v21, %v1579_v10  ;;  %v1563_v39 = vadd.f32 %v4692_v58, %v1498_v26  ;;  %v4848_v30 = vpack.i.bf16 %v6338_v21, %v6328_v14 }
 0x268   : > { %v1554_v28 = vpop.f32.mrf.mxu1  ;;  %v1501_v2 = vadd.f32 %v4582_v22, %v1436_v59 }
 0x269   : > { %v4823_v43 = vpack.i.bf16 %v6323_v16, %v6317_v1  ;;  %v4828_v15 = vpack.i.bf16 %v6323_v16, %v1573_v32  ;;  %v1555_v34 = vadd.f32 %v1554_v28, %v1490_v17  ;;  %v6366_v49 = vmax.f32 %v1563_v39, 0.0 }
 0x26a   : > { %v4693_v33 = vpop.f32.mrf.mxu1  ;;  %v1593_v28 = vlaneseq }
 0x26b   : > { %4824 = vrot.lane.b32.xlu1 %v4823_v43, %s8767_s27  ;;  %4829 = vrot.lane.b32.xlu0 %v4828_v15, %s8768_s18  ;;  %v6346_v0 = vmax.f32 %v1555_v34, 0.0  ;;  %v1566_v36 = vadd.f32 %v4693_v33, %v1501_v2  ;;  %v4893_v24 = vpack.i.bf16 %v6303_v54, %v6366_v49 }
 0x26c   : > { %v1557_v60 = vpop.f32.mrf.mxu1 }
 0x26d   : > { %v1558_v13 = vadd.f32 %v1557_v60, %v1493_v40  ;;  %v4868_v48 = vpack.i.bf16 %v6285_v51, %v6346_v0  ;;  %v6376_v35 = vmax.f32 %v1566_v36, 0.0 }
 0x26f   : > { %4834 = vrot.lane.b32.xlu1 %v4828_v15, %s8765_s17  ;;  %4844 = vrot.lane.b32.xlu0 %v4843_v42, %s8765_s17  ;;  %v6356_v57 = vmax.f32 %v1558_v13, 0.0  ;;  %v4903_v20 = vpack.i.bf16 %v6376_v35, %v1591_v5  ;;  %v4898_v56 = vpack.i.bf16 %v6376_v35, %v6366_v49  ;;  %v1594_v15 = vshrl.u32 %v1593_v28, 7 }
 0x271   : > { %v4878_v6 = vpack.i.bf16 %v6356_v57, %v1585_v12  ;;  %v4873_v4 = vpack.i.bf16 %v6356_v57, %v6346_v0  ;;  %v1599_v33 = vsub.s32 1, %v1594_v15  ;;  %v1603_v11 = vsub.s32 2, %v1594_v15 }
 0x272   : > { %v1595_v34 = vsub.s32 0, %v1594_v15 }
 0x273   : > { %4839 = vrot.lane.b32.xlu1 %v4843_v42, %s8768_s18  ;;  %4854 = vrot.lane.b32.xlu0 %v4853_v9, %s8768_s18  ;;  %v6419_v42 = vrot.slane %v361_v50, %v1599_v33  ;;  %v6421_v60 = vrot.slane %v361_v50, %v1603_v11 }
 0x274   : > { %v6423_v26 = vrot.slane %v361_v50, %v1595_v34 }
 0x275   : > { %8784 = vst [vmem:[#allocation7_spill] sm:$0xff] %v6419_v42  ;;  %8785 = vst [vmem:[#allocation8_spill] sm:$0xff] %v6421_v60  ;;  %vm8703_vm14 = vcmp.eq.s32.totalorder %v6419_v42, 2  ;;  %vm8701_vm12 = vcmp.eq.s32.totalorder %v6421_v60, 2  ;;  %vm8697_vm11 = vcmp.eq.s32.totalorder %v6421_v60, 1  ;;  %vm8699_vm9 = vcmp.eq.s32.totalorder %v6419_v42, 1 }
 0x276   : > { %8786 = vst [vmem:[#allocation9_spill] sm:$0xff] %v6423_v26  ;;  %vm8702_vm10 = vcmp.eq.s32.totalorder %v6423_v26, 2  ;;  %vm8700_vm7 = vcmp.eq.s32.totalorder %v6423_v26, 1 }
 0x277   : > { %4849 = vrot.lane.b32.xlu1 %v4848_v30, %s8767_s27  ;;  %4869 = vrot.lane.b32.xlu0 %v4868_v48, %s8765_s17 }
 0x27b   : > { %4859 = vrot.lane.b32.xlu1 %v4853_v9, %s8765_s17  ;;  %4879 = vrot.lane.b32.xlu0 %v4878_v6, %s8768_s18 }
 0x27f   : > { %4864 = vrot.lane.b32.xlu1 %v4868_v48, %s8768_s18  ;;  %4894 = vrot.lane.b32.xlu0 %v4893_v24, %s8765_s17 }
 0x283   : > { %4874 = vrot.lane.b32.xlu1 %v4873_v4, %s8767_s27  ;;  %4904 = vrot.lane.b32.xlu0 %v4903_v20, %s8768_s18 }
 0x287   : > { %4884 = vrot.lane.b32.xlu1 %v4878_v6, %s8765_s17 }
 0x28b   : > { %4889 = vrot.lane.b32.xlu1 %v4893_v24, %s8768_s18 }
 0x28e   : > { %v4755_v29 = vpop.permute.xlu0 %4754  ;;  %v4760_v37 = vpop.permute.xlu1 %4759 }
 0x28f   : > { %4899 = vrot.lane.b32.xlu1 %v4898_v56, %s8767_s27  ;;  %v4757_v31 = vunpack.i.h.bf16 %v4755_v29  ;;  %v4756_v63 = vunpack.i.l.bf16 %v4755_v29  ;;  %v4762_v22 = vunpack.i.h.bf16 %v4760_v37  ;;  %v4761_v13 = vunpack.i.l.bf16 %v4760_v37 }
 0x291   : > { %v1830_v9 = vsel %vm8705_vm13, %v4756_v63, %v4757_v31  ;;  %v1681_v6 = vsel %vm8704_vm15, %v4761_v13, %v4762_v22 }
 0x292   : > { %v6396_v58 = vpop.permute.xlu0 %4764  ;;  %v1879_v36 = vsel %vm8703_vm14, %v1830_v9, %v8787_v47 }
 0x293   : > { %4909 = vrot.lane.b32.xlu1 %v4903_v20, %s8765_s17  ;;  %v4766_v20 = vunpack.i.l.bf16 %v6396_v58  ;;  %v4767_v28 = vunpack.i.h.bf16 %v6396_v58 }
 0x296   : > { %v6398_v8 = vpop.permute.xlu0 %4769  ;;  %v6406_v43 = vpop.permute.xlu1 %4774 }
 0x297   : > { %v4771_v7 = vunpack.i.l.bf16 %v6398_v8 }
 0x29a   : > { %v6400_v3 = vpop.permute.xlu0 %4779 }
 0x29e   : > { %v6402_v41 = vpop.permute.xlu0 %4784  ;;  %v6410_v18 = vpop.permute.xlu1 %4789 }
 0x29f   : > { %v4786_v62 = vunpack.i.l.bf16 %v6402_v41 }
 0x2a2   : > { %v6404_v25 = vpop.permute.xlu0 %4794 }
 0x2a6   : > { %v6408_v19 = vpop.permute.xlu0 %4799  ;;  %v6415_v17 = vpop.permute.xlu1 %4804 }
 0x2a7   : > { %v4801_v23 = vunpack.i.l.bf16 %v6408_v19 }
 0x2aa   : > { %v6417_v46 = vpop.permute.xlu0 %4809 }
 0x2d9   : > { %v4815_v27 = vpop.permute.xlu1 %4814  ;;  %v4820_v40 = vpop.permute.xlu0 %4819 }
 0x2da   : > { %v4816_v55 = vunpack.i.l.bf16 %v4815_v27  ;;  %v4821_v59 = vunpack.i.l.bf16 %v4820_v40  ;;  %v4817_v15 = vunpack.i.h.bf16 %v4815_v27  ;;  %v4822_v11 = vunpack.i.h.bf16 %v4820_v40 }
 0x2dc   : > { %v1831_v56 = vsel %vm8705_vm13, %v4757_v31, %v4816_v55  ;;  %v1682_v29 = vsel %vm8704_vm15, %v4762_v22, %v4821_v59  ;;  %v1746_v34 = vsel %vm8698_vm8, %v4821_v59, %v4766_v20 }
 0x2dd   : > { %v4825_v39 = vpop.permute.xlu1 %4824  ;;  %v4830_v2 = vpop.permute.xlu0 %4829  ;;  %v1880_v31 = vsel %vm8701_vm12, %v1831_v56, %v6317_v1  ;;  %v4776_v56 = vunpack.i.l.bf16 %v6406_v43 }
 0x2de   : > { %v4826_v30 = vunpack.i.l.bf16 %v4825_v39  ;;  %v4832_v48 = vunpack.i.h.bf16 %v4830_v2  ;;  %v4827_v24 = vunpack.i.h.bf16 %v4825_v39  ;;  %v4831_v4 = vunpack.i.l.bf16 %v4830_v2 }
 0x2e0   : > { %v1870_v37 = vsel %vm8705_vm13, %v4826_v30, %v4756_v63  ;;  %v1833_v33 = vsel %vm8705_vm13, %v4831_v4, %v4832_v48  ;;  %v1871_v63 = vsel %vm8705_vm13, %v4827_v24, %v4817_v15  ;;  %v1832_v40 = vsel %vm8705_vm13, %v4817_v15, %v4831_v4 }
 0x2e1   : > { %v1878_v44 = vsel %vm8702_vm10, %v1870_v37, %v6231_v61  ;;  %v4835_v50 = vpop.permute.xlu1 %4834  ;;  %v6451_v58 = vpop.permute.xlu0 %4844  ;;  %v6459_v61 = vsel %vm8699_vm9, %v1682_v29, %v1879_v36  ;;  %v1883_v22 = vsel %vm8701_vm12, %v1833_v33, %v6323_v16  ;;  %v6476_v48 = vsel %vm8697_vm11, %v1746_v34, %v1880_v31 }
 0x2e2   : > { %v4837_v13 = vunpack.i.h.bf16 %v4835_v50  ;;  %v4836_v9 = vunpack.i.l.bf16 %v4835_v50  ;;  %v6455_v27 = vsel %vm8700_vm7, %v1681_v6, %v1878_v44  ;;  %v1881_v16 = vsel %vm8702_vm10, %v1871_v63, %v6240_v45 }
 0x2e3   : > { %v4913_v55 = vpack.i.bf16 %v6459_v61, %v6455_v27  ;;  %v1882_v47 = vsel %vm8703_vm14, %v1832_v40, %v1573_v32  ;;  %v4772_v4 = vunpack.i.h.bf16 %v6398_v8  ;;  %v4777_v32 = vunpack.i.h.bf16 %v6406_v43 }
 0x2e4   : > { %v1747_v1 = vsel %vm8698_vm8, %v4837_v13, %v4767_v28  ;;  %v1683_v59 = vsel %vm8704_vm15, %v4822_v11, %v4836_v9  ;;  %v1684_v39 = vsel %vm8704_vm15, %v4836_v9, %v4837_v13  ;;  %v4846_v37 = vunpack.i.l.bf16 %v6451_v58 }
 0x2e5   : > { %v6472_v2 = vsel %vm8697_vm11, %v1747_v1, %v1883_v22  ;;  %v4840_v30 = vpop.permute.xlu1 %4839  ;;  %4914 = vrot.lane.b32.xlu0 %v4913_v55, %s8762_s11  ;;  %v6490_v6 = vsel %vm8700_vm7, %v1683_v59, %v1881_v16  ;;  %v6494_v24 = vsel %vm8699_vm9, %v1684_v39, %v1882_v47  ;;  %v4855_v20 = vpop.permute.xlu0 %4854  ;;  %v1834_v11 = vsel %vm8705_vm13, %v4771_v7, %v4772_v4 }
 0x2e6   : > { %v4923_v36 = vpack.i.bf16 %v6472_v2, %v6476_v48  ;;  %v4841_v28 = vunpack.i.l.bf16 %v4840_v30  ;;  %v4928_v15 = vpack.i.bf16 %v6494_v24, %v6490_v6  ;;  %v4857_v44 = vunpack.i.h.bf16 %v4855_v20 }
 0x2e7   : > { %v4856_v33 = vunpack.i.l.bf16 %v4855_v20  ;;  %v4938_v8 = vpack.i.bf16 %v6472_v2, %v6494_v24  ;;  %v1685_v34 = vsel %vm8704_vm15, %v4776_v56, %v4777_v32  ;;  %v4782_v31 = vunpack.i.h.bf16 %v6400_v3  ;;  %v8788_v20 = vld [vmem:[#allocation2_spill] sm:$0xff] }
 0x2e8   : > { %4924 = vrot.lane.b32.xlu1 %v4923_v36, %s8761_s15  ;;  %v1686_v63 = vsel %vm8704_vm15, %v4777_v32, %v4846_v37  ;;  %v4842_v40 = vunpack.i.h.bf16 %v4840_v30  ;;  %v4933_v22 = vpack.i.bf16 %v6490_v6, %v6476_v48  ;;  %v1835_v1 = vsel %vm8705_vm13, %v4772_v4, %v4841_v28 }
 0x2e9   : > { %v4850_v45 = vpop.permute.xlu1 %4849  ;;  %4919 = vrot.lane.b32.xlu0 %v4913_v55, %s8708_s16  ;;  %v1837_v55 = vsel %vm8705_vm13, %v4856_v33, %v4857_v44  ;;  %v4948_v39 = vpack.i.bf16 %v6490_v6, %v6455_v27  ;;  %v4847_v32 = vunpack.i.h.bf16 %v6451_v58  ;;  %v6537_v56 = vpop.permute.xlu0 %4869 }
 0x2ea   : > { %v4851_v29 = vunpack.i.l.bf16 %v4850_v45  ;;  %v4852_v59 = vunpack.i.h.bf16 %v4850_v45  ;;  %v4781_v45 = vunpack.i.l.bf16 %v6400_v3  ;;  %v1889_v28 = vsel %vm8701_vm12, %v1837_v55, %v6338_v21 }
 0x2eb   : > { %v1836_v3 = vsel %vm8705_vm13, %v4842_v40, %v4856_v33 }
 0x2ec   : > { %v1872_v50 = vsel %vm8705_vm13, %v4851_v29, %v4771_v7  ;;  %4929 = vrot.lane.b32.xlu1 %v4928_v15, %s8762_s11  ;;  %v8789_v7 = vmax.f32 %v8788_v20, 0.0  ;;  %v1886_v29 = vsel %vm8701_vm12, %v1835_v1, %v6328_v14  ;;  %v1873_v58 = vsel %vm8705_vm13, %v4852_v59, %v4842_v40 }
 0x2ed   : > { %v4860_v43 = vpop.permute.xlu1 %4859  ;;  %v1884_v13 = vsel %vm8702_vm10, %v1872_v50, %v6251_v38  ;;  %4939 = vrot.lane.b32.xlu0 %v4938_v8, %s8708_s16  ;;  %v1748_v14 = vsel %vm8698_vm8, %v4846_v37, %v4781_v45  ;;  %v1887_v37 = vsel %vm8702_vm10, %v1873_v58, %v6262_v52  ;;  %v4787_v52 = vunpack.i.h.bf16 %v6402_v41 }
 0x2ee   : > { %v4862_v9 = vunpack.i.h.bf16 %v4860_v43  ;;  %v4861_v38 = vunpack.i.l.bf16 %v4860_v43  ;;  %v6529_v30 = vsel %vm8700_vm7, %v1685_v34, %v1884_v13  ;;  %v1885_v4 = vsel %vm8703_vm14, %v1834_v11, %v8789_v7  ;;  %v8790_v7 = vld [vmem:[#allocation3_spill] sm:$0xff] }
 0x2ef   : > { %v6548_v15 = vsel %vm8699_vm9, %v1686_v63, %v1885_v4  ;;  %v6565_v33 = vsel %vm8697_vm11, %v1748_v14, %v1886_v29  ;;  %v1888_v11 = vsel %vm8703_vm14, %v1836_v3, %v1579_v10  ;;  %v4792_v63 = vunpack.i.h.bf16 %v6410_v18 }
 0x2f0   : > { %v1749_v16 = vsel %vm8698_vm8, %v4862_v9, %v4782_v31  ;;  %4934 = vrot.lane.b32.xlu1 %v4933_v22, %s8708_s16  ;;  %v4953_v50 = vpack.i.bf16 %v6548_v15, %v6529_v30  ;;  %v1687_v8 = vsel %vm8704_vm15, %v4847_v32, %v4861_v38  ;;  %v1688_v21 = vsel %vm8704_vm15, %v4861_v38, %v4862_v9  ;;  %v4880_v9 = vpop.permute.xlu0 %4879 }
 0x2f1   : > { %v6525_v47 = vpop.permute.xlu1 %4864  ;;  %4949 = vrot.lane.b32.xlu0 %v4948_v39, %s8706_s29  ;;  %v6554_v44 = vsel %vm8697_vm11, %v1749_v16, %v1889_v28  ;;  %v6578_v13 = vsel %vm8700_vm7, %v1687_v8, %v1887_v37  ;;  %v6582_v31 = vsel %vm8699_vm9, %v1688_v21, %v1888_v11  ;;  %v4791_v40 = vunpack.i.l.bf16 %v6410_v18 }
 0x2f2   : > { %v4871_v22 = vunpack.i.l.bf16 %v6537_v56  ;;  %v4882_v1 = vunpack.i.h.bf16 %v4880_v9  ;;  %v4881_v55 = vunpack.i.l.bf16 %v4880_v9  ;;  %v4968_v39 = vpack.i.bf16 %v6582_v31, %v6578_v13 }
 0x2f3   : > { %v4866_v38 = vunpack.i.l.bf16 %v6525_v47  ;;  %v4978_v41 = vpack.i.bf16 %v6554_v44, %v6582_v31  ;;  %v1838_v18 = vsel %vm8705_vm13, %v4786_v62, %v4787_v52  ;;  %v1689_v20 = vsel %vm8704_vm15, %v4791_v40, %v4792_v63 }
 0x2f4   : > { %4944 = vrot.lane.b32.xlu1 %v4923_v36, %s8762_s11  ;;  %v4963_v36 = vpack.i.bf16 %v6554_v44, %v6565_v33  ;;  %v4797_v32 = vunpack.i.h.bf16 %v6404_v25  ;;  %v1690_v29 = vsel %vm8704_vm15, %v4792_v63, %v4871_v22  ;;  %v1841_v28 = vsel %vm8705_vm13, %v4881_v55, %v4882_v1 }
 0x2f5   : > { %v4875_v43 = vpop.permute.xlu1 %4874  ;;  %4954 = vrot.lane.b32.xlu0 %v4953_v50, %s8762_s11  ;;  %v4973_v3 = vpack.i.bf16 %v6578_v13, %v6565_v33  ;;  %v4867_v58 = vunpack.i.h.bf16 %v6525_v47  ;;  %v4988_v8 = vpack.i.bf16 %v6578_v13, %v6529_v30 }
 0x2f6   : > { %v4876_v34 = vunpack.i.l.bf16 %v4875_v43  ;;  %v4877_v14 = vunpack.i.h.bf16 %v4875_v43  ;;  %v4872_v43 = vunpack.i.h.bf16 %v6537_v56 }
 0x2f8   : > { %4964 = vrot.lane.b32.xlu1 %v4963_v36, %s8761_s15  ;;  %v1874_v59 = vsel %vm8705_vm13, %v4876_v34, %v4786_v62  ;;  %v8791_v34 = vld [vmem:[#allocation4_spill] sm:$0xff]  ;;  %v4796_v62 = vunpack.i.l.bf16 %v6404_v25  ;;  %v1840_v25 = vsel %vm8705_vm13, %v4867_v58, %v4881_v55  ;;  %v1875_v56 = vsel %vm8705_vm13, %v4877_v14, %v4867_v58 }
 0x2f9   : > { %v4885_v10 = vpop.permute.xlu1 %4884  ;;  %4959 = vrot.lane.b32.xlu0 %v4953_v50, %s8708_s16  ;;  %v1890_v4 = vsel %vm8702_vm10, %v1874_v59, %v8790_v7  ;;  %v1839_v50 = vsel %vm8705_vm13, %v4787_v52, %v4866_v38  ;;  %v8792_v9 = vmax.f32 %v8791_v34, 0.0  ;;  %v6627_v52 = vpop.permute.xlu0 %4894 }
 0x2fa   : > { %v4887_v16 = vunpack.i.h.bf16 %v4885_v10  ;;  %v4886_v21 = vunpack.i.l.bf16 %v4885_v10  ;;  %v6619_v37 = vsel %vm8700_vm7, %v1689_v20, %v1890_v4  ;;  %v1895_v10 = vsel %vm8701_vm12, %v1841_v28, %v6356_v57 }
 0x2fb   : > { %v1891_v47 = vsel %vm8703_vm14, %v1838_v18, %v8792_v9  ;;  %v1892_v63 = vsel %vm8701_vm12, %v1839_v50, %v6346_v0  ;;  %v4806_v4 = vunpack.i.l.bf16 %v6415_v17  ;;  %v4812_v9 = vunpack.i.h.bf16 %v6417_v46 }
 0x2fc   : > { %4969 = vrot.lane.b32.xlu1 %v4968_v39, %s8762_s11  ;;  %v1751_v11 = vsel %vm8698_vm8, %v4887_v16, %v4797_v32  ;;  %v6638_v40 = vsel %vm8699_vm9, %v1690_v29, %v1891_v47  ;;  %v1750_v39 = vsel %vm8698_vm8, %v4871_v22, %v4796_v62  ;;  %v1691_v0 = vsel %vm8704_vm15, %v4872_v43, %v4886_v21 }
 0x2fd   : > { %v6603_v45 = vpop.permute.xlu1 %4889  ;;  %4979 = vrot.lane.b32.xlu0 %v4978_v41, %s8708_s16  ;;  %v6644_v1 = vsel %vm8697_vm11, %v1751_v11, %v1895_v10  ;;  %v4993_v57 = vpack.i.bf16 %v6638_v40, %v6619_v37  ;;  %v1692_v38 = vsel %vm8704_vm15, %v4886_v21, %v4887_v16  ;;  %v6655_v55 = vsel %vm8697_vm11, %v1750_v39, %v1892_v63  ;;  %v8793_v11 = vld [vmem:[#allocation5_spill] sm:$0xff] }
 0x2fe   : > { %v1894_v41 = vsel %vm8703_vm14, %v1840_v25, %v1585_v12  ;;  %v1893_v22 = vsel %vm8702_vm10, %v1875_v56, %v6285_v51  ;;  %v5003_v16 = vpack.i.bf16 %v6644_v1, %v6655_v55  ;;  %v4802_v12 = vunpack.i.h.bf16 %v6408_v19 }
 0x2ff   : > { %v6668_v20 = vsel %vm8700_vm7, %v1691_v0, %v1893_v22  ;;  %v6672_v7 = vsel %vm8699_vm9, %v1692_v38, %v1894_v41  ;;  %v4807_v51 = vunpack.i.h.bf16 %v6415_v17  ;;  %v4896_v32 = vunpack.i.l.bf16 %v6627_v52  ;;  %v8794_v38 = vld [vmem:[#allocation6_spill] sm:$0xff] }
 0x300   : > { %4974 = vrot.lane.b32.xlu1 %v4973_v3, %s8708_s16  ;;  %v5008_v50 = vpack.i.bf16 %v6672_v7, %v6668_v20  ;;  %v4891_v14 = vunpack.i.l.bf16 %v6603_v45  ;;  %v5018_v19 = vpack.i.bf16 %v6644_v1, %v6672_v7  ;;  %v1842_v17 = vsel %vm8705_vm13, %v4801_v23, %v4802_v12 }
 0x301   : > { %4989 = vrot.lane.b32.xlu0 %v4988_v8, %s8706_s29  ;;  %v4900_v59 = vpop.permute.xlu1 %4899  ;;  %v1693_v21 = vsel %vm8704_vm15, %v4806_v4, %v4807_v51  ;;  %v1694_v47 = vsel %vm8704_vm15, %v4807_v51, %v4896_v32  ;;  %v5013_v43 = vpack.i.bf16 %v6668_v20, %v6655_v55  ;;  %v4892_v10 = vunpack.i.h.bf16 %v6603_v45 }
 0x302   : > { %v4901_v18 = vunpack.i.l.bf16 %v4900_v59  ;;  %v1843_v63 = vsel %vm8705_vm13, %v4802_v12, %v4891_v14  ;;  %v4902_v25 = vunpack.i.h.bf16 %v4900_v59  ;;  %v5028_v56 = vpack.i.bf16 %v6668_v20, %v6619_v37 }
 0x303   : > { %v8795_v41 = vmax.f32 %v8794_v38, 0.0  ;;  %v4811_v22 = vunpack.i.l.bf16 %v6417_v46  ;;  %v4897_v59 = vunpack.i.h.bf16 %v6627_v52 }
 0x304   : > { %4984 = vrot.lane.b32.xlu1 %v4963_v36, %s8762_s11  ;;  %v4905_v36 = vpop.permute.xlu0 %4904  ;;  %v1876_v58 = vsel %vm8705_vm13, %v4901_v18, %v4801_v23  ;;  %v1877_v46 = vsel %vm8705_vm13, %v4902_v25, %v4892_v10 }
 0x305   : > { %4994 = vrot.lane.b32.xlu0 %v4993_v57, %s8762_s11  ;;  %v4910_v29 = vpop.permute.xlu1 %4909  ;;  %v4907_v28 = vunpack.i.h.bf16 %v4905_v36  ;;  %v4906_v3 = vunpack.i.l.bf16 %v4905_v36  ;;  %v1896_v34 = vsel %vm8702_vm10, %v1876_v58, %v8793_v11  ;;  %v1897_v45 = vsel %vm8703_vm14, %v1842_v17, %v8795_v41 }
 0x306   : > { %v4912_v8 = vunpack.i.h.bf16 %v4910_v29  ;;  %v6707_v0 = vsel %vm8700_vm7, %v1693_v21, %v1896_v34  ;;  %v1898_v36 = vsel %vm8701_vm12, %v1843_v63, %v6366_v49  ;;  %v6724_v23 = vsel %vm8699_vm9, %v1694_v47, %v1897_v45 }
 0x307   : > { %v1845_v62 = vsel %vm8705_vm13, %v4906_v3, %v4907_v28  ;;  %v1844_v12 = vsel %vm8705_vm13, %v4892_v10, %v4906_v3  ;;  %v5033_v51 = vpack.i.bf16 %v6724_v23, %v6707_v0  ;;  %vm8755_vm13 = vcmp.eq.s32.totalorder %v6421_v60, 3 }
 0x308   : > { %5004 = vrot.lane.b32.xlu1 %v5003_v16, %s8761_s15  ;;  %v1753_v39 = vsel %vm8698_vm8, %v4912_v8, %v4812_v9  ;;  %v1901_v18 = vsel %vm8701_vm12, %v1845_v62, %v6376_v35  ;;  %v1752_v35 = vsel %vm8698_vm8, %v4896_v32, %v4811_v22  ;;  %v1900_v28 = vsel %vm8703_vm14, %v1844_v12, %v1591_v5 }
 0x309   : > { %4999 = vrot.lane.b32.xlu0 %v4993_v57, %s8708_s16  ;;  %v4911_v57 = vunpack.i.l.bf16 %v4910_v29  ;;  %v6730_v52 = vsel %vm8697_vm11, %v1753_v39, %v1901_v18  ;;  %v6741_v29 = vsel %vm8697_vm11, %v1752_v35, %v1898_v36  ;;  %v1899_v32 = vsel %vm8702_vm10, %v1877_v46, %v6303_v54 }
 0x30a   : > { %v5043_v3 = vpack.i.bf16 %v6730_v52, %v6741_v29  ;;  %vm2150_vm11 = vcmask 293888   ;;  %vm2075_vm8 = vcmp.eq.s32.totalorder %v6423_v26, 4  ;;  %vm8772_vm12 = vcmp.eq.s32.totalorder %v6423_v26, 3 }
 0x30b   : > { %v1695_v4 = vsel %vm8704_vm15, %v4897_v59, %v4911_v57  ;;  %v1696_v49 = vsel %vm8704_vm15, %v4911_v57, %v4912_v8  ;;  %vm1927_vm10 = vcmp.eq.s32.totalorder %v6419_v42, 3  ;;  %vm2066_vm14 = vcmask 261120  }
 0x30c   : > { %5009 = vrot.lane.b32.xlu1 %v5008_v50, %s8762_s11  ;;  %v6758_v58 = vsel %vm8699_vm9, %v1696_v49, %v1900_v28  ;;  %vm2001_vm9 = vcmask 752640   ;;  %vm2077_vm15 = vcmp.eq.s32.totalorder %v6421_v60, 4 }
 0x30d   : > { %5019 = vrot.lane.b32.xlu0 %v5018_v19, %s8708_s16  ;;  %v5058_v54 = vpack.i.bf16 %v6730_v52, %v6758_v58 }
 0x310   : > { %5014 = vrot.lane.b32.xlu1 %v5013_v43, %s8708_s16 }
 0x311   : > { %5029 = vrot.lane.b32.xlu0 %v5028_v56, %s8706_s29 }
 0x314   : > { %5024 = vrot.lane.b32.xlu1 %v5003_v16, %s8762_s11  ;;  %v6754_v16 = vsel %vm8700_vm7, %v1695_v4, %v1899_v32  ;;  %vm2076_vm7 = vcmp.eq.s32.totalorder %v6419_v42, 4 }
 0x315   : > { %5034 = vrot.lane.b32.xlu0 %v5033_v51, %s8762_s11  ;;  %v5048_v53 = vpack.i.bf16 %v6758_v58, %v6754_v16  ;;  %v5053_v5 = vpack.i.bf16 %v6754_v16, %v6741_v29  ;;  %v5068_v50 = vpack.i.bf16 %v6754_v16, %v6707_v0 }
 0x318   : > { %5044 = vrot.lane.b32.xlu1 %v5043_v3, %s8761_s15 }
 0x319   : > { %5039 = vrot.lane.b32.xlu0 %v5033_v51, %s8708_s16 }
 0x31c   : > { %5049 = vrot.lane.b32.xlu1 %v5048_v53, %s8762_s11 }
 0x31d   : > { %5059 = vrot.lane.b32.xlu0 %v5058_v54, %s8708_s16 }
 0x320   : > { %5054 = vrot.lane.b32.xlu1 %v5053_v5, %s8708_s16  ;;  %s8800_s16 = smov 109  }
 0x321   : > { %5069 = vrot.lane.b32.xlu0 %v5068_v50, %s8706_s29  ;;  %s8798_s29 = smov 77  }
 0x324   : > { %5064 = vrot.lane.b32.xlu1 %v5043_v3, %s8762_s11 }
 0x357   : > { %v4915_v14 = vpop.permute.xlu0 %4914 }
 0x358   : > { %v4916_v21 = vunpack.i.l.bf16 %v4915_v14  ;;  %v4917_v11 = vunpack.i.h.bf16 %v4915_v14 }
 0x35a   : > { %v4925_v19 = vpop.permute.xlu1 %4924  ;;  %v2151_v39 = vsel %vm2150_vm11, %v4916_v21, %v4917_v11 }
 0x35b   : > { %v4926_v8 = vunpack.i.l.bf16 %v4925_v19  ;;  %v4920_v17 = vpop.permute.xlu0 %4919  ;;  %v4927_v25 = vunpack.i.h.bf16 %v4925_v19 }
 0x35c   : > { %v4922_v34 = vunpack.i.h.bf16 %v4920_v17  ;;  %v4921_v9 = vunpack.i.l.bf16 %v4920_v17 }
 0x35d   : > { %v2191_v47 = vsel %vm2150_vm11, %v4926_v8, %v4916_v21 }
 0x35e   : > { %v4930_v62 = vpop.permute.xlu1 %4929  ;;  %v2199_v38 = vsel %vm2075_vm8, %v2191_v47, %v6455_v27  ;;  %v2002_v41 = vsel %vm2001_vm9, %v4921_v9, %v4922_v34  ;;  %v2200_v27 = vsel %vm2076_vm7, %v2151_v39, %v6459_v61 }
 0x35f   : > { %v4932_v43 = vunpack.i.h.bf16 %v4930_v62  ;;  %v4931_v10 = vunpack.i.l.bf16 %v4930_v62  ;;  %v4940_v63 = vpop.permute.xlu0 %4939  ;;  %v2223_v35 = vsel %vm8772_vm12, %v2002_v41, %v2199_v38 }
 0x360   : > { %v4942_v56 = vunpack.i.h.bf16 %v4940_v63  ;;  %v4941_v57 = vunpack.i.l.bf16 %v4940_v63 }
 0x361   : > { %v2153_v45 = vsel %vm2150_vm11, %v4931_v10, %v4932_v43  ;;  %v2192_v22 = vsel %vm2150_vm11, %v4927_v25, %v4931_v10 }
 0x362   : > { %v2203_v59 = vsel %vm2076_vm7, %v2153_v45, %v6494_v24  ;;  %v2005_v18 = vsel %vm2001_vm9, %v4941_v57, %v4942_v56  ;;  %v4935_v36 = vpop.permute.xlu1 %4934  ;;  %v2202_v24 = vsel %vm2075_vm8, %v2192_v22, %v6490_v6 }
 0x363   : > { %v4937_v12 = vunpack.i.h.bf16 %v4935_v36  ;;  %v4936_v46 = vunpack.i.l.bf16 %v4935_v36  ;;  %v4950_v51 = vpop.permute.xlu0 %4949  ;;  %v2227_v4 = vsel %vm1927_vm10, %v2005_v18, %v2203_v59 }
 0x364   : > { %v4952_v3 = vunpack.i.h.bf16 %v4950_v51  ;;  %v4951_v53 = vunpack.i.l.bf16 %v4950_v51 }
 0x365   : > { %v2003_v49 = vsel %vm2001_vm9, %v4922_v34, %v4936_v46  ;;  %v2004_v28 = vsel %vm2001_vm9, %v4937_v12, %v4941_v57 }
 0x366   : > { %v2224_v61 = vsel %vm1927_vm10, %v2003_v49, %v2200_v27  ;;  %v2226_v32 = vsel %vm8772_vm12, %v2004_v28, %v2202_v24  ;;  %v4945_v54 = vpop.permute.xlu1 %4944  ;;  %v2067_v17 = vsel %vm2066_vm14, %v4936_v46, %v4951_v53  ;;  %v2068_v21 = vsel %vm2066_vm14, %v4942_v56, %v4952_v3 }
 0x367   : > { %v6808_v5 = vpack.c.bf16 %v2226_v32, %v2223_v35  ;;  %v6810_v50 = vpack.c.bf16 %v2227_v4, %v2224_v61  ;;  %v4947_v6 = vunpack.i.h.bf16 %v4945_v54  ;;  %v4946_v14 = vunpack.i.l.bf16 %v4945_v54 }
 0x369   : > { %v2152_v19 = vsel %vm2150_vm11, %v4917_v11, %v4946_v14  ;;  %v2154_v8 = vsel %vm2150_vm11, %v4932_v43, %v4947_v6  ;;  %2343 = vrot.lane.b32.xlu0 %v6808_v5, %s8742_s20  ;;  %2345 = vrot.lane.b32.xlu1 %v6810_v50, %s8742_s20 }
 0x36a   : > { %v2201_v34 = vsel %vm2077_vm15, %v2152_v19, %v6476_v48  ;;  %v2204_v11 = vsel %vm2077_vm15, %v2154_v8, %v6472_v2  ;;  %v4965_v43 = vpop.permute.xlu1 %4964  ;;  %v4955_v48 = vpop.permute.xlu0 %4954 }
 0x36b   : > { %v2225_v9 = vsel %vm8755_vm13, %v2067_v17, %v2201_v34  ;;  %v2228_v47 = vsel %vm8755_vm13, %v2068_v21, %v2204_v11  ;;  %v4966_v57 = vunpack.i.l.bf16 %v4965_v43  ;;  %v4956_v38 = vunpack.i.l.bf16 %v4955_v48 }
 0x36c   : > { %v6831_v62 = vpack.c.bf16 %v2228_v47, %v2225_v9  ;;  %v4967_v41 = vunpack.i.h.bf16 %v4965_v43  ;;  %v4957_v46 = vunpack.i.h.bf16 %v4955_v48 }
 0x36d   : > { %2529 = vrot.lane.b32.xlu1 %v6810_v50, %s8710_s23  ;;  %v2193_v51 = vsel %vm2150_vm11, %v4966_v57, %v4956_v38 }
 0x36e   : > { %8796 = vst [vmem:[#allocation2_spill] sm:$0xff] %v6831_v62  ;;  %2335 = vrot.lane.b32.xlu0 %v6831_v62, %s8716_s19  ;;  %v4970_v2 = vpop.permute.xlu1 %4969  ;;  %v4960_v10 = vpop.permute.xlu0 %4959  ;;  %v2205_v3 = vsel %vm2075_vm8, %v2193_v51, %v6529_v30  ;;  %v2155_v14 = vsel %vm2150_vm11, %v4956_v38, %v4957_v46 }
 0x36f   : > { %v4971_v39 = vunpack.i.l.bf16 %v4970_v2  ;;  %v4962_v22 = vunpack.i.h.bf16 %v4960_v10  ;;  %v4961_v59 = vunpack.i.l.bf16 %v4960_v10  ;;  %v4972_v27 = vunpack.i.h.bf16 %v4970_v2 }
 0x370   : > { %v2206_v11 = vsel %vm2076_vm7, %v2155_v14, %v6548_v15 }
 0x371   : > { %2527 = vrot.lane.b32.xlu1 %v6808_v5, %s8710_s23  ;;  %v2194_v35 = vsel %vm2150_vm11, %v4967_v41, %v4971_v39  ;;  %v2006_v49 = vsel %vm2001_vm9, %v4961_v59, %v4962_v22  ;;  %v2157_v17 = vsel %vm2150_vm11, %v4971_v39, %v4972_v27 }
 0x372   : > { %2531 = vrot.lane.b32.xlu0 %v6831_v62, %s8710_s23  ;;  %v4975_v63 = vpop.permute.xlu1 %4974  ;;  %v4980_v25 = vpop.permute.xlu0 %4979  ;;  %v2208_v53 = vsel %vm2075_vm8, %v2194_v35, %v6578_v13  ;;  %v2229_v13 = vsel %vm8772_vm12, %v2006_v49, %v2205_v3  ;;  %v2209_v47 = vsel %vm2076_vm7, %v2157_v17, %v6582_v31 }
 0x373   : > { %v4977_v45 = vunpack.i.h.bf16 %v4975_v63  ;;  %v4981_v12 = vunpack.i.l.bf16 %v4980_v25  ;;  %v4976_v28 = vunpack.i.l.bf16 %v4975_v63  ;;  %v4982_v19 = vunpack.i.h.bf16 %v4980_v25 }
 0x375   : > { %2281 = vrot.lane.b32.xlu1 %v6810_v50, %s8740_s21  ;;  %v2008_v4 = vsel %vm2001_vm9, %v4977_v45, %v4981_v12  ;;  %v2007_v34 = vsel %vm2001_vm9, %v4962_v22, %v4976_v28  ;;  %v2009_v43 = vsel %vm2001_vm9, %v4981_v12, %v4982_v19 }
 0x376   : > { %2279 = vrot.lane.b32.xlu0 %v6808_v5, %s8740_s21  ;;  %v4985_v56 = vpop.permute.xlu1 %4984  ;;  %v4990_v24 = vpop.permute.xlu0 %4989  ;;  %v2232_v8 = vsel %vm8772_vm12, %v2008_v4, %v2208_v53  ;;  %v2230_v15 = vsel %vm1927_vm10, %v2007_v34, %v2206_v11  ;;  %v2233_v31 = vsel %vm1927_vm10, %v2009_v43, %v2209_v47 }
 0x377   : > { %v4987_v18 = vunpack.i.h.bf16 %v4985_v56  ;;  %v4986_v36 = vunpack.i.l.bf16 %v4985_v56  ;;  %v4992_v54 = vunpack.i.h.bf16 %v4990_v24  ;;  %v4991_v6 = vunpack.i.l.bf16 %v4990_v24 }
 0x378   : > { %v6915_v63 = vpack.c.bf16 %v2233_v31, %v2230_v15 }
 0x379   : > { %2473 = vrot.lane.b32.xlu1 %v6810_v50, %s8770_s24  ;;  %v2156_v61 = vsel %vm2150_vm11, %v4957_v46, %v4986_v36  ;;  %v2158_v32 = vsel %vm2150_vm11, %v4972_v27, %v4987_v18  ;;  %v2069_v9 = vsel %vm2066_vm14, %v4976_v28, %v4991_v6 }
 0x37a   : > { %2263 = vrot.lane.b32.xlu0 %v6831_v62, %s8712_s22  ;;  %v2207_v21 = vsel %vm2077_vm15, %v2156_v61, %v6565_v33  ;;  %v2210_v30 = vsel %vm2077_vm15, %v2158_v32, %v6554_v44  ;;  %v6893_v33 = vpack.c.bf16 %v2232_v8, %v2229_v13  ;;  %v2070_v44 = vsel %vm2066_vm14, %v4982_v19, %v4992_v54  ;;  %v5005_v25 = vpop.permute.xlu1 %5004  ;;  %v4995_v56 = vpop.permute.xlu0 %4994 }
 0x37b   : > { %v2231_v48 = vsel %vm8755_vm13, %v2069_v9, %v2207_v21  ;;  %v2234_v2 = vsel %vm8755_vm13, %v2070_v44, %v2210_v30  ;;  %v5006_v45 = vunpack.i.l.bf16 %v5005_v25  ;;  %v4997_v59 = vunpack.i.h.bf16 %v4995_v56 }
 0x37c   : > { %v6913_v10 = vpack.c.bf16 %v2234_v2, %v2231_v48  ;;  %v4996_v36 = vunpack.i.l.bf16 %v4995_v56  ;;  %v5007_v27 = vunpack.i.h.bf16 %v5005_v25 }
 0x37d   : > { %2657 = vrot.lane.b32.xlu1 %v6810_v50, %s8714_s28 }
 0x37e   : > { %2471 = vrot.lane.b32.xlu0 %v6808_v5, %s8770_s24  ;;  %8799 = vst [vmem:[#allocation3_spill] sm:$0xff] %v6913_v10  ;;  %v5010_v57 = vpop.permute.xlu1 %5009  ;;  %v5000_v39 = vpop.permute.xlu0 %4999  ;;  %v2195_v4 = vsel %vm2150_vm11, %v5006_v45, %v4996_v36  ;;  %v2159_v53 = vsel %vm2150_vm11, %v4996_v36, %v4997_v59 }
 0x37f   : > { %v5011_v18 = vunpack.i.l.bf16 %v5010_v57  ;;  %v5002_v12 = vunpack.i.h.bf16 %v5000_v39  ;;  %v5001_v46 = vunpack.i.l.bf16 %v5000_v39  ;;  %v5012_v49 = vunpack.i.h.bf16 %v5010_v57 }
 0x380   : > { %v2211_v14 = vsel %vm2075_vm8, %v2195_v4, %v6619_v37 }
 0x381   : > { %2655 = vrot.lane.b32.xlu1 %v6808_v5, %s8714_s28  ;;  %v2196_v61 = vsel %vm2150_vm11, %v5007_v27, %v5011_v18  ;;  %v2010_v54 = vsel %vm2001_vm9, %v5001_v46, %v5002_v12  ;;  %v2161_v21 = vsel %vm2150_vm11, %v5011_v18, %v5012_v49 }
 0x382   : > { %2463 = vrot.lane.b32.xlu0 %v6831_v62, %s8746_s25  ;;  %v5015_v38 = vpop.permute.xlu1 %5014  ;;  %v5020_v41 = vpop.permute.xlu0 %5019  ;;  %v2214_v30 = vsel %vm2075_vm8, %v2196_v61, %v6668_v20  ;;  %v2212_v20 = vsel %vm2076_vm7, %v2159_v53, %v6638_v40  ;;  %v2235_v47 = vsel %vm8772_vm12, %v2010_v54, %v2211_v14  ;;  %v2215_v43 = vsel %vm2076_vm7, %v2161_v21, %v6672_v7 }
 0x383   : > { %v5017_v51 = vunpack.i.h.bf16 %v5015_v38  ;;  %v5021_v28 = vunpack.i.l.bf16 %v5020_v41  ;;  %v5016_v32 = vunpack.i.l.bf16 %v5015_v38  ;;  %v5022_v19 = vunpack.i.h.bf16 %v5020_v41 }
 0x385   : > { %2409 = vrot.lane.b32.xlu1 %v6810_v50, %s8748_s26  ;;  %v2012_v6 = vsel %vm2001_vm9, %v5017_v51, %v5021_v28  ;;  %v2011_v11 = vsel %vm2001_vm9, %v5002_v12, %v5016_v32 }
 0x386   : > { %2659 = vrot.lane.b32.xlu0 %v6831_v62, %s8714_s28  ;;  %v5025_v22 = vpop.permute.xlu1 %5024  ;;  %v5030_v3 = vpop.permute.xlu0 %5029  ;;  %v2238_v9 = vsel %vm8772_vm12, %v2012_v6, %v2214_v30  ;;  %v2236_v48 = vsel %vm1927_vm10, %v2011_v11, %v2212_v20 }
 0x387   : > { %v5027_v35 = vunpack.i.h.bf16 %v5025_v22  ;;  %v5026_v24 = vunpack.i.l.bf16 %v5025_v22  ;;  %v5032_v13 = vunpack.i.h.bf16 %v5030_v3  ;;  %v5031_v34 = vunpack.i.l.bf16 %v5030_v3 }
 0x389   : > { %2593 = vrot.lane.b32.xlu1 %v6810_v50, %s8797_s12  ;;  %v2160_v8 = vsel %vm2150_vm11, %v4997_v59, %v5026_v24  ;;  %v2162_v17 = vsel %vm2150_vm11, %v5012_v49, %v5027_v35  ;;  %v2071_v2 = vsel %vm2066_vm14, %v5016_v32, %v5031_v34  ;;  %v2072_v15 = vsel %vm2066_vm14, %v5022_v19, %v5032_v13 }
 0x38a   : > { %2407 = vrot.lane.b32.xlu0 %v6808_v5, %s8748_s26  ;;  %v2213_v37 = vsel %vm2077_vm15, %v2160_v8, %v6655_v55  ;;  %v2216_v44 = vsel %vm2077_vm15, %v2162_v17, %v6644_v1  ;;  %v2013_v55 = vsel %vm2001_vm9, %v5021_v28, %v5022_v19  ;;  %v6995_v1 = vpack.c.bf16 %v2238_v9, %v2235_v47  ;;  %v5035_v57 = vpop.permute.xlu0 %5034  ;;  %v5045_v39 = vpop.permute.xlu1 %5044 }
 0x38b   : > { %v2237_v40 = vsel %vm8755_vm13, %v2071_v2, %v2213_v37  ;;  %v2240_v31 = vsel %vm8755_vm13, %v2072_v15, %v2216_v44  ;;  %v2239_v7 = vsel %vm1927_vm10, %v2013_v55, %v2215_v43  ;;  %v5046_v51 = vunpack.i.l.bf16 %v5045_v39 }
 0x38c   : > { %v7009_v25 = vpack.c.bf16 %v2239_v7, %v2236_v48  ;;  %v7011_v56 = vpack.c.bf16 %v2240_v31, %v2237_v40  ;;  %v5036_v24 = vunpack.i.l.bf16 %v5035_v57  ;;  %v5047_v4 = vunpack.i.h.bf16 %v5045_v39 }
 0x38d   : > { %2349 = vrot.lane.b32.xlu1 %v6893_v33, %s8742_s20  ;;  %v5037_v6 = vunpack.i.h.bf16 %v5035_v57 }
 0x38e   : > { %2399 = vrot.lane.b32.xlu0 %v6831_v62, %s8798_s29  ;;  %8801 = vst [vmem:[#allocation4_spill] sm:$0xff] %v7011_v56  ;;  %v5040_v38 = vpop.permute.xlu0 %5039  ;;  %v5050_v41 = vpop.permute.xlu1 %5049  ;;  %v2197_v14 = vsel %vm2150_vm11, %v5046_v51, %v5036_v24 }
 0x38f   : > { %v5051_v27 = vunpack.i.l.bf16 %v5050_v41  ;;  %v5042_v28 = vunpack.i.h.bf16 %v5040_v38  ;;  %v5041_v61 = vunpack.i.l.bf16 %v5040_v38  ;;  %v5052_v19 = vunpack.i.h.bf16 %v5050_v41 }
 0x390   : > { %v2217_v9 = vsel %vm2075_vm8, %v2197_v14, %v6707_v0  ;;  %v2163_v43 = vsel %vm2150_vm11, %v5036_v24, %v5037_v6 }
 0x391   : > { %2337 = vrot.lane.b32.xlu1 %v6913_v10, %s8716_s19  ;;  %v2198_v8 = vsel %vm2150_vm11, %v5047_v4, %v5051_v27  ;;  %v2014_v30 = vsel %vm2001_vm9, %v5041_v61, %v5042_v28  ;;  %v2165_v15 = vsel %vm2150_vm11, %v5051_v27, %v5052_v19  ;;  %v2218_v7 = vsel %vm2076_vm7, %v2163_v43, %v6724_v23 }
 0x392   : > { %2351 = vrot.lane.b32.xlu0 %v6915_v63, %s8742_s20  ;;  %v7029_v45 = vpop.permute.xlu0 %5059  ;;  %v5055_v22 = vpop.permute.xlu1 %5054  ;;  %v2220_v37 = vsel %vm2075_vm8, %v2198_v8, %v6754_v16  ;;  %v2241_v40 = vsel %vm8772_vm12, %v2014_v30, %v2217_v9  ;;  %v2221_v38 = vsel %vm2076_vm7, %v2165_v15, %v6758_v58 }
 0x393   : > { %v5057_v49 = vunpack.i.h.bf16 %v5055_v22  ;;  %v5061_v53 = vunpack.i.l.bf16 %v7029_v45  ;;  %v5056_v13 = vunpack.i.l.bf16 %v5055_v22  ;;  %v5062_v55 = vunpack.i.h.bf16 %v7029_v45 }
 0x395   : > { %2535 = vrot.lane.b32.xlu1 %v6915_v63, %s8710_s23  ;;  %v2016_v21 = vsel %vm2001_vm9, %v5057_v49, %v5061_v53  ;;  %v2015_v31 = vsel %vm2001_vm9, %v5042_v28, %v5056_v13  ;;  %v2017_v41 = vsel %vm2001_vm9, %v5061_v53, %v5062_v55 }
 0x396   : > { %2537 = vrot.lane.b32.xlu0 %v6913_v10, %s8710_s23  ;;  %v5070_v59 = vpop.permute.xlu0 %5069  ;;  %v5065_v18 = vpop.permute.xlu1 %5064  ;;  %v2244_v48 = vsel %vm8772_vm12, %v2016_v21, %v2220_v37  ;;  %v2245_v58 = vsel %vm1927_vm10, %v2017_v41, %v2221_v38  ;;  %v7270_v38 = vld [vmem:[%s8659_s4 + $0xc] ss:$20 sps:$4 sm:$0xff]  }
 0x397   : > { %v5067_v32 = vunpack.i.h.bf16 %v5065_v18  ;;  %v5066_v3 = vunpack.i.l.bf16 %v5065_v18  ;;  %v5072_v44 = vunpack.i.h.bf16 %v5070_v59  ;;  %v5071_v20 = vunpack.i.l.bf16 %v5070_v59  ;;  %8819 = vst [vmem:[#allocation23_spill] sm:$0xff] %v7270_v38  ;;  %2960 = vmatprep.mubr.bf16.mxu1 %v7270_v38 }
 0x398   : > { %v2242_v59 = vsel %vm1927_vm10, %v2015_v31, %v2218_v7 }
 0x399   : > { %2533 = vrot.lane.b32.xlu1 %v6893_v33, %s8710_s23  ;;  %v2164_v34 = vsel %vm2150_vm11, %v5037_v6, %v5066_v3  ;;  %v2166_v11 = vsel %vm2150_vm11, %v5052_v19, %v5067_v32  ;;  %v2073_v57 = vsel %vm2066_vm14, %v5056_v13, %v5071_v20  ;;  %v7133_v27 = vpack.c.bf16 %v2245_v58, %v2242_v59 }
 0x39a   : > { %2285 = vrot.lane.b32.xlu0 %v6893_v33, %s8740_s21  ;;  %v2219_v0 = vsel %vm2077_vm15, %v2164_v34, %v6741_v29  ;;  %v2222_v16 = vsel %vm2077_vm15, %v2166_v11, %v6730_v52  ;;  %v7105_v29 = vpack.c.bf16 %v2244_v48, %v2241_v40  ;;  %v2074_v52 = vsel %vm2066_vm14, %v5062_v55, %v5072_v44  ;;  %v7246_v40 = vld [vmem:[%s8659_s4 + $0x4] ss:$20 sps:$4 sm:$0xff]  }
 0x39b   : > { %v2243_v45 = vsel %vm8755_vm13, %v2073_v57, %v2219_v0  ;;  %v2246_v23 = vsel %vm8755_vm13, %v2074_v52, %v2222_v16  ;;  %8814 = vst [vmem:[#allocation18_spill] sm:$0xff] %v7246_v40  ;;  %2907 = vmatprep.mubr.bf16.mxu0 %v7246_v40 }
 0x39c   : > { %v7129_v18 = vpack.c.bf16 %v2246_v23, %v2243_v45 }
 0x39d   : > { %2287 = vrot.lane.b32.xlu1 %v6915_v63, %s8740_s21 }
 0x39e   : > { %2265 = vrot.lane.b32.xlu0 %v6913_v10, %s8712_s22  ;;  %8802 = vst [vmem:[#allocation5_spill] sm:$0xff] %v7129_v18 }
 0x3a1   : > { %2477 = vrot.lane.b32.xlu1 %v6893_v33, %s8770_s24 }
 0x3a2   : > { %2479 = vrot.lane.b32.xlu0 %v6915_v63, %s8770_s24 }
 0x3a5   : > { %2465 = vrot.lane.b32.xlu1 %v6913_v10, %s8746_s25 }
 0x3a6   : > { %2665 = vrot.lane.b32.xlu0 %v6913_v10, %s8714_s28 }
 0x3a9   : > { %2663 = vrot.lane.b32.xlu1 %v6915_v63, %s8714_s28 }
 0x3aa   : > { %2413 = vrot.lane.b32.xlu0 %v6893_v33, %s8748_s26 }
 0x3ad   : > { %2661 = vrot.lane.b32.xlu1 %v6893_v33, %s8714_s28 }
 0x3ae   : > { %2401 = vrot.lane.b32.xlu0 %v6913_v10, %s8798_s29 }
 0x3b1   : > { %2415 = vrot.lane.b32.xlu1 %v6915_v63, %s8748_s26 }
 0x3b2   : > { %2601 = vrot.lane.b32.xlu0 %v6913_v10, %s8797_s12 }
 0x3b5   : > { %2599 = vrot.lane.b32.xlu1 %v6915_v63, %s8797_s12 }
 0x3b6   : > { %2727 = vrot.lane.b32.xlu0 %v6915_v63, %s8800_s16 }
 0x3b9   : > { %2597 = vrot.lane.b32.xlu1 %v6893_v33, %s8797_s12 }
 0x3ba   : > { %2725 = vrot.lane.b32.xlu0 %v6893_v33, %s8800_s16 }
 0x3bd   : > { %2729 = vrot.lane.b32.xlu1 %v6913_v10, %s8800_s16 }
 0x3be   : > { %2355 = vrot.lane.b32.xlu0 %v6995_v1, %s8742_s20 }
 0x3c1   : > { %2357 = vrot.lane.b32.xlu1 %v7009_v25, %s8742_s20 }
 0x3c2   : > { %2339 = vrot.lane.b32.xlu0 %v7011_v56, %s8716_s19 }
 0x3c5   : > { %2541 = vrot.lane.b32.xlu1 %v7009_v25, %s8710_s23 }
 0x3c6   : > { %2543 = vrot.lane.b32.xlu0 %v7011_v56, %s8710_s23 }
 0x3c9   : > { %2539 = vrot.lane.b32.xlu1 %v6995_v1, %s8710_s23 }
 0x3ca   : > { %2291 = vrot.lane.b32.xlu0 %v6995_v1, %s8740_s21 }
 0x3cd   : > { %2293 = vrot.lane.b32.xlu1 %v7009_v25, %s8740_s21 }
 0x3ce   : > { %2267 = vrot.lane.b32.xlu0 %v7011_v56, %s8712_s22 }
 0x3d1   : > { %2485 = vrot.lane.b32.xlu1 %v7009_v25, %s8770_s24 }
 0x3d2   : > { %2483 = vrot.lane.b32.xlu0 %v6995_v1, %s8770_s24 }
 0x3d5   : > { %2669 = vrot.lane.b32.xlu1 %v7009_v25, %s8714_s28 }
 0x3d6   : > { %2467 = vrot.lane.b32.xlu0 %v7011_v56, %s8746_s25 }
 0x3d9   : > { %2667 = vrot.lane.b32.xlu1 %v6995_v1, %s8714_s28 }
 0x3da   : > { %2671 = vrot.lane.b32.xlu0 %v7011_v56, %s8714_s28 }
 0x3db   : > { %v7043_v36 = vpop.permute.xlu0 %2343  ;;  %v7045_v12 = vpop.permute.xlu1 %2345 }
 0x3dd   : > { %2421 = vrot.lane.b32.xlu1 %v7009_v25, %s8748_s26 }
 0x3de   : > { %2419 = vrot.lane.b32.xlu0 %v6995_v1, %s8748_s26 }
 0x3df   : > { %v7051_v46 = vpop.permute.xlu1 %2529 }
 0x3e0   : > { %v7053_v35 = vpop.permute.xlu0 %2335 }
 0x3e1   : > { %2605 = vrot.lane.b32.xlu1 %v7009_v25, %s8797_s12 }
 0x3e2   : > { %2403 = vrot.lane.b32.xlu0 %v7011_v56, %s8798_s29 }
 0x3e3   : > { %v7060_v54 = vpop.permute.xlu1 %2527 }
 0x3e4   : > { %v7064_v17 = vpop.permute.xlu0 %2531 }
 0x3e5   : > { %2603 = vrot.lane.b32.xlu1 %v6995_v1, %s8797_s12 }
 0x3e6   : > { %2607 = vrot.lane.b32.xlu0 %v7011_v56, %s8797_s12 }
 0x3e7   : > { %v7080_v47 = vpop.permute.xlu1 %2281 }
 0x3e8   : > { %v7086_v2 = vpop.permute.xlu0 %2279 }
 0x3e9   : > { %2735 = vrot.lane.b32.xlu1 %v7011_v56, %s8800_s16 }
 0x3ea   : > { %2733 = vrot.lane.b32.xlu0 %v7009_v25, %s8800_s16 }
 0x3eb   : > { %v7109_v39 = vpop.permute.xlu1 %2473 }
 0x3ec   : > { %v7119_v22 = vpop.permute.xlu0 %2263 }
 0x3ed   : > { %2361 = vrot.lane.b32.xlu1 %v7105_v29, %s8742_s20 }
 0x3ee   : > { %2731 = vrot.lane.b32.xlu0 %v6995_v1, %s8800_s16 }
 0x3ef   : > { %v7131_v51 = vpop.permute.xlu1 %2657 }
 0x3f0   : > { %v7135_v24 = vpop.permute.xlu0 %2471 }
 0x3f1   : > { %2341 = vrot.lane.b32.xlu1 %v7129_v18, %s8716_s19  ;;  %s8822_s19 = smov 51  }
 0x3f2   : > { %2363 = vrot.lane.b32.xlu0 %v7133_v27, %s8742_s20 }
 0x3f3   : > { %v7141_v4 = vpop.permute.xlu1 %2655 }
 0x3f4   : > { %8803 = vst [vmem:[#allocation6_spill] sm:$0xff] %v7141_v4  ;;  %v7143_v49 = vpop.permute.xlu0 %2463 }
 0x3f5   : > { %2591 = vrot.lane.b32.xlu1 %v6808_v5, %s8797_s12 }
 0x3f6   : > { %2595 = vrot.lane.b32.xlu0 %v6831_v62, %s8797_s12 }
 0x3f7   : > { %v7149_v28 = vpop.permute.xlu1 %2409 }
 0x3f8   : > { %8804 = vst [vmem:[#allocation10_spill] sm:$0xff] %v7149_v28  ;;  %v7151_v61 = vpop.permute.xlu0 %2659 }
 0x3f9   : > { %2547 = vrot.lane.b32.xlu1 %v7133_v27, %s8710_s23 }
 0x3fa   : > { %2549 = vrot.lane.b32.xlu0 %v7129_v18, %s8710_s23 }
 0x3fb   : > { %v7157_v32 = vpop.permute.xlu1 %2593 }
 0x3fc   : > { %8805 = vst [vmem:[#allocation11_spill] sm:$0xff] %v7157_v32  ;;  %v7159_v3 = vpop.permute.xlu0 %2407 }
 0x3fd   : > { %8806 = vst [vmem:[#allocation12_spill] sm:$0xff] %v7159_v3  ;;  %2545 = vrot.lane.b32.xlu1 %v7105_v29, %s8710_s23  ;;  %s8809_s23 = smov 50  }
 0x3fe   : > { %2297 = vrot.lane.b32.xlu0 %v7105_v29, %s8740_s21 }
 0x3ff   : > { %v7165_v53 = vpop.permute.xlu1 %2349 }
 0x400   : > { %v7167_v6 = vpop.permute.xlu0 %2399 }
 0x401   : > { %8807 = vst [vmem:[#allocation13_spill] sm:$0xff] %v7167_v6  ;;  %2299 = vrot.lane.b32.xlu1 %v7133_v27, %s8740_s21 }
 0x402   : > { %2269 = vrot.lane.b32.xlu0 %v7129_v18, %s8712_s22  ;;  %s8810_s22 = smov 67  }
 0x403   : > { %v7173_v14 = vpop.permute.xlu1 %2337 }
 0x404   : > { %v7175_v19 = vpop.permute.xlu0 %2351 }
 0x405   : > { %8808 = vst [vmem:[#allocation14_spill] sm:$0xff] %v7175_v19  ;;  %2723 = vrot.lane.b32.xlu1 %v6831_v62, %s8800_s16 }
 0x406   : > { %2721 = vrot.lane.b32.xlu0 %v6810_v50, %s8800_s16 }
 0x407   : > { %v7181_v8 = vpop.permute.xlu1 %2535 }
 0x408   : > { %v7183_v21 = vpop.permute.xlu0 %2537 }
 0x409   : > { %2487 = vrot.lane.b32.xlu1 %v7011_v56, %s8770_s24 }
 0x40a   : > { %2719 = vrot.lane.b32.xlu0 %v6808_v5, %s8800_s16 }
 0x40b   : > { %v7189_v30 = vpop.permute.xlu1 %2533 }
 0x40c   : > { %v7191_v13 = vpop.permute.xlu0 %2285 }
 0x40d   : > { %2489 = vrot.lane.b32.xlu1 %v7105_v29, %s8770_s24 }
 0x40e   : > { %2359 = vrot.lane.b32.xlu0 %v7011_v56, %s8742_s20 }
 0x40f   : > { %v7197_v34 = vpop.permute.xlu1 %2287 }
 0x410   : > { %v7199_v11 = vpop.permute.xlu0 %2265 }
 0x411   : > { %2469 = vrot.lane.b32.xlu1 %v7129_v18, %s8746_s25  ;;  %s8939_s25 = smov 17  }
 0x412   : > { %2491 = vrot.lane.b32.xlu0 %v7133_v27, %s8770_s24 }
 0x413   : > { %v7205_v9 = vpop.permute.xlu1 %2477 }
 0x414   : > { %v7207_v37 = vpop.permute.xlu0 %2479 }
 0x415   : > { %2699 = vrot.lane.b32.xlu1 %v6995_v1, %s8809_s23 }
 0x416   : > { %2571 = vrot.lane.b32.xlu0 %v6995_v1, %s8810_s22 }
 0x417   : > { %v7213_v44 = vpop.permute.xlu1 %2465 }
 0x418   : > { %v7215_v20 = vpop.permute.xlu0 %2665 }
 0x419   : > { %2675 = vrot.lane.b32.xlu1 %v7133_v27, %s8714_s28 }
 0x41a   : > { %2677 = vrot.lane.b32.xlu0 %v7129_v18, %s8714_s28 }
 0x41b   : > { %v7221_v43 = vpop.permute.xlu1 %2663 }
 0x41c   : > { %v7223_v55 = vpop.permute.xlu0 %2413 }
 0x41d   : > { %8811 = vst [vmem:[#allocation15_spill] sm:$0xff] %v7223_v55  ;;  %2673 = vrot.lane.b32.xlu1 %v7105_v29, %s8714_s28  ;;  %s8829_s28 = smov 49  }
 0x41e   : > { %2425 = vrot.lane.b32.xlu0 %v7105_v29, %s8748_s26 }
 0x41f   : > { %v7229_v48 = vpop.permute.xlu1 %2661 }
 0x420   : > { %v7231_v15 = vpop.permute.xlu0 %2401 }
 0x421   : > { %8812 = vst [vmem:[#allocation16_spill] sm:$0xff] %v7231_v15  ;;  %2427 = vrot.lane.b32.xlu1 %v7133_v27, %s8748_s26 }
 0x422   : > { %2405 = vrot.lane.b32.xlu0 %v7129_v18, %s8798_s29 }
 0x423   : > { %v7237_v0 = vpop.permute.xlu1 %2415 }
 0x424   : > { %v7239_v16 = vpop.permute.xlu0 %2601 }
 0x425   : > { %8813 = vst [vmem:[#allocation17_spill] sm:$0xff] %v7239_v16  ;;  %2481 = vrot.lane.b32.xlu1 %v6913_v10, %s8770_s24 }
 0x426   : > { %2353 = vrot.lane.b32.xlu0 %v6913_v10, %s8742_s20 }
 0x427   : > { %v7250_v31 = vpop.permute.xlu1 %2599 }
 0x428   : > { %8815 = vst [vmem:[#allocation19_spill] sm:$0xff] %v7250_v31  ;;  %v7253_v7 = vpop.permute.xlu0 %2727 }
 0x429   : > { %8816 = vst [vmem:[#allocation20_spill] sm:$0xff] %v7253_v7  ;;  %2611 = vrot.lane.b32.xlu1 %v7133_v27, %s8797_s12 }
 0x42a   : > { %2613 = vrot.lane.b32.xlu0 %v7129_v18, %s8797_s12 }
 0x42b   : > { %v7259_v57 = vpop.permute.xlu1 %2597 }
 0x42c   : > { %8817 = vst [vmem:[#allocation21_spill] sm:$0xff] %v7259_v57  ;;  %v7261_v52 = vpop.permute.xlu0 %2725 }
 0x42d   : > { %8818 = vst [vmem:[#allocation22_spill] sm:$0xff] %v7261_v52  ;;  %2609 = vrot.lane.b32.xlu1 %v7105_v29, %s8797_s12 }
 0x42e   : > { %2739 = vrot.lane.b32.xlu0 %v7133_v27, %s8800_s16 }
 0x42f   : > { %v7272_v41 = vpop.permute.xlu1 %2729 }
 0x430   : > { %8820 = vst [vmem:[#allocation24_spill] sm:$0xff] %v7272_v41  ;;  %v7274_v45 = vpop.permute.xlu0 %2355 }
 0x431   : > { %2741 = vrot.lane.b32.xlu1 %v7129_v18, %s8800_s16 }
 0x432   : > { %2737 = vrot.lane.b32.xlu0 %v7105_v29, %s8800_s16 }
 0x433   : > { %v7281_v23 = vpop.permute.xlu1 %2357 }
 0x434   : > { %8821 = vst [vmem:[#allocation25_spill] sm:$0xff] %v7281_v23  ;;  %v7283_v59 = vpop.permute.xlu0 %2339  ;;  %v2371_v55 = vsel %vm8758_vm0, %v7274_v45, %v7281_v23  ;;  %v2369_v23 = vsel %vm8758_vm0, %v7165_v53, %v7175_v19 }
 0x435   : > { %2697 = vrot.lane.b32.xlu1 %v6893_v33, %s8809_s23 }
 0x436   : > { %2569 = vrot.lane.b32.xlu0 %v6893_v33, %s8810_s22 }
 0x437   : > { %v7289_v58 = vpop.permute.xlu1 %2541 }
 0x438   : > { %v7291_v60 = vpop.permute.xlu0 %2543 }
 0x439   : > { %2475 = vrot.lane.b32.xlu1 %v6831_v62, %s8770_s24 }
 0x43a   : > { %2347 = vrot.lane.b32.xlu0 %v6831_v62, %s8742_s20 }
 0x43b   : > { %v7297_v26 = vpop.permute.xlu1 %2539 }
 0x43c   : > { %v7299_v42 = vpop.permute.xlu0 %2291 }
 0x43d   : > { %2493 = vrot.lane.b32.xlu1 %v7129_v18, %s8770_s24 }
 0x43e   : > { %2365 = vrot.lane.b32.xlu0 %v7129_v18, %s8742_s20  ;;  %s8912_s20 = smov 92  }
 0x43f   : > { %v7305_v38 = vpop.permute.xlu1 %2293 }
 0x440   : > { %v7307_v40 = vpop.permute.xlu0 %2267 }
 0x441   : > { %2701 = vrot.lane.b32.xlu1 %v7105_v29, %s8809_s23 }
 0x442   : > { %2573 = vrot.lane.b32.xlu0 %v7105_v29, %s8810_s22 }
 0x443   : > { %v7313_v52 = vpop.permute.xlu1 %2485 }
 0x444   : > { %v7315_v7 = vpop.permute.xlu0 %2483 }
 0x445   : > { %2695 = vrot.lane.b32.xlu1 %v6808_v5, %s8809_s23 }
 0x446   : > { %2567 = vrot.lane.b32.xlu0 %v6808_v5, %s8810_s22 }
 0x447   : > { %v7321_v41 = vpop.permute.xlu1 %2669 }
 0x448   : > { %v7323_v32 = vpop.permute.xlu0 %2467 }
 0x449   : > { %2295 = vrot.lane.b32.xlu1 %v7011_v56, %s8740_s21 }
 0x44a   : > { %2423 = vrot.lane.b32.xlu0 %v7011_v56, %s8748_s26 }
 0x44b   : > { %v7329_v57 = vpop.permute.xlu1 %2667 }
 0x44c   : > { %v7331_v31 = vpop.permute.xlu0 %2671 }
 0x44d   : > { %2429 = vrot.lane.b32.xlu1 %v7129_v18, %s8748_s26 }
 0x44e   : > { %2301 = vrot.lane.b32.xlu0 %v7129_v18, %s8740_s21 }
 0x44f   : > { %v7337_v16 = vpop.permute.xlu1 %2421 }
 0x450   : > { %v7339_v6 = vpop.permute.xlu0 %2419 }
 0x451   : > { %2637 = vrot.lane.b32.xlu1 %v7105_v29, %s8822_s19 }
 0x452   : > { %2635 = vrot.lane.b32.xlu0 %v6995_v1, %s8822_s19 }
 0x453   : > { %v7345_v56 = vpop.permute.xlu1 %2605 }
 0x454   : > { %8823 = vst [vmem:[#allocation26_spill] sm:$0xff] %v7345_v56  ;;  %v7347_v3 = vpop.permute.xlu0 %2403 }
 0x455   : > { %2417 = vrot.lane.b32.xlu1 %v6913_v10, %s8748_s26 }
 0x456   : > { %2289 = vrot.lane.b32.xlu0 %v6913_v10, %s8740_s21 }
 0x457   : > { %v7353_v18 = vpop.permute.xlu1 %2603 }
 0x458   : > { %8824 = vst [vmem:[#allocation27_spill] sm:$0xff] %v7353_v18  ;;  %v7355_v28 = vpop.permute.xlu0 %2607 }
 0x459   : > { %8825 = vst [vmem:[#allocation28_spill] sm:$0xff] %v7355_v28  ;;  %2633 = vrot.lane.b32.xlu1 %v6893_v33, %s8822_s19 }
 0x45a   : > { %2411 = vrot.lane.b32.xlu0 %v6831_v62, %s8748_s26  ;;  %s8940_s26 = smov 61  }
 0x45b   : > { %v7361_v15 = vpop.permute.xlu1 %2735 }
 0x45c   : > { %8826 = vst [vmem:[#allocation29_spill] sm:$0xff] %v7361_v15  ;;  %v7363_v56 = vpop.permute.xlu0 %2733 }
 0x45d   : > { %8827 = vst [vmem:[#allocation30_spill] sm:$0xff] %v7363_v56  ;;  %2283 = vrot.lane.b32.xlu1 %v6831_v62, %s8740_s21  ;;  %s8928_s21 = smov 32  }
 0x45e   : > { %2631 = vrot.lane.b32.xlu0 %v6808_v5, %s8822_s19 }
 0x45f   : > { %v2362_v10 = vpop.permute.xlu1 %2361 }
 0x460   : > { %v7369_v18 = vpop.permute.xlu0 %2731 }
 0x461   : > { %8828 = vst [vmem:[#allocation31_spill] sm:$0xff] %v7369_v18  ;;  %2765 = vrot.lane.b32.xlu1 %v7105_v29, %s8829_s28  ;;  %v2797_v18 = vld [vmem:[%s8660_s5 + $0x10] sm:$0xff] }
 0x462   : > { %2763 = vrot.lane.b32.xlu0 %v6995_v1, %s8829_s28 }
 0x463   : > { %v2342_v28 = vpop.permute.xlu1 %2341 }
 0x464   : > { %v7375_v4 = vpop.permute.xlu0 %2363  ;;  %v2397_v56 = vsel %vm8758_vm0, %v2342_v28, %v2362_v10 }
 0x465   : > { %8830 = vst [vmem:[#allocation32_spill] sm:$0xff] %v7375_v4  ;;  %2761 = vrot.lane.b32.xlu1 %v6893_v33, %s8829_s28  ;;  %v2373_v62 = vsel %vm8758_vm0, %v2362_v10, %v7375_v4  ;;  %v2798_v4 = vld [vmem:[%s8660_s5 + $0x18] sm:$0xff] }
 0x466   : > { %2759 = vrot.lane.b32.xlu0 %v6808_v5, %s8829_s28  ;;  %2875 = vmatprep.subr.bf16.mxu0 %v2373_v62  ;;  %v2393_v62 = vsel %vm8758_vm0, %v7283_v59, %v7274_v45  ;;  %v2389_v45 = vsel %vm8758_vm0, %v7173_v14, %v7165_v53  ;;  %v2385_v53 = vsel %vm8758_vm0, %v7053_v35, %v7043_v36 }
 0x467   : > { %2876 = vmatpush1.bf16.msra.mxu0 %v2397_v56  ;;  %v7387_v15 = vpop.permute.xlu1 %2591  ;;  %v2795_v56 = vld [vmem:[%s8660_s5] sm:$0xff] }
 0x468   : > { %8831 = vst [vmem:[#allocation33_spill] sm:$0xff] %v7387_v15  ;;  %v7395_v10 = vpop.permute.xlu0 %2595  ;;  %2877 = vmatprep.subr.bf16.mxu0 %v2371_v55  ;;  %v2796_v55 = vld [vmem:[%s8660_s5 + $0x8] sm:$0xff] }
 0x469   : > { %2811 = vperm.xlu1 %4752, %v2797_v18  }
 0x46a   : > { %2816 = vperm.xlu0 %4751, %v2798_v4  }
 0x46b   : > { %2878 = vmatpush1.bf16.msra.mxu0 %v2393_v62  ;;  %v2548_v28 = vpop.permute.xlu1 %2547  ;;  %v2367_v62 = vsel %vm8758_vm0, %v7043_v36, %v7045_v12  ;;  %v2554_v36 = vsel %vm8753_vm2, %v7181_v8, %v7183_v21 }
 0x46c   : > { %v7409_v18 = vpop.permute.xlu0 %2549  ;;  %2879 = vmatprep.subr.bf16.mxu0 %v2369_v23  ;;  %v2556_v23 = vsel %vm8753_vm2, %v7289_v58, %v7291_v60 }
 0x46d   : > { %2801 = vperm.xlu1 %4752, %v2795_v56   ;;  %v2558_v4 = vsel %vm8753_vm2, %v2548_v28, %v7409_v18  ;;  %v2555_v56 = vsel %vm8753_vm2, %v7297_v26, %v7289_v58  ;;  %v2307_v26 = vsel %vm8757_vm1, %v7299_v42, %v7305_v38  ;;  %v2553_v58 = vsel %vm8753_vm2, %v7189_v30, %v7181_v8 }
 0x46e   : > { %2806 = vperm.xlu0 %4751, %v2796_v55   ;;  %2928 = vmatprep.subr.bf16.mxu1 %v2558_v4  ;;  %v2305_v8 = vsel %vm8757_vm1, %v7191_v13, %v7197_v34  ;;  %v2551_v30 = vsel %vm8753_vm2, %v7060_v54, %v7051_v46 }
 0x46f   : > { %2880 = vmatpush1.bf16.msra.mxu0 %v2389_v45  ;;  %v2546_v59 = vpop.permute.xlu1 %2545  ;;  %v2329_v45 = vsel %vm8757_vm1, %v7307_v40, %v7299_v42  ;;  %v2325_v42 = vsel %vm8757_vm1, %v7199_v11, %v7191_v13 }
 0x470   : > { %v2557_v19 = vsel %vm8753_vm2, %v2546_v59, %v2548_v28  ;;  %v2298_v15 = vpop.permute.xlu0 %2297  ;;  %2881 = vmatprep.subr.bf16.mxu0 %v2367_v62 }
 0x471   : > { %2929 = vmatpush1.bf16.msra.mxu1 %v2557_v19 }
 0x472   : > { %2930 = vmatprep.subr.bf16.mxu1 %v2556_v23  ;;  %v2303_v23 = vsel %vm8757_vm1, %v7086_v2, %v7080_v47 }
 0x473   : > { %2882 = vmatpush1.bf16.msra.mxu0 %v2385_v53  ;;  %v7426_v14 = vpop.permute.xlu1 %2299 }
 0x474   : > { %v2270_v28 = vpop.permute.xlu0 %2269  ;;  %v2309_v19 = vsel %vm8757_vm1, %v2298_v15, %v7426_v14 }
 0x475   : > { %v2333_v55 = vsel %vm8757_vm1, %v2270_v28, %v2298_v15  ;;  %2883 = vmatprep.subr.bf16.mxu0 %v2309_v19  ;;  %2931 = vmatpush1.bf16.msra.mxu1 %v2555_v56  ;;  %v2552_v15 = vsel %vm8753_vm2, %v7051_v46, %v7064_v17  ;;  %v2321_v46 = vsel %vm8757_vm1, %v7119_v22, %v7086_v2  ;;  %vm8841_vm2 = vcmask 891904  }
 0x476   : > { %2932 = vmatprep.subr.bf16.mxu1 %v2554_v36  ;;  %v2497_v22 = vsel %vm8756_vm3, %v7205_v9, %v7207_v37  ;;  %vm8847_vm13 = vmmov %vm8841_vm2 }
 0x477   : > { %2884 = vmatpush1.bf16.msra.mxu0 %v2333_v55  ;;  %v7437_v35 = vpop.permute.xlu1 %2723  ;;  %v2683_v55 = vsel %vm8754_vm5, %v7329_v57, %v7321_v41  ;;  %v2435_v57 = vsel %vm8759_vm4, %v7339_v6, %v7337_v16 }
 0x478   : > { %v7445_v4 = vpop.permute.xlu0 %2721  ;;  %2885 = vmatprep.subr.bf16.mxu0 %v2307_v26 }
 0x479   : > { %2933 = vmatpush1.bf16.msra.mxu1 %v2553_v58 }
 0x47a   : > { %2934 = vmatprep.subr.bf16.mxu1 %v2552_v15 }
 0x47b   : > { %2886 = vmatpush1.bf16.msra.mxu0 %v2329_v45  ;;  %v7453_v59 = vpop.permute.xlu1 %2487  ;;  %v2680_v45 = vsel %vm8754_vm5, %v7131_v51, %v7151_v61 }
 0x47c   : > { %v7461_v62 = vpop.permute.xlu0 %2719  ;;  %2887 = vmatprep.subr.bf16.mxu0 %v2305_v8  ;;  %v2457_v8 = vsel %vm8759_vm4, %v7347_v3, %v7339_v6  ;;  %v8834_v3 = vld [vmem:[#allocation16_spill] sm:$0xff] }
 0x47d   : > { %2935 = vmatpush1.bf16.msra.mxu1 %v2551_v30 }
 0x47e   : > { %2936 = vmatprep.subr.bf16.mxu1 %v7133_v27 }
 0x47f   : > { %2888 = vmatpush1.bf16.msra.mxu0 %v2325_v42  ;;  %v2490_v40 = vpop.permute.xlu1 %2489  ;;  %v8832_v42 = vld [vmem:[#allocation15_spill] sm:$0xff] }
 0x480   : > { %v7470_v53 = vpop.permute.xlu0 %2359  ;;  %2889 = vmatprep.subr.bf16.mxu0 %v2303_v23  ;;  %v2453_v6 = vsel %vm8759_vm4, %v8834_v3, %v8832_v42  ;;  %v8850_v3 = vld [vmem:[#allocation31_spill] sm:$0xff] }
 0x481   : > { %2937 = vmatpush1.bf16.msra.mxu1 %v7105_v29 }
 0x482   : > { %2938 = vmatprep.subr.bf16.mxu1 %v7009_v25  ;;  %v2499_v25 = vsel %vm8756_vm3, %v7315_v7, %v7313_v52 }
 0x483   : > { %2890 = vmatpush1.bf16.msra.mxu0 %v2321_v46  ;;  %v2470_v54 = vpop.permute.xlu1 %2469 }
 0x484   : > { %v7477_v27 = vpop.permute.xlu0 %2491  ;;  %v2525_v11 = vsel %vm8756_vm3, %v2470_v54, %v2490_v40 }
 0x485   : > { %2939 = vmatpush1.bf16.msra.mxu1 %v6995_v1  ;;  %v2501_v13 = vsel %vm8756_vm3, %v2490_v40, %v7477_v27  ;;  %v2521_v1 = vsel %vm8756_vm3, %v7323_v32, %v7315_v7  ;;  %v2517_v32 = vsel %vm8756_vm3, %v7213_v44, %v7205_v9  ;;  %v2495_v7 = vsel %vm8756_vm3, %v7135_v24, %v7109_v39 }
 0x486   : > { %2891 = vmatprep.subr.bf16.mxu0 %v2501_v13  ;;  %2940 = vmatprep.subr.bf16.mxu1 %v6915_v63  ;;  %v2513_v9 = vsel %vm8756_vm3, %v7143_v49, %v7135_v24  ;;  %v2682_v24 = vsel %vm8754_vm5, %v7221_v43, %v7215_v20  ;;  %v2433_v40 = vsel %vm8759_vm4, %v8832_v42, %v7237_v0  ;;  %v8835_v13 = vld [vmem:[#allocation10_spill] sm:$0xff]  ;;  %v8848_v42 = vld [vmem:[#allocation21_spill] sm:$0xff] }
 0x487   : > { %2892 = vmatpush2.bf16.msra.mxu0 %v2525_v11  ;;  %v7484_v29 = vpop.permute.xlu1 %2699  ;;  %v8836_v11 = vld [vmem:[#allocation12_spill] sm:$0xff] }
 0x488   : > { %v7489_v2 = vpop.permute.xlu0 %2571  ;;  %2893 = vmatprep.subr.bf16.mxu0 %v2499_v25  ;;  %v2431_v25 = vsel %vm8759_vm4, %v8836_v11, %v8835_v13 }
 0x489   : > { %2941 = vmatpush1.bf16.msra.mxu1 %v6893_v33 }
 0x48a   : > { %2942 = vmatprep.subr.bf16.mxu1 %v6810_v50 }
 0x48b   : > { %2894 = vmatpush2.bf16.msra.mxu0 %v2521_v1  ;;  %v2676_v63 = vpop.permute.xlu1 %2675 }
 0x48c   : > { %v7499_v56 = vpop.permute.xlu0 %2677  ;;  %2895 = vmatprep.subr.bf16.mxu0 %v2497_v22  ;;  %v8838_v22 = vld [vmem:[#allocation26_spill] sm:$0xff] }
 0x48d   : > { %2943 = vmatpush1.bf16.msra.mxu1 %v6808_v5  ;;  %v2686_v33 = vsel %vm8754_vm5, %v2676_v63, %v7499_v56  ;;  %v2684_v5 = vsel %vm8754_vm5, %v7321_v41, %v7331_v31  ;;  %v2681_v41 = vsel %vm8754_vm5, %v7229_v48, %v7221_v43  ;;  %v8833_v43 = vld [vmem:[#allocation6_spill] sm:$0xff] }
 0x48e   : > { %2944 = vmatprep.subr.bf16.mxu1 %v2686_v33  ;;  %v2679_v48 = vsel %vm8754_vm5, %v8833_v43, %v7131_v51 }
 0x48f   : > { %2896 = vmatpush2.bf16.msra.mxu0 %v2517_v32  ;;  %v2674_v50 = vpop.permute.xlu1 %2673  ;;  %v8839_v32 = vld [vmem:[#allocation13_spill] sm:$0xff] }
 0x490   : > { %v2685_v28 = vsel %vm8754_vm5, %v2674_v50, %v2676_v63  ;;  %v2426_v19 = vpop.permute.xlu0 %2425  ;;  %2897 = vmatprep.subr.bf16.mxu0 %v2495_v7  ;;  %v8837_v63 = vld [vmem:[#allocation28_spill] sm:$0xff]  ;;  %v2449_v50 = vsel %vm8759_vm4, %v8839_v32, %v8836_v11  ;;  %vm8842_vm5 = vmmov %vm8841_vm2 }
 0x491   : > { %2945 = vmatpush2.bf16.msra.mxu1 %v2685_v28  ;;  %v2620_v33 = vsel %vm8760_vm6, %v8838_v22, %v8837_v63  ;;  %v7570_v7 = vld [vmem:[%s8659_s4] ss:$20 sps:$4 sm:$0xff]  }
 0x492   : > { %2946 = vmatprep.subr.bf16.mxu1 %v2684_v5  ;;  %v8840_v5 = vld [vmem:[#allocation27_spill] sm:$0xff] }
 0x493   : > { %2898 = vmatpush2.bf16.msra.mxu0 %v2513_v9  ;;  %v7517_v44 = vpop.permute.xlu1 %2427  ;;  %v2619_v9 = vsel %vm8760_vm6, %v8840_v5, %v8838_v22  ;;  %v8854_v22 = vld [vmem:[#allocation33_spill] sm:$0xff]  ;;  %v7625_v5 = vld [vmem:[%s8659_s4 + $0x34] ss:$20 sps:$4 sm:$0xff]  }
 0x494   : > { %v2406_v36 = vpop.permute.xlu0 %2405  ;;  %v2437_v26 = vsel %vm8759_vm4, %v2426_v19, %v7517_v44 }
 0x495   : > { %v2461_v58 = vsel %vm8759_vm4, %v2406_v36, %v2426_v19  ;;  %2899 = vmatprep.subr.bf16.mxu0 %v2437_v26  ;;  %2947 = vmatpush2.bf16.msra.mxu1 %v2683_v55  ;;  %v7577_v19 = vld [vmem:[%s8659_s4 + $0x2c] ss:$20 sps:$4 sm:$0xff]  }
 0x496   : > { %2948 = vmatprep.subr.bf16.mxu1 %v2682_v24  ;;  %v8844_v24 = vld [vmem:[#allocation19_spill] sm:$0xff] }
 0x497   : > { %2900 = vmatpush2.bf16.msra.mxu0 %v2461_v58  ;;  %v7528_v49 = vpop.permute.xlu1 %2481  ;;  %v8843_v58 = vld [vmem:[#allocation17_spill] sm:$0xff] }
 0x498   : > { %v7536_v15 = vpop.permute.xlu0 %2353  ;;  %2901 = vmatprep.subr.bf16.mxu0 %v2435_v57  ;;  %v2618_v57 = vsel %vm8760_vm6, %v8844_v24, %v8843_v58 }
 0x499   : > { %2949 = vmatpush2.bf16.msra.mxu1 %v2681_v41 }
 0x49a   : > { %2950 = vmatprep.subr.bf16.mxu1 %v2680_v45  ;;  %v8845_v45 = vld [vmem:[#allocation29_spill] sm:$0xff] }
 0x49b   : > { %2902 = vmatpush2.bf16.msra.mxu0 %v2457_v8  ;;  %v2612_v30 = vpop.permute.xlu1 %2611  ;;  %v8846_v8 = vld [vmem:[#allocation30_spill] sm:$0xff] }
 0x49c   : > { %v7550_v23 = vpop.permute.xlu0 %2613  ;;  %2903 = vmatprep.subr.bf16.mxu0 %v2433_v40  ;;  %v2617_v40 = vsel %vm8760_vm6, %v8848_v42, %v8844_v24  ;;  %v8857_v24 = vmov 0  }
 0x49d   : > { %2951 = vmatpush2.bf16.msra.mxu1 %v2679_v48  ;;  %v2622_v46 = vsel %vm8760_vm6, %v2612_v30, %v7550_v23  ;;  %v8849_v48 = vld [vmem:[#allocation11_spill] sm:$0xff] }
 0x49e   : > { %2952 = vmatprep.subr.bf16.mxu1 %v2622_v46  ;;  %v2616_v46 = vsel %vm8760_vm6, %v8849_v48, %v7395_v10 }
 0x49f   : > { %2904 = vmatpush2.bf16.msra.mxu0 %v2453_v6  ;;  %v2610_v54 = vpop.permute.xlu1 %2609  ;;  %v2747_v6 = vsel %vm8841_vm2, %v8850_v3, %v8846_v8 }
 0x4a0   : > { %v2621_v51 = vsel %vm8760_vm6, %v2610_v54, %v2612_v30  ;;  %v2740_v1 = vpop.permute.xlu0 %2739  ;;  %2905 = vmatprep.subr.bf16.mxu0 %v2431_v25  ;;  %v2748_v30 = vsel %vm8847_vm13, %v8846_v8, %v8845_v45  ;;  %v7609_v54 = vld [vmem:[%s8659_s4 + $0x28] ss:$20 sps:$4 sm:$0xff]   ;;  %v8851_v25 = vld [vmem:[#allocation24_spill] sm:$0xff]  ;;  %vm8856_vm13 = vmmov %vm8841_vm2 }
 0x4a1   : > { %2953 = vmatpush2.bf16.msra.mxu1 %v2621_v51  ;;  %v8852_v51 = vld [vmem:[#allocation20_spill] sm:$0xff] }
 0x4a2   : > { %2954 = vmatprep.subr.bf16.mxu1 %v2620_v33  ;;  %v2615_v33 = vsel %vm8760_vm6, %v8854_v22, %v8849_v48  ;;  %v2500_v48 = vsel %vm8756_vm3, %v7313_v52, %v7453_v59 }
 0x4a3   : > { %2906 = vmatpush2.bf16.msra.mxu0 %v2449_v50  ;;  %v7572_v28 = vpop.permute.xlu1 %2741  ;;  %v7620_v50 = vld [vmem:[%s8659_s4 + $0x8] ss:$20 sps:$4 sm:$0xff]  }
 0x4a4   : > { %v2738_v55 = vpop.permute.xlu0 %2737  ;;  %v2750_v36 = vsel %vm8841_vm2, %v2740_v1, %v7572_v28 }
 0x4a5   : > { %v2749_v26 = vsel %vm8842_vm5, %v2738_v55, %v2740_v1  ;;  %2955 = vmatpush2.bf16.msra.mxu1 %v2619_v9  ;;  %2989 = vmatprep.subr.bf16.mxu0 %v2750_v36  ;;  %vm8853_vm5 = vmmov %vm8841_vm2  ;;  %v8855_v9 = vld [vmem:[#allocation22_spill] sm:$0xff] }
 0x4a6   : > { %2908 = vmatmul.mubr.bf16.vlgmr.msra.gmra.mxu0 %v7570_v7  ;;  %2956 = vmatprep.subr.bf16.mxu1 %v2618_v57  ;;  %v2746_v1 = vsel %vm8853_vm5, %v8852_v51, %v8851_v25  ;;  %v2745_v55 = vsel %vm8856_vm13, %v8855_v9, %v8852_v51  ;;  %vm8859_vm5 = vmmov %vm8841_vm2  ;;  %vm8860_vm13 = vcmask 408576  }
 0x4a7   : > { %2990 = vmatpush1.bf16.msra.mxu0 %v2749_v26  ;;  %v7589_v41 = vpop.permute.xlu1 %2697  ;;  %2917 = vmatprep.mubr.bf16.mxu0 %v7577_v19  ;;  %v2744_v26 = vsel %vm8841_vm2, %v7445_v4, %v7437_v35  ;;  %vm8862_vm2 = vcmask 547840  }
 0x4a8   : > { %v7598_v43 = vpop.permute.xlu0 %2569  ;;  %2991 = vmatprep.subr.bf16.mxu0 %v2748_v30  ;;  %v8858_v30 = vld [vmem:[#allocation32_spill] sm:$0xff] }
 0x4a9   : > { %2957 = vmatpush2.bf16.msra.mxu1 %v2617_v40  ;;  %v2743_v40 = vsel %vm8859_vm5, %v7461_v62, %v7445_v4  ;;  %v7657_v4 = vld [vmem:[%s8659_s4 + $0x30] ss:$20 sps:$4 sm:$0xff]   ;;  %v8861_v62 = vld [vmem:[#allocation25_spill] sm:$0xff]  ;;  %vm8863_vm5 = vcmask 523264  }
 0x4aa   : > { %2958 = vmatprep.subr.bf16.mxu1 %v2616_v46  ;;  %v7650_v46 = vld [vmem:[%s8659_s4 + $0x10] ss:$20 sps:$4 sm:$0xff]   ;;  %v2372_v52 = vsel %vm8758_vm0, %v8861_v62, %v7470_v53 }
 0x4ab   : > { %2992 = vmatpush1.bf16.msra.mxu0 %v2747_v6  ;;  %v2476_v11 = vpop.permute.xlu1 %2475 }
 0x4ac   : > { %v2348_v32 = vpop.permute.xlu0 %2347  ;;  %2993 = vmatprep.subr.bf16.mxu0 %v2746_v1  ;;  %v2713_v1 = vsel %vm8860_vm13, %v7331_v31, %v7484_v29  ;;  %v2496_v31 = vsel %vm8756_vm3, %v7109_v39, %v2476_v11  ;;  %v7686_v29 = vld [vmem:[%s8659_s4 + $0x38] ss:$20 sps:$4 sm:$0xff]  }
 0x4ad   : > { %2959 = vmatpush2.bf16.msra.mxu1 %v2615_v33  ;;  %v8865_v33 = vld [vmem:[#allocation18_spill] sm:$0xff] }
 0x4ae   : > { %2918 = vmatmul.mubr.bf16.gmra.mxu0 %v7609_v54 }
 0x4af   : > { %2994 = vmatpush1.bf16.msra.mxu0 %v2745_v55  ;;  %v2494_v36 = vpop.permute.xlu1 %2493  ;;  %3013 = vmatprep.mubr.bf16.mxu0 %v8857_v24  ;;  %v8870_v55 = vld [vmem:[#allocation23_spill] sm:$0xff] }
 0x4b0   : > { %v2366_v57 = vpop.permute.xlu0 %2365  ;;  %2961 = vmatmul.mubr.bf16.vlgmr.msra.gmra.mxu1 %v7620_v50  ;;  %2995 = vmatprep.subr.bf16.mxu0 %v2744_v26  ;;  %v2502_v8 = vsel %vm8756_vm3, %v7477_v27, %v2494_v36 }
 0x4b1   : > { %v2374_v42 = vsel %vm8758_vm0, %v8858_v30, %v2366_v57  ;;  %4591 = vmatprep.subr.bf16.mxu1 %v2502_v8  ;;  %2970 = vmatprep.mubr.bf16.mxu1 %v7625_v5 }
 0x4b2   : > { %4592 = vmatpush3.bf16.msra.mxu1 %v2374_v42 }
 0x4b3   : > { %2996 = vmatpush1.bf16.msra.mxu0 %v2743_v40  ;;  %4593 = vmatprep.subr.bf16.mxu1 %v2500_v48  ;;  %v2702_v27 = vpop.permute.xlu1 %2701  ;;  %v8877_v40 = vld [vmem:[#allocation3_spill] sm:$0xff] }
 0x4b4   : > { %v2574_v3 = vpop.permute.xlu0 %2573  ;;  %v2717_v6 = vsel %vm8860_vm13, %v7499_v56, %v2702_v27  ;;  %v2498_v56 = vsel %vm8756_vm3, %v7207_v37, %v7528_v49  ;;  %v2585_v37 = vsel %vm8862_vm2, %v7291_v60, %v7489_v2  ;;  %v2368_v60 = vsel %vm8758_vm0, %v7045_v12, %v2348_v32 }
 0x4b5   : > { %v2589_v59 = vsel %vm8862_vm2, %v7409_v18, %v2574_v3  ;;  %4619 = vmatprep.subr.bf16.mxu0 %v2717_v6  ;;  %v8864_v18 = vld [vmem:[#allocation14_spill] sm:$0xff] }
 0x4b6   : > { %4488 = vmatmul.mubr.msk.bf16.vlgmr.msra.gmra.mxu0 %vm8863_vm5, %v7650_v46  ;;  %4594 = vmatpush3.bf16.msra.mxu1 %v2372_v52  ;;  %v2370_v22 = vsel %vm8758_vm0, %v8864_v18, %v7536_v15  ;;  %vm8866_vm5 = vmmov %vm8860_vm13  ;;  %v8879_v3 = vld [vmem:[#allocation2_spill] sm:$0xff] }
 0x4b7   : > { %4595 = vmatprep.subr.bf16.mxu1 %v2498_v56  ;;  %4620 = vmatpush3.bf16.msra.mxu0 %v2589_v59  ;;  %v2696_v51 = vpop.permute.xlu1 %2695  ;;  %v2709_v15 = vsel %vm8866_vm5, %v7215_v20, %v7589_v41  ;;  %vm8867_vm13 = vmmov %vm8862_vm2  ;;  %vm8868_vm2 = vcmask 523264  }
 0x4b8   : > { %v2568_v53 = vpop.permute.xlu0 %2567  ;;  %2971 = vmatmul.mubr.bf16.gmra.mxu1 %v7657_v4  ;;  %4621 = vmatprep.subr.bf16.mxu0 %v2713_v1  ;;  %v2581_v39 = vsel %vm8867_vm13, %v7183_v21, %v7598_v43  ;;  %vm8869_vm3 = vmmov %vm8866_vm5 }
 0x4b9   : > { %3023 = vmatprep.mubr.bf16.mxu0 %v8857_v24  ;;  %3066 = vmatprep.mubr.bf16.mxu1 %v8865_v33  ;;  %v2705_v11 = vsel %vm8869_vm3, %v7151_v61, %v2696_v51  ;;  %vm8871_vm5 = vmmov %vm8867_vm13  ;;  %vm8872_vm3 = vcmask 416768  }
 0x4ba   : > { %4596 = vmatpush3.bf16.msra.mxu1 %v2370_v22  ;;  %v2577_v21 = vsel %vm8871_vm5, %v7064_v17, %v2568_v53  ;;  %vm8874_vm13 = vmmov %vm8872_vm3 }
 0x4bb   : > { %4597 = vmatprep.subr.bf16.mxu1 %v2496_v31  ;;  %4622 = vmatpush3.bf16.msra.mxu0 %v2585_v37  ;;  %v2296_v49 = vpop.permute.xlu1 %2295 }
 0x4bc   : > { %v2424_v9 = vpop.permute.xlu0 %2423  ;;  %4623 = vmatprep.subr.bf16.mxu0 %v2709_v15 }
 0x4bd   : > { %v2436_v43 = vsel %vm8759_vm4, %v7337_v16, %v2424_v9 }
 0x4be   : > { %4489 = vmatmul.mubr.msk.bf16.gmra.mxu0 %vm8868_vm2, %v7686_v29  ;;  %4598 = vmatpush3.bf16.msra.mxu1 %v2368_v60  ;;  %vm8876_vm2 = vmmov %vm8872_vm3 }
 0x4bf   : > { %4624 = vmatpush3.bf16.msra.mxu0 %v2581_v39  ;;  %v2430_v2 = vpop.permute.xlu1 %2429  ;;  %3115 = vmatprep.mubr.bf16.mxu0 %v8870_v55  ;;  %vm8878_vm5 = vmmov %vm8876_vm2 }
 0x4c0   : > { %v2302_v20 = vpop.permute.xlu0 %2301  ;;  %4625 = vmatprep.subr.bf16.mxu0 %v2705_v11  ;;  %v2438_v12 = vsel %vm8759_vm4, %v7517_v44, %v2430_v2  ;;  %v2308_v44 = vsel %vm8757_vm1, %v7305_v38, %v2296_v49 }
 0x4c1   : > { %v2310_v41 = vsel %vm8757_vm1, %v7426_v14, %v2302_v20  ;;  %4599 = vmatprep.subr.bf16.mxu1 %v2438_v12  ;;  %v8873_v14 = vld [vmem:[#allocation5_spill] sm:$0xff] }
 0x4c2   : > { %4600 = vmatpush3.bf16.msra.mxu1 %v2310_v41 }
 0x4c3   : > { %4601 = vmatprep.subr.bf16.mxu1 %v2436_v43  ;;  %4626 = vmatpush3.bf16.msra.mxu0 %v2577_v21  ;;  %v2638_v61 = vpop.permute.xlu1 %2637 }
 0x4c4   : > { %v2636_v32 = vpop.permute.xlu0 %2635  ;;  %v2653_v36 = vsel %vm8872_vm3, %v7550_v23, %v2638_v61  ;;  %v8875_v23 = vld [vmem:[#allocation4_spill] sm:$0xff]  ;;  %vm8880_vm3 = vcmask 400384  }
 0x4c5   : > { %4627 = vmatprep.subr.bf16.mxu0 %v2653_v36  ;;  %v2649_v17 = vsel %vm8874_vm13, %v8837_v63, %v2636_v32  ;;  %vm8881_vm13 = vmmov %vm8880_vm3 }
 0x4c6   : > { %4602 = vmatpush3.bf16.msra.mxu1 %v2308_v44 }
 0x4c7   : > { %4628 = vmatpush3.bf16.msra.mxu0 %v8873_v14  ;;  %v2418_v26 = vpop.permute.xlu1 %2417 }
 0x4c8   : > { %v2290_v57 = vpop.permute.xlu0 %2289  ;;  %4629 = vmatprep.subr.bf16.mxu0 %v2649_v17  ;;  %v2434_v16 = vsel %vm8759_vm4, %v7237_v0, %v2418_v26 }
 0x4c9   : > { %v2306_v8 = vsel %vm8757_vm1, %v7197_v34, %v2290_v57  ;;  %4603 = vmatprep.subr.bf16.mxu1 %v2434_v16 }
 0x4ca   : > { %4604 = vmatpush3.bf16.msra.mxu1 %v2306_v8 }
 0x4cb   : > { %4630 = vmatpush3.bf16.msra.mxu0 %v8875_v23  ;;  %v2634_v38 = vpop.permute.xlu1 %2633 }
 0x4cc   : > { %v2412_v30 = vpop.permute.xlu0 %2411  ;;  %v2645_v42 = vsel %vm8876_vm2, %v8843_v58, %v2634_v38  ;;  %vm8882_vm2 = vmmov %vm8880_vm3 }
 0x4cd   : > { %4631 = vmatprep.subr.bf16.mxu0 %v2645_v42  ;;  %v2432_v63 = vsel %vm8759_vm4, %v8835_v13, %v2412_v30 }
 0x4ce   : > { %4605 = vmatprep.subr.bf16.mxu1 %v2432_v63 }
 0x4cf   : > { %4632 = vmatpush3.bf16.msra.mxu0 %v8877_v40  ;;  %v2284_v0 = vpop.permute.xlu1 %2283 }
 0x4d0   : > { %v2304_v34 = vsel %vm8757_vm1, %v7080_v47, %v2284_v0  ;;  %v2632_v48 = vpop.permute.xlu0 %2631 }
 0x4d1   : > { %4606 = vmatpush3.bf16.msra.mxu1 %v2304_v34  ;;  %v2641_v27 = vsel %vm8878_vm5, %v7395_v10, %v2632_v48  ;;  %vm8883_vm5 = vcmask 523264  }
 0x4d2   : > { %4633 = vmatprep.subr.bf16.mxu0 %v2641_v27 }
 0x4d3   : > { %4634 = vmatpush3.bf16.msra.mxu0 %v8879_v3  ;;  %v2766_v58 = vpop.permute.xlu1 %2765 }
 0x4d4   : > { %v2764_v6 = vpop.permute.xlu0 %2763  ;;  %3067 = vmatmul.mubr.bf16.vlgmr.msra.gmra.mxu1 %v7570_v7  ;;  %v2781_v13 = vsel %vm8880_vm3, %v7572_v28, %v2766_v58  ;;  %vm8884_vm3 = vmmov %vm8882_vm2 }
 0x4d5   : > { %4694 = vmatprep.subr.bf16.mxu1 %v2781_v13  ;;  %v2777_v62 = vsel %vm8881_vm13, %v8845_v45, %v2764_v6  ;;  %3074 = vmatprep.mubr.bf16.mxu1 %v7577_v19  ;;  %vm8885_vm13 = vmmov %vm8883_vm5 }
 0x4d6   : > { %3116 = vmatmul.mubr.bf16.vlgmr.msra.gmra.mxu0 %v7620_v50  ;;  %4695 = vmatpush3.bf16.msra.mxu1 %v2781_v13 }
 0x4d7   : > { %4696 = vmatprep.subr.bf16.mxu1 %v2777_v62  ;;  %v2762_v47 = vpop.permute.xlu1 %2761  ;;  %3123 = vmatprep.mubr.bf16.mxu0 %v7625_v5 }
 0x4d8   : > { %v2773_v10 = vsel %vm8882_vm2, %v8851_v25, %v2762_v47  ;;  %v2760_v7 = vpop.permute.xlu0 %2759  ;;  %vm8886_vm2 = vcmask 15360  }
 0x4d9   : > { %v2769_v28 = vsel %vm8884_vm3, %v7437_v35, %v2760_v7  ;;  %vm8888_vm3 = vmmov %vm8886_vm2 }
 0x4da   : > { %4697 = vmatpush3.bf16.msra.mxu1 %v2777_v62  ;;  %vm8894_vm0 = vmmov %vm8888_vm3 }
 0x4db   : > { %4698 = vmatprep.subr.bf16.mxu1 %v2773_v10 }
 0x4dc   : > { %3075 = vmatmul.mubr.bf16.gmra.mxu1 %v7609_v54 }
 0x4dd   : > { %4702 = vmatprep.mubr.msk.bf16.mxu1 %vm8883_vm5, %v7650_v46  ;;  %vm8887_vm5 = vmmov %vm8886_vm2 }
 0x4de   : > { %3124 = vmatmul.mubr.bf16.gmra.mxu0 %v7657_v4  ;;  %4699 = vmatpush3.bf16.msra.mxu1 %v2773_v10 }
 0x4df   : > { %4700 = vmatprep.subr.bf16.mxu1 %v2769_v28 }
 0x4e2   : > { %4701 = vmatpush3.bf16.msra.mxu1 %v2769_v28 }
 0x4e4   : > { %v7752_v54 = vpop.permute.xlu1 %2811 }
 0x4e5   : > { %4703 = vmatmul.mubr.msk.bf16.vlgmr.msra.gmra.mxu1 %vm8885_vm13, %v7686_v29  ;;  %v7774_v20 = vpop.permute.xlu0 %2816  ;;  %vm8889_vm13 = vcmask 1031168  }
 0x4e6   : > { %3882 = vmatprep.mubr.bf16.mxu1 %v8857_v24  ;;  %vm8898_vm4 = vmmov %vm8889_vm13 }
 0x4e8   : > { %v7756_v52 = vpop.permute.xlu1 %2801 }
 0x566   : > { %v2909_v19 = vpop.f32.mrf.mxu0 }
 0x567   : > { %v2910_v56 = vadd.f32 %v2909_v19, %v7756_v52 }
 0x568   : > { %v2911_v45 = vpop.f32.mrf.mxu0 }
 0x569   : > { %v2912_v53 = vadd.f32 %v2911_v45, %v7756_v52 }
 0x56a   : > { %v7750_v25 = vpop.f32.mrf.mxu0 }
 0x56c   : > { %v7754_v50 = vpop.f32.mrf.mxu0 }
 0x56e   : > { %v2919_v5 = vpop.f32.mrf.mxu0 }
 0x56f   : > { %v2920_v39 = vadd.f32 %v2919_v5, %v7752_v54  ;;  %v2807_v5 = vpop.permute.xlu0 %2806 }
 0x570   : > { %v2921_v46 = vpop.f32.mrf.mxu0  ;;  %v2962_v4 = vpop.f32.mrf.mxu1 }
 0x571   : > { %v2963_v18 = vadd.f32 %v2962_v4, %v2910_v56  ;;  %v2922_v12 = vadd.f32 %v2921_v46, %v7752_v54  ;;  %v2914_v46 = vadd.f32 %v7750_v25, %v2807_v5 }
 0x572   : > { %v2923_v35 = vpop.f32.mrf.mxu0  ;;  %v2964_v59 = vpop.f32.mrf.mxu1 }
 0x573   : > { %v2965_v37 = vadd.f32 %v2964_v59, %v2912_v53  ;;  %v2924_v32 = vadd.f32 %v2923_v35, %v7774_v20 }
 0x574   : > { %v7759_v51 = vpop.f32.mrf.mxu0  ;;  %v7761_v1 = vpop.f32.mrf.mxu1 }
 0x576   : > { %v7764_v22 = vpop.f32.mrf.mxu1  ;;  %v3015_v33 = vpop.f32.mrf.mxu0 }
 0x577   : > { %v3016_v31 = vadd.f32 %v3015_v33, %v2963_v18  ;;  %v2967_v18 = vadd.f32 %v7761_v1, %v2914_v46 }
 0x578   : > { %v2972_v29 = vpop.f32.mrf.mxu1  ;;  %v3017_v49 = vpop.f32.mrf.mxu0 }
 0x579   : > { %v7766_v15 = vadd.f32 %v3017_v49, %v2965_v37  ;;  %v7769_v2 = vmax.f32 %v3016_v31, 0.0  ;;  %v2973_v41 = vadd.f32 %v2972_v29, %v2920_v39  ;;  %v2916_v29 = vadd.f32 %v7754_v50, %v2807_v5 }
 0x57a   : > { %v2974_v9 = vpop.f32.mrf.mxu1  ;;  %v3019_v60 = vpop.f32.mrf.mxu0 }
 0x57b   : > { %v3182_v11 = vmax.f32 %v7766_v15, 0.0  ;;  %v2975_v36 = vadd.f32 %v2974_v9, %v2922_v12  ;;  %v3020_v39 = vadd.f32 %v3019_v60, %v2967_v18 }
 0x57c   : > { %v7772_v55 = vpop.f32.mrf.mxu0  ;;  %v2976_v43 = vpop.f32.mrf.mxu1 }
 0x57d   : > { %v5078_v21 = vpack.i.bf16 %v3182_v11, %v7769_v2  ;;  %v2977_v26 = vadd.f32 %v2976_v43, %v2924_v32 }
 0x57e   : > { %v3025_v61 = vpop.f32.mrf.mxu0  ;;  %v2978_v63 = vpop.f32.mrf.mxu1 }
 0x57f   : > { %v3026_v44 = vadd.f32 %v3025_v61, %v2973_v41  ;;  %5079 = vrot.lane.b32.xlu1 %v5078_v21, %s8765_s17  ;;  %5074 = vrot.lane.b32.xlu0 %v5078_v21, %s8768_s18 }
 0x580   : > { %v3027_v14 = vpop.f32.mrf.mxu0 }
 0x581   : > { %v7783_v17 = vadd.f32 %v3027_v14, %v2975_v36  ;;  %v7785_v16 = vmax.f32 %v3026_v44, 0.0 }
 0x582   : > { %v3029_v57 = vpop.f32.mrf.mxu0 }
 0x583   : > { %v3188_v8 = vmax.f32 %v7783_v17, 0.0  ;;  %v3030_v23 = vadd.f32 %v3029_v57, %v2977_v26 }
 0x584   : > { %v3031_v40 = vpop.f32.mrf.mxu0 }
 0x585   : > { %v5088_v38 = vpack.i.bf16 %v3188_v8, %v7785_v16  ;;  %v7791_v30 = vmax.f32 %v3030_v23, 0.0 }
 0x587   : > { %5089 = vrot.lane.b32.xlu1 %v5088_v38, %s8765_s17  ;;  %5084 = vrot.lane.b32.xlu0 %v5088_v38, %s8768_s18  ;;  %v5093_v42 = vpack.i.bf16 %v7791_v30, %v7785_v16  ;;  %v2926_v38 = vadd.f32 %v7759_v51, %v7774_v20 }
 0x58b   : > { %5094 = vrot.lane.b32.xlu0 %v5093_v42, %s8764_s30 }
 0x594   : > { %v4607_v0 = vpop.f32.mrf.mxu1 }
 0x596   : > { %v4608_v34 = vpop.f32.mrf.mxu1  ;;  %v4635_v48 = vpop.f32.mrf.mxu0 }
 0x597   : > { %v4609_v47 = vadd.f32 %v4608_v34, %v4607_v0 }
 0x598   : > { %v4610_v27 = vpop.f32.mrf.mxu1  ;;  %v4636_v3 = vpop.f32.mrf.mxu0 }
 0x599   : > { %v3069_v4 = vadd.f32 %v4609_v47, %v7756_v52  ;;  %v4637_v35 = vadd.f32 %v4636_v3, %v4635_v48  ;;  %v2969_v52 = vadd.f32 %v7764_v22, %v2916_v29 }
 0x59a   : > { %v4611_v58 = vpop.f32.mrf.mxu1  ;;  %v4638_v6 = vpop.f32.mrf.mxu0 }
 0x59b   : > { %v4612_v59 = vadd.f32 %v4611_v58, %v4610_v27  ;;  %v3118_v25 = vadd.f32 %v4637_v35, %v3069_v4  ;;  %v7808_v44 = vadd.f32 %v7772_v55, %v2969_v52  ;;  %v2979_v55 = vadd.f32 %v2978_v63, %v2926_v38 }
 0x59c   : > { %v4613_v13 = vpop.f32.mrf.mxu1  ;;  %v4639_v62 = vpop.f32.mrf.mxu0 }
 0x59d   : > { %v3072_v12 = vadd.f32 %v4612_v59, %v2807_v5  ;;  %v4640_v41 = vadd.f32 %v4639_v62, %v4638_v6  ;;  %v3185_v42 = vmax.f32 %v7808_v44, 0.0  ;;  %v7827_v58 = vadd.f32 %v3031_v40, %v2979_v55 }
 0x59e   : > { %v4614_v10 = vpop.f32.mrf.mxu1  ;;  %v4641_v7 = vpop.f32.mrf.mxu0 }
 0x59f   : > { %v4615_v28 = vadd.f32 %v4614_v10, %v4613_v13  ;;  %v3121_v60 = vadd.f32 %v4640_v41, %v3072_v12  ;;  %v3191_v63 = vmax.f32 %v7827_v58, 0.0 }
 0x5a0   : > { %v4616_v19 = vpop.f32.mrf.mxu1  ;;  %v4642_v45 = vpop.f32.mrf.mxu0 }
 0x5a1   : > { %v3077_v33 = vadd.f32 %v4615_v28, %v7752_v54  ;;  %v4643_v37 = vadd.f32 %v4642_v45, %v4641_v7  ;;  %v7805_v54 = vmax.f32 %v3020_v39, 0.0 }
 0x5a2   : > { %v4617_v56 = vpop.f32.mrf.mxu1  ;;  %v4644_v53 = vpop.f32.mrf.mxu0 }
 0x5a3   : > { %v4618_v31 = vadd.f32 %v4617_v56, %v4616_v19  ;;  %v3126_v32 = vadd.f32 %v4643_v37, %v3077_v33  ;;  %v5148_v13 = vpack.i.bf16 %v7805_v54, %v7769_v2 }
 0x5a4   : > { %v4645_v49 = vpop.f32.mrf.mxu0 }
 0x5a5   : > { %v4704_v9 = vpop.f32.mrf.mxu1  ;;  %v3080_v43 = vadd.f32 %v4618_v31, %v7774_v20  ;;  %v4646_v61 = vadd.f32 %v4645_v49, %v4644_v53 }
 0x5a6   : > { %v3175_v26 = vadd.f32 %v4704_v9, %v3126_v32  ;;  %v8890_v32 = vld [vmem:[#allocation7_spill] sm:$0xff] }
 0x5a7   : > { %v3166_v21 = vpop.f32.mrf.mxu1  ;;  %v3129_v57 = vadd.f32 %v4646_v61, %v3080_v43  ;;  %vm8891_vm1 = vcmp.eq.s32.totalorder %v8890_v32, 2 }
 0x5a8   : > { %v3167_v1 = vadd.f32 %v3166_v21, %v3118_v25  ;;  %v7820_v34 = vmax.f32 %v3175_v26, 0.0  ;;  %v8895_v26 = vld [vmem:[#allocation8_spill] sm:$0xff] }
 0x5a9   : > { %v4705_v36 = vpop.f32.mrf.mxu1 }
 0x5aa   : > { %v7810_v50 = vmax.f32 %v3167_v1, 0.0  ;;  %v3178_v48 = vadd.f32 %v4705_v36, %v3129_v57  ;;  %v5113_v20 = vpack.i.bf16 %v7791_v30, %v7820_v34  ;;  %v8892_v36 = vld [vmem:[#allocation9_spill] sm:$0xff] }
 0x5ab   : > { %v3169_v14 = vpop.f32.mrf.mxu1 }
 0x5ac   : > { %v3170_v23 = vadd.f32 %v3169_v14, %v3121_v60  ;;  %v5098_v22 = vpack.i.bf16 %v7805_v54, %v7810_v50  ;;  %v7831_v51 = vmax.f32 %v3178_v48, 0.0 }
 0x5ae   : > { %v7817_v0 = vmax.f32 %v3170_v23, 0.0  ;;  %5099 = vrot.lane.b32.xlu1 %v5098_v22, %s8768_s18  ;;  %v5123_v6 = vpack.i.bf16 %v7831_v51, %v7820_v34  ;;  %v5128_v40 = vpack.i.bf16 %v7831_v51, %v3191_v63 }
 0x5b0   : > { %v5103_v27 = vpack.i.bf16 %v7817_v0, %v7810_v50  ;;  %v5108_v3 = vpack.i.bf16 %v7817_v0, %v3185_v42 }
 0x5b2   : > { %5104 = vrot.lane.b32.xlu1 %v5103_v27, %s8767_s27  ;;  %5109 = vrot.lane.b32.xlu0 %v5108_v3, %s8768_s18 }
 0x5b6   : > { %5114 = vrot.lane.b32.xlu1 %v5113_v20, %s8768_s18  ;;  %5119 = vrot.lane.b32.xlu0 %v5113_v20, %s8765_s17 }
 0x5ba   : > { %5124 = vrot.lane.b32.xlu1 %v5123_v6, %s8767_s27  ;;  %5129 = vrot.lane.b32.xlu0 %v5128_v40, %s8768_s18  ;;  %s8945_s27 = smov 79   ;;  %s8948_s18 = smov 127  }
 0x5be   : > { %5139 = vrot.lane.b32.xlu1 %v5128_v40, %s8765_s17  ;;  %5134 = vrot.lane.b32.xlu0 %v5098_v22, %s8765_s17 }
 0x5c2   : > { %5144 = vrot.lane.b32.xlu1 %v5108_v3, %s8765_s17  ;;  %5149 = vrot.lane.b32.xlu0 %v5148_v13, %s8764_s30  ;;  %s8943_s30 = smov 78   ;;  %s8944_s17 = smov 110  }
 0x5f1   : > { %v5075_v62 = vpop.permute.xlu0 %5074  ;;  %v5080_v47 = vpop.permute.xlu1 %5079 }
 0x5f2   : > { %v5077_v35 = vunpack.i.h.bf16 %v5075_v62  ;;  %v5076_v59 = vunpack.i.l.bf16 %v5075_v62  ;;  %v5082_v37 = vunpack.i.h.bf16 %v5080_v47  ;;  %v5081_v31 = vunpack.i.l.bf16 %v5080_v47 }
 0x5f4   : > { %v3301_v9 = vsel %vm8886_vm2, %v5076_v59, %v5077_v35  ;;  %v3229_v61 = vsel %vm8889_vm13, %v5081_v31, %v5082_v37  ;;  %vm8893_vm2 = vcmp.eq.s32.totalorder %v8892_v36, 2  ;;  %vm8901_vm13 = vcmp.eq.s32.totalorder %v8892_v36, 1 }
 0x5f5   : > { %v3326_v1 = vsel %vm8891_vm1, %v3301_v9, %v3182_v11  ;;  %vm8899_vm1 = vmmov %vm8894_vm0 }
 0x5f9   : > { %v7851_v10 = vpop.permute.xlu0 %5084  ;;  %v7853_v7 = vpop.permute.xlu1 %5089 }
 0x5fa   : > { %v5092_v44 = vunpack.i.h.bf16 %v7853_v7 }
 0x5fd   : > { %v7855_v28 = vpop.permute.xlu0 %5094 }
 0x620   : > { %v5100_v19 = vpop.permute.xlu1 %5099 }
 0x621   : > { %v5101_v33 = vunpack.i.l.bf16 %v5100_v19  ;;  %v5102_v21 = vunpack.i.h.bf16 %v5100_v19 }
 0x623   : > { %v3302_v52 = vsel %vm8888_vm3, %v5077_v35, %v5101_v33  ;;  %vm8897_vm3 = vmmov %vm8894_vm0 }
 0x624   : > { %v5105_v45 = vpop.permute.xlu1 %5104  ;;  %v5110_v5 = vpop.permute.xlu0 %5109 }
 0x625   : > { %v5106_v56 = vunpack.i.l.bf16 %v5105_v45  ;;  %v5112_v29 = vunpack.i.h.bf16 %v5110_v5  ;;  %v5111_v49 = vunpack.i.l.bf16 %v5110_v5  ;;  %v5107_v39 = vunpack.i.h.bf16 %v5105_v45 }
 0x627   : > { %v3321_v12 = vsel %vm8887_vm5, %v5106_v56, %v5076_v59  ;;  %v3304_v14 = vsel %vm8894_vm0, %v5111_v49, %v5112_v29  ;;  %vm8896_vm5 = vcmp.eq.s32.totalorder %v8895_v26, 2  ;;  %v3322_v23 = vsel %vm8897_vm3, %v5107_v39, %v5102_v21 }
 0x628   : > { %v7857_v46 = vpop.permute.xlu1 %5114  ;;  %v7859_v4 = vpop.permute.xlu0 %5119  ;;  %v3325_v60 = vsel %vm8893_vm2, %v3321_v12, %v7769_v2  ;;  %v3327_v57 = vsel %vm8896_vm5, %v3302_v52, %v7810_v50  ;;  %v3303_v20 = vsel %vm8899_vm1, %v5102_v21, %v5111_v49  ;;  %vm8900_vm0 = vmmov %vm8896_vm5  ;;  %vm8902_vm2 = vcmp.eq.s32.totalorder %v8890_v32, 1 }
 0x629   : > { %v3330_v2 = vsel %vm8900_vm0, %v3304_v14, %v7817_v0  ;;  %v7890_v50 = vsel %vm8901_vm13, %v3229_v61, %v3325_v60  ;;  %vm8903_vm5 = vmmov %vm8898_vm4  ;;  %vm8904_vm3 = vcmask 539648   ;;  %vm8906_vm1 = vcmp.eq.s32.totalorder %v8895_v26, 1 }
 0x62a   : > { %vm8905_vm6 = vmmov %vm8904_vm3  ;;  %vm8908_vm13 = vcmp.eq.s32.totalorder %v8892_v36, 2  ;;  %v5116_v29 = vunpack.i.l.bf16 %v7857_v46  ;;  %v5087_v39 = vunpack.i.h.bf16 %v7851_v10 }
 0x62b   : > { %vm8907_vm0 = vmmov %vm8906_vm1  ;;  %v3328_v5 = vsel %vm8908_vm13, %v3322_v23, %v7805_v54  ;;  %v5117_v23 = vunpack.i.h.bf16 %v7857_v46 }
 0x62c   : > { %v7861_v53 = vpop.permute.xlu1 %5124  ;;  %v7863_v18 = vpop.permute.xlu0 %5129 }
 0x62d   : > { %v5126_v54 = vunpack.i.l.bf16 %v7861_v53  ;;  %v5132_v49 = vunpack.i.h.bf16 %v7863_v18  ;;  %v5131_v9 = vunpack.i.l.bf16 %v7863_v18  ;;  %v5096_v18 = vunpack.i.l.bf16 %v7855_v28 }
 0x630   : > { %v7867_v41 = vpop.permute.xlu1 %5139  ;;  %v5135_v25 = vpop.permute.xlu0 %5134 }
 0x631   : > { %v5136_v43 = vunpack.i.l.bf16 %v5135_v25  ;;  %v5137_v22 = vunpack.i.h.bf16 %v5135_v25  ;;  %v5142_v25 = vunpack.i.h.bf16 %v7867_v41 }
 0x633   : > { %v3230_v38 = vsel %vm8898_vm4, %v5082_v37, %v5136_v43  ;;  %v5086_v37 = vunpack.i.l.bf16 %v7851_v10 }
 0x634   : > { %v5145_v55 = vpop.permute.xlu1 %5144  ;;  %v5150_v15 = vpop.permute.xlu0 %5149  ;;  %v7894_v6 = vsel %vm8902_vm2, %v3230_v38, %v3326_v1  ;;  %vm8909_vm2 = vcmp.eq.s32.totalorder %v8890_v32, 2  ;;  %v5127_v1 = vunpack.i.h.bf16 %v7861_v53  ;;  %v5122_v53 = vunpack.i.h.bf16 %v7859_v4 }
 0x635   : > { %v5147_v48 = vunpack.i.h.bf16 %v5145_v55  ;;  %v5146_v27 = vunpack.i.l.bf16 %v5145_v55  ;;  %v5152_v11 = vunpack.i.h.bf16 %v5150_v15  ;;  %v5151_v3 = vunpack.i.l.bf16 %v5150_v15 }
 0x636   : > { %v5153_v45 = vpack.i.bf16 %v7894_v6, %v7890_v50  ;;  %v3329_v35 = vsel %vm8909_vm2, %v3303_v20, %v3185_v42  ;;  %v5091_v42 = vunpack.i.l.bf16 %v7853_v7  ;;  %v5121_v7 = vunpack.i.l.bf16 %v7859_v4 }
 0x637   : > { %v3231_v40 = vsel %vm8898_vm4, %v5137_v22, %v5146_v27  ;;  %v3232_v13 = vsel %vm8903_vm5, %v5146_v27, %v5147_v48  ;;  %v3262_v62 = vsel %vm8904_vm3, %v5147_v48, %v5152_v11  ;;  %v3261_v47 = vsel %vm8905_vm6, %v5136_v43, %v5151_v3 }
 0x638   : > { %v7902_v19 = vsel %vm8906_vm1, %v3261_v47, %v3327_v57  ;;  %v7906_v0 = vsel %vm8907_vm0, %v3262_v62, %v3330_v2  ;;  %vm8910_vm6 = vcmp.eq.s32.totalorder %v8892_v36, 1  ;;  %5154 = vrot.lane.b32.xlu0 %v5153_v45, %s8762_s11  ;;  %vm8911_vm4 = vcmp.eq.s32.totalorder %v8890_v32, 1  ;;  %vm8916_vm0 = vmmov %vm8908_vm13 }
 0x639   : > { %v5163_v59 = vpack.i.bf16 %v7906_v0, %v7902_v19  ;;  %v7921_v56 = vsel %vm8910_vm6, %v3231_v40, %v3328_v5  ;;  %v7926_v33 = vsel %vm8911_vm4, %v3232_v13, %v3329_v35  ;;  %vm8913_vm5 = vcmask 15360  }
 0x63a   : > { %v5168_v31 = vpack.i.bf16 %v7926_v33, %v7921_v56  ;;  %v3323_v12 = vsel %vm8913_vm5, %v5126_v54, %v5086_v37  ;;  %v5178_v52 = vpack.i.bf16 %v7906_v0, %v7926_v33  ;;  %vm8914_vm3 = vcmask 1031168   ;;  %vm8915_vm1 = vmmov %vm8913_vm5 }
 0x63b   : > { %5164 = vrot.lane.b32.xlu1 %v5163_v59, %s8761_s15  ;;  %v3233_v21 = vsel %vm8914_vm3, %v5091_v42, %v5092_v44  ;;  %v5097_v43 = vunpack.i.h.bf16 %v7855_v28  ;;  %v5173_v10 = vpack.i.bf16 %v7921_v56, %v7902_v19  ;;  %v3306_v61 = vsel %vm8915_vm1, %v5087_v39, %v5116_v29  ;;  %vm8917_vm13 = vmmov %vm8915_vm1 }
 0x63c   : > { %5159 = vrot.lane.b32.xlu0 %v5153_v45, %s8912_s20  ;;  %v3331_v60 = vsel %vm8916_vm0, %v3323_v12, %v7785_v16  ;;  %v3308_v14 = vsel %vm8917_vm13, %v5131_v9, %v5132_v49  ;;  %vm8918_vm2 = vmmov %vm8915_vm1  ;;  %v5141_v28 = vunpack.i.l.bf16 %v7867_v41  ;;  %vm8919_vm6 = vcmask 539648  }
 0x63d   : > { %v3305_v57 = vsel %vm8918_vm2, %v5086_v37, %v5087_v39  ;;  %v3264_v22 = vsel %vm8919_vm6, %v5142_v25, %v5097_v43  ;;  %vm8920_vm4 = vmmov %vm8914_vm3  ;;  %v5188_v55 = vpack.i.bf16 %v7921_v56, %v7890_v50  ;;  %vm8922_vm3 = vcmp.eq.s32.totalorder %v8895_v26, 2 }
 0x63e   : > { %v3234_v38 = vsel %vm8920_vm4, %v5092_v44, %v5121_v7  ;;  %vm8921_vm5 = vmmov %vm8919_vm6  ;;  %v3333_v15 = vsel %vm8922_vm3, %v3306_v61, %v7820_v34  ;;  %vm8924_vm0 = vcmp.eq.s32.totalorder %v8892_v36, 1  ;;  %vm8925_vm13 = vcmp.eq.s32.totalorder %v8890_v32, 2 }
 0x63f   : > { %5169 = vrot.lane.b32.xlu1 %v5168_v31, %s8762_s11  ;;  %v3263_v16 = vsel %vm8921_vm5, %v5121_v7, %v5096_v18  ;;  %vm8923_vm1 = vmmov %vm8922_vm3  ;;  %v7976_v41 = vsel %vm8924_vm0, %v3233_v21, %v3331_v60  ;;  %v3332_v4 = vsel %vm8925_vm13, %v3305_v57, %v3188_v8  ;;  %v3324_v48 = vsel %vm8918_vm2, %v5127_v1, %v5117_v23 }
 0x640   : > { %5179 = vrot.lane.b32.xlu0 %v5178_v52, %s8912_s20  ;;  %v3336_v46 = vsel %vm8923_vm1, %v3308_v14, %v7831_v51  ;;  %vm8926_vm6 = vmmov %vm8918_vm2  ;;  %vm8927_vm4 = vcmp.eq.s32.totalorder %v8895_v26, 1  ;;  %vm8929_vm5 = vcmask 1031168   ;;  %vm8931_vm1 = vcmp.eq.s32.totalorder %v8890_v32, 1 }
 0x641   : > { %v3307_v27 = vsel %vm8926_vm6, %v5117_v23, %v5131_v9  ;;  %v7986_v34 = vsel %vm8927_vm4, %v3264_v22, %v3336_v46  ;;  %v3235_v51 = vsel %vm8929_vm5, %v5122_v53, %v5141_v28  ;;  %vm8930_vm3 = vmmov %vm8929_vm5  ;;  %v7994_v17 = vsel %vm8931_vm1, %v3234_v38, %v3332_v4 }
 0x642   : > { %v3236_v11 = vsel %vm8930_vm3, %v5141_v28, %v5142_v25  ;;  %vm8932_vm0 = vmmov %vm8927_vm4  ;;  %v5193_v3 = vpack.i.bf16 %v7994_v17, %v7976_v41  ;;  %vm8933_vm13 = vcmp.eq.s32.totalorder %v8892_v36, 2  ;;  %vm8934_vm2 = vcmp.eq.s32.totalorder %v8890_v32, 2 }
 0x643   : > { %5174 = vrot.lane.b32.xlu1 %v5173_v10, %s8912_s20  ;;  %v7998_v8 = vsel %vm8932_vm0, %v3263_v16, %v3333_v15  ;;  %v3334_v20 = vsel %vm8933_vm13, %v3324_v48, %v7791_v30  ;;  %v3335_v2 = vsel %vm8934_vm2, %v3307_v27, %v3191_v63  ;;  %vm8935_vm6 = vcmp.eq.s32.totalorder %v8892_v36, 1  ;;  %vm8936_vm4 = vmmov %vm8931_vm1 }
 0x644   : > { %5189 = vrot.lane.b32.xlu0 %v5188_v55, %s8928_s21  ;;  %v5203_v40 = vpack.i.bf16 %v7986_v34, %v7998_v8  ;;  %v8013_v13 = vsel %vm8935_vm6, %v3235_v51, %v3334_v20  ;;  %v8018_v62 = vsel %vm8936_vm4, %v3236_v11, %v3335_v2  ;;  %vm8937_vm5 = vcmp.eq.s32.totalorder %v8895_v26, 3 }
 0x645   : > { %v5208_v30 = vpack.i.bf16 %v8018_v62, %v8013_v13  ;;  %v5218_v58 = vpack.i.bf16 %v7986_v34, %v8018_v62  ;;  %v5213_v63 = vpack.i.bf16 %v8013_v13, %v7998_v8  ;;  %v5228_v47 = vpack.i.bf16 %v8013_v13, %v7976_v41  ;;  %vm8938_vm3 = vmmov %vm8937_vm5 }
 0x646   : > { %vm8946_vm1 = vmmov %vm8938_vm3  ;;  %vm8949_vm13 = vcmask 908288   ;;  %vm8950_vm2 = vcmask 7168  }
 0x647   : > { %5184 = vrot.lane.b32.xlu1 %v5163_v59, %s8762_s11  ;;  %vm8947_vm0 = vmmov %vm8946_vm1 }
 0x648   : > { %5194 = vrot.lane.b32.xlu0 %v5193_v3, %s8762_s11  ;;  %vm8951_vm6 = vmmov %vm8950_vm2 }
 0x649   : > { %vm8952_vm4 = vmmov %vm8950_vm2 }
 0x64b   : > { %5204 = vrot.lane.b32.xlu1 %v5203_v40, %s8761_s15  ;;  %s8941_s15 = smov 18  }
 0x64c   : > { %5199 = vrot.lane.b32.xlu0 %v5193_v3, %s8912_s20 }
 0x64f   : > { %5209 = vrot.lane.b32.xlu1 %v5208_v30, %s8762_s11 }
 0x650   : > { %5219 = vrot.lane.b32.xlu0 %v5218_v58, %s8912_s20 }
 0x653   : > { %5214 = vrot.lane.b32.xlu1 %v5213_v63, %s8912_s20 }
 0x654   : > { %5229 = vrot.lane.b32.xlu0 %v5228_v47, %s8928_s21 }
 0x657   : > { %5224 = vrot.lane.b32.xlu1 %v5203_v40, %s8762_s11  ;;  %s8942_s11 = smov 19  }
 0x6aa   : > { %v5155_v45 = vpop.permute.xlu0 %5154 }
 0x6ab   : > { %v5156_v59 = vunpack.i.l.bf16 %v5155_v45  ;;  %v5157_v54 = vunpack.i.h.bf16 %v5155_v45 }
 0x6ad   : > { %v5165_v5 = vpop.permute.xlu1 %5164  ;;  %v3457_v12 = vsel %vm2150_vm11, %v5156_v59, %v5157_v54 }
 0x6ae   : > { %v5166_v35 = vunpack.i.l.bf16 %v5165_v5  ;;  %v5160_v44 = vpop.permute.xlu0 %5159  ;;  %v5167_v39 = vunpack.i.h.bf16 %v5165_v5 }
 0x6af   : > { %v5162_v37 = vunpack.i.h.bf16 %v5160_v44  ;;  %v5161_v31 = vunpack.i.l.bf16 %v5160_v44 }
 0x6b0   : > { %v3477_v42 = vsel %vm2150_vm11, %v5166_v35, %v5156_v59 }
 0x6b1   : > { %v5170_v29 = vpop.permute.xlu1 %5169  ;;  %v3481_v25 = vsel %vm2075_vm8, %v3477_v42, %v7890_v50  ;;  %v3385_v7 = vsel %vm2001_vm9, %v5161_v31, %v5162_v37  ;;  %v3482_v50 = vsel %vm2076_vm7, %v3457_v12, %v7894_v6 }
 0x6b2   : > { %v5172_v49 = vunpack.i.h.bf16 %v5170_v29  ;;  %v5171_v9 = vunpack.i.l.bf16 %v5170_v29  ;;  %v5180_v21 = vpop.permute.xlu0 %5179  ;;  %v3493_v57 = vsel %vm8772_vm12, %v3385_v7, %v3481_v25 }
 0x6b3   : > { %v5182_v10 = vunpack.i.h.bf16 %v5180_v21  ;;  %v5181_v61 = vunpack.i.l.bf16 %v5180_v21 }
 0x6b4   : > { %v3459_v52 = vsel %vm2150_vm11, %v5171_v9, %v5172_v49  ;;  %v3478_v43 = vsel %vm2150_vm11, %v5167_v39, %v5171_v9 }
 0x6b5   : > { %v3485_v18 = vsel %vm2076_vm7, %v3459_v52, %v7926_v33  ;;  %v5175_v1 = vpop.permute.xlu1 %5174  ;;  %v3388_v23 = vsel %vm2001_vm9, %v5181_v61, %v5182_v10  ;;  %v3484_v28 = vsel %vm2075_vm8, %v3478_v43, %v7921_v56 }
 0x6b6   : > { %v5177_v60 = vunpack.i.h.bf16 %v5175_v1  ;;  %v5176_v14 = vunpack.i.l.bf16 %v5175_v1  ;;  %v3497_v33 = vsel %vm1927_vm10, %v3388_v23, %v3485_v18  ;;  %v5190_v38 = vpop.permute.xlu0 %5189 }
 0x6b7   : > { %v5192_v55 = vunpack.i.h.bf16 %v5190_v38  ;;  %v5191_v15 = vunpack.i.l.bf16 %v5190_v38 }
 0x6b8   : > { %v3386_v22 = vsel %vm2001_vm9, %v5162_v37, %v5176_v14  ;;  %v3387_v53 = vsel %vm2001_vm9, %v5177_v60, %v5181_v61 }
 0x6b9   : > { %v3494_v6 = vsel %vm1927_vm10, %v3386_v22, %v3482_v50  ;;  %v3496_v16 = vsel %vm8772_vm12, %v3387_v53, %v3484_v28  ;;  %v5185_v46 = vpop.permute.xlu1 %5184  ;;  %v3417_v3 = vsel %vm2066_vm14, %v5176_v14, %v5191_v15  ;;  %v3418_v20 = vsel %vm2066_vm14, %v5182_v10, %v5192_v55 }
 0x6ba   : > { %v8063_v4 = vpack.c.bf16 %v3496_v16, %v3493_v57  ;;  %v8065_v56 = vpack.c.bf16 %v3497_v33, %v3494_v6  ;;  %v5187_v48 = vunpack.i.h.bf16 %v5185_v46  ;;  %v5186_v27 = vunpack.i.l.bf16 %v5185_v46 }
 0x6bc   : > { %v3458_v51 = vsel %vm2150_vm11, %v5157_v54, %v5186_v27  ;;  %v3460_v11 = vsel %vm2150_vm11, %v5172_v49, %v5187_v48  ;;  %3617 = vrot.lane.b32.xlu0 %v8063_v4, %s8770_s24  ;;  %3619 = vrot.lane.b32.xlu1 %v8065_v56, %s8770_s24 }
 0x6bd   : > { %v3483_v2 = vsel %vm2077_vm15, %v3458_v51, %v7902_v19  ;;  %v3486_v40 = vsel %vm2077_vm15, %v3460_v11, %v7906_v0  ;;  %v5205_v19 = vpop.permute.xlu1 %5204  ;;  %v5195_v0 = vpop.permute.xlu0 %5194 }
 0x6be   : > { %v3495_v30 = vsel %vm8937_vm5, %v3417_v3, %v3483_v2  ;;  %v3498_v58 = vsel %vm8938_vm3, %v3418_v20, %v3486_v40  ;;  %v5206_v59 = vunpack.i.l.bf16 %v5205_v19  ;;  %v5196_v42 = vunpack.i.l.bf16 %v5195_v0  ;;  %vm8953_vm5 = vmmov %vm8950_vm2 }
 0x6bf   : > { %v8085_v63 = vpack.c.bf16 %v3498_v58, %v3495_v30  ;;  %v5207_v37 = vunpack.i.h.bf16 %v5205_v19  ;;  %v5197_v7 = vunpack.i.h.bf16 %v5195_v0  ;;  %v3777_v0 = vld [vmem:[%s8662_s7] sm:$0xff]  ;;  %vm8954_vm3 = vcmask 138240  }
 0x6c0   : > { %3587 = vrot.lane.b32.xlu1 %v8065_v56, %s8939_s25  ;;  %v3479_v12 = vsel %vm2150_vm11, %v5206_v59, %v5196_v42 }
 0x6c1   : > { %3613 = vrot.lane.b32.xlu0 %v8085_v63, %s8940_s26  ;;  %v5210_v47 = vpop.permute.xlu1 %5209  ;;  %v5200_v45 = vpop.permute.xlu0 %5199  ;;  %v3487_v10 = vsel %vm2075_vm8, %v3479_v12, %v7976_v41  ;;  %v3461_v16 = vsel %vm2150_vm11, %v5196_v42, %v5197_v7 }
 0x6c2   : > { %v5211_v44 = vunpack.i.l.bf16 %v5210_v47  ;;  %v5202_v29 = vunpack.i.h.bf16 %v5200_v45  ;;  %v5201_v49 = vunpack.i.l.bf16 %v5200_v45  ;;  %v5212_v52 = vunpack.i.h.bf16 %v5210_v47  ;;  %v3778_v45 = vld [vmem:[%s8662_s7 + $0x8] sm:$0xff] }
 0x6c3   : > { %v3488_v48 = vsel %vm2076_vm7, %v3461_v16, %v7994_v17  ;;  %v8248_v17 = vld [vmem:[%s8661_s6 + $0x4] ss:$12 sps:$4 sm:$0xff]  }
 0x6c4   : > { %3555 = vrot.lane.b32.xlu1 %v8065_v56, %s8941_s15  ;;  %v3480_v21 = vsel %vm2150_vm11, %v5207_v37, %v5211_v44  ;;  %v3389_v61 = vsel %vm2001_vm9, %v5201_v49, %v5202_v29  ;;  %v3463_v55 = vsel %vm2150_vm11, %v5211_v44, %v5212_v52  ;;  %3839 = vmatprep.mubr.bf16.mxu0 %v8248_v17 }
 0x6c5   : > { %3585 = vrot.lane.b32.xlu0 %v8063_v4, %s8939_s25  ;;  %v5215_v5 = vpop.permute.xlu1 %5214  ;;  %v5220_v35 = vpop.permute.xlu0 %5219  ;;  %v3490_v14 = vsel %vm2075_vm8, %v3480_v21, %v8013_v13  ;;  %v3499_v13 = vsel %vm8772_vm12, %v3389_v61, %v3487_v10  ;;  %v3491_v27 = vsel %vm2076_vm7, %v3463_v55, %v8018_v62 }
 0x6c6   : > { %v5217_v31 = vunpack.i.h.bf16 %v5215_v5  ;;  %v5221_v25 = vunpack.i.l.bf16 %v5220_v35  ;;  %v5216_v50 = vunpack.i.l.bf16 %v5215_v5  ;;  %v5222_v41 = vunpack.i.h.bf16 %v5220_v35 }
 0x6c8   : > { %3745 = vrot.lane.b32.xlu1 %v8085_v63, %s8800_s16  ;;  %v3391_v18 = vsel %vm2001_vm9, %v5217_v31, %v5221_v25  ;;  %v3390_v15 = vsel %vm2001_vm9, %v5202_v29, %v5216_v50  ;;  %v3392_v51 = vsel %vm2001_vm9, %v5221_v25, %v5222_v41 }
 0x6c9   : > { %3581 = vrot.lane.b32.xlu0 %v8085_v63, %s8798_s29  ;;  %v5225_v54 = vpop.permute.xlu1 %5224  ;;  %v5230_v43 = vpop.permute.xlu0 %5229  ;;  %v3502_v28 = vsel %vm8772_vm12, %v3391_v18, %v3490_v14  ;;  %v3500_v11 = vsel %vm1927_vm10, %v3390_v15, %v3488_v48  ;;  %v3503_v3 = vsel %vm1927_vm10, %v3392_v51, %v3491_v27  ;;  %vm9020_vm12 = vcmp.eq.s32.totalorder %v8895_v26, 1 }
 0x6ca   : > { %v5227_v9 = vunpack.i.h.bf16 %v5225_v54  ;;  %v5226_v39 = vunpack.i.l.bf16 %v5225_v54  ;;  %v5232_v57 = vunpack.i.h.bf16 %v5230_v43  ;;  %v5231_v23 = vunpack.i.l.bf16 %v5230_v43 }
 0x6cb   : > { %v8157_v53 = vpack.c.bf16 %v3502_v28, %v3499_v13  ;;  %v8189_v20 = vpack.c.bf16 %v3503_v3, %v3500_v11 }
 0x6cc   : > { %3741 = vrot.lane.b32.xlu1 %v8063_v4, %s8800_s16  ;;  %v3462_v1 = vsel %vm2150_vm11, %v5197_v7, %v5226_v39  ;;  %v3464_v60 = vsel %vm2150_vm11, %v5212_v52, %v5227_v9  ;;  %v3419_v38 = vsel %vm2066_vm14, %v5216_v50, %v5231_v23  ;;  %v3420_v6 = vsel %vm2066_vm14, %v5222_v41, %v5232_v57 }
 0x6cd   : > { %3553 = vrot.lane.b32.xlu0 %v8063_v4, %s8941_s15  ;;  %v3489_v33 = vsel %vm2077_vm15, %v3462_v1, %v7998_v8  ;;  %v3492_v22 = vsel %vm2077_vm15, %v3464_v60, %v7986_v34 }
 0x6ce   : > { %v3501_v8 = vsel %vm8946_vm1, %v3419_v38, %v3489_v33  ;;  %v3504_v34 = vsel %vm8947_vm0, %v3420_v6, %v3492_v22  ;;  %vm8955_vm1 = vmmov %vm8954_vm3 }
 0x6cf   : > { %v8172_v46 = vpack.c.bf16 %v3504_v34, %v3501_v8  ;;  %vm8956_vm0 = vmmov %vm8955_vm1 }
 0x6d0   : > { %3523 = vrot.lane.b32.xlu1 %v8065_v56, %s8942_s11 }
 0x6d1   : > { %3549 = vrot.lane.b32.xlu0 %v8085_v63, %s8943_s30 }
 0x6d4   : > { %3621 = vrot.lane.b32.xlu1 %v8085_v63, %s8770_s24 }
 0x6d5   : > { %3743 = vrot.lane.b32.xlu0 %v8065_v56, %s8800_s16 }
 0x6d8   : > { %3711 = vrot.lane.b32.xlu1 %v8065_v56, %s8944_s17 }
 0x6d9   : > { %3521 = vrot.lane.b32.xlu0 %v8063_v4, %s8942_s11 }
 0x6dc   : > { %3709 = vrot.lane.b32.xlu1 %v8063_v4, %s8944_s17 }
 0x6dd   : > { %3513 = vrot.lane.b32.xlu0 %v8085_v63, %s8945_s27 }
 0x6e0   : > { %3589 = vrot.lane.b32.xlu1 %v8085_v63, %s8939_s25 }
 0x6e1   : > { %3713 = vrot.lane.b32.xlu0 %v8085_v63, %s8944_s17 }
 0x6e4   : > { %3679 = vrot.lane.b32.xlu1 %v8065_v56, %s8797_s12 }
 0x6e5   : > { %3729 = vrot.lane.b32.xlu0 %v8063_v4, %s8809_s23 }
 0x6e8   : > { %3677 = vrot.lane.b32.xlu1 %v8063_v4, %s8797_s12 }
 0x6e9   : > { %3681 = vrot.lane.b32.xlu0 %v8085_v63, %s8797_s12 }
 0x6ec   : > { %3557 = vrot.lane.b32.xlu1 %v8085_v63, %s8941_s15 }
 0x6ed   : > { %3697 = vrot.lane.b32.xlu0 %v8063_v4, %s8822_s19 }
 0x6f0   : > { %3623 = vrot.lane.b32.xlu1 %v8157_v53, %s8770_s24 }
 0x6f1   : > { %3649 = vrot.lane.b32.xlu0 %v8085_v63, %s8948_s18 }
 0x6f4   : > { %3615 = vrot.lane.b32.xlu1 %v8172_v46, %s8940_s26 }
 0x6f5   : > { %3665 = vrot.lane.b32.xlu0 %v8063_v4, %s8810_s22 }
 0x6f8   : > { %3591 = vrot.lane.b32.xlu1 %v8157_v53, %s8939_s25 }
 0x6f9   : > { %3625 = vrot.lane.b32.xlu0 %v8189_v20, %s8770_s24 }
 0x6fc   : > { %3583 = vrot.lane.b32.xlu1 %v8172_v46, %s8798_s29 }
 0x6fd   : > { %3593 = vrot.lane.b32.xlu0 %v8189_v20, %s8939_s25 }
 0x700   : > { %3559 = vrot.lane.b32.xlu1 %v8157_v53, %s8941_s15 }
 0x701   : > { %3561 = vrot.lane.b32.xlu0 %v8189_v20, %s8941_s15 }
 0x704   : > { %3551 = vrot.lane.b32.xlu1 %v8172_v46, %s8943_s30 }
 0x705   : > { %3749 = vrot.lane.b32.xlu0 %v8189_v20, %s8800_s16 }
 0x708   : > { %3751 = vrot.lane.b32.xlu1 %v8172_v46, %s8800_s16 }
 0x709   : > { %3527 = vrot.lane.b32.xlu0 %v8157_v53, %s8942_s11 }
 0x70c   : > { %3747 = vrot.lane.b32.xlu1 %v8157_v53, %s8800_s16 }
 0x70d   : > { %3515 = vrot.lane.b32.xlu0 %v8172_v46, %s8945_s27 }
 0x710   : > { %3529 = vrot.lane.b32.xlu1 %v8189_v20, %s8942_s11 }
 0x711   : > { %3719 = vrot.lane.b32.xlu0 %v8172_v46, %s8944_s17 }
 0x714   : > { %3731 = vrot.lane.b32.xlu1 %v8157_v53, %s8809_s23 }
 0x715   : > { %3715 = vrot.lane.b32.xlu0 %v8157_v53, %s8944_s17 }
 0x718   : > { %3627 = vrot.lane.b32.xlu1 %v8172_v46, %s8770_s24  ;;  %s9000_s24 = smov 66  }
 0x719   : > { %3699 = vrot.lane.b32.xlu0 %v8157_v53, %s8822_s19 }
 0x71c   : > { %3717 = vrot.lane.b32.xlu1 %v8189_v20, %s8944_s17 }
 0x71d   : > { %3595 = vrot.lane.b32.xlu0 %v8172_v46, %s8939_s25 }
 0x720   : > { %3687 = vrot.lane.b32.xlu1 %v8172_v46, %s8797_s12 }
 0x721   : > { %3683 = vrot.lane.b32.xlu0 %v8157_v53, %s8797_s12 }
 0x724   : > { %3685 = vrot.lane.b32.xlu1 %v8189_v20, %s8797_s12 }
 0x725   : > { %3667 = vrot.lane.b32.xlu0 %v8157_v53, %s8810_s22 }
 0x728   : > { %3655 = vrot.lane.b32.xlu1 %v8172_v46, %s8948_s18 }
 0x729   : > { %3563 = vrot.lane.b32.xlu0 %v8172_v46, %s8941_s15 }
 0x72c   : > { %3653 = vrot.lane.b32.xlu1 %v8189_v20, %s8948_s18 }
 0x72d   : > { %3651 = vrot.lane.b32.xlu0 %v8157_v53, %s8948_s18 }
 0x72e   : > { %v3618_v62 = vpop.permute.xlu0 %3617  ;;  %v8252_v2 = vpop.permute.xlu1 %3619 }
 0x72f   : > { %v3629_v33 = vsel %vm8952_vm4, %v3618_v62, %v8252_v2 }
 0x730   : > { %3647 = vrot.lane.b32.xlu1 %v8065_v56, %s8948_s18 }
 0x731   : > { %3531 = vrot.lane.b32.xlu0 %v8172_v46, %s8942_s11 }
 0x732   : > { %v8259_v40 = vpop.permute.xlu1 %3587 }
 0x733   : > { %v3614_v30 = vpop.permute.xlu0 %3613 }
 0x734   : > { %3645 = vrot.lane.b32.xlu1 %v8063_v4, %s8948_s18  ;;  %v3639_v13 = vsel %vm8953_vm5, %v3614_v30, %v3618_v62 }
 0x735   : > { %3525 = vrot.lane.b32.xlu0 %v8085_v63, %s8942_s11 }
 0x736   : > { %v8265_v58 = vpop.permute.xlu1 %3555 }
 0x737   : > { %v3586_v19 = vpop.permute.xlu0 %3585 }
 0x738   : > { %3763 = vrot.lane.b32.xlu1 %v8157_v53, %s8829_s28  ;;  %v3597_v55 = vsel %vm8956_vm0, %v3586_v19, %v8259_v40 }
 0x739   : > { %3761 = vrot.lane.b32.xlu0 %v8063_v4, %s8829_s28 }
 0x73a   : > { %v8274_v47 = vpop.permute.xlu1 %3745 }
 0x73b   : > { %v3582_v5 = vpop.permute.xlu0 %3581 }
 0x73c   : > { %3781 = vperm.xlu1 %4752, %v3777_v0  }
 0x73d   : > { %3786 = vperm.xlu0 %4751, %v3778_v45  }
 0x73e   : > { %v8279_v35 = vpop.permute.xlu1 %3741 }
 0x73f   : > { %v3554_v59 = vpop.permute.xlu0 %3553 }
 0x742   : > { %v8281_v54 = vpop.permute.xlu1 %3523 }
 0x743   : > { %v3550_v44 = vpop.permute.xlu0 %3549 }
 0x746   : > { %v8283_v42 = vpop.permute.xlu1 %3621 }
 0x747   : > { %v8285_v37 = vpop.permute.xlu0 %3743 }
 0x74a   : > { %v8287_v31 = vpop.permute.xlu1 %3711 }
 0x74b   : > { %v8289_v29 = vpop.permute.xlu0 %3521 }
 0x74e   : > { %v8291_v49 = vpop.permute.xlu1 %3709 }
 0x74f   : > { %v8293_v9 = vpop.permute.xlu0 %3513 }
 0x752   : > { %v8295_v39 = vpop.permute.xlu1 %3589 }
 0x753   : > { %v8297_v12 = vpop.permute.xlu0 %3713 }
 0x756   : > { %v8299_v25 = vpop.permute.xlu1 %3679 }
 0x757   : > { %v8301_v7 = vpop.permute.xlu0 %3729 }
 0x75a   : > { %v3678_v52 = vpop.permute.xlu1 %3677 }
 0x75b   : > { %v8305_v21 = vsel %vm8949_vm13, %v3678_v52, %v8299_v25  ;;  %v8307_v43 = vpop.permute.xlu0 %3681  ;;  %vm8957_vm13 = vmmov %vm8956_vm0 }
 0x75c   : > { %v3607_v48 = vsel %vm8957_vm13, %v3582_v5, %v3586_v19  ;;  %vm8965_vm13 = vcmask 154624  }
 0x75e   : > { %v8309_v18 = vpop.permute.xlu1 %3557 }
 0x75f   : > { %v8311_v10 = vpop.permute.xlu0 %3697 }
 0x762   : > { %v3624_v61 = vpop.permute.xlu1 %3623 }
 0x763   : > { %v8313_v1 = vpop.permute.xlu0 %3649 }
 0x766   : > { %v3616_v60 = vpop.permute.xlu1 %3615 }
 0x767   : > { %v8315_v14 = vpop.permute.xlu0 %3665  ;;  %v3643_v28 = vsel %vm8951_vm6, %v3616_v60, %v3624_v61  ;;  %vm8959_vm6 = vcmask 891904  }
 0x76a   : > { %v3592_v50 = vpop.permute.xlu1 %3591 }
 0x76b   : > { %v3626_v57 = vpop.permute.xlu0 %3625 }
 0x76c   : > { %v3631_v23 = vsel %vm8950_vm2, %v3624_v61, %v3626_v57  ;;  %vm8958_vm2 = vcmask 146432  }
 0x76d   : > { %3807 = vmatprep.subr.bf16.mxu0 %v3631_v23  ;;  %vm8960_vm4 = vmmov %vm8958_vm2 }
 0x76e   : > { %3808 = vmatpush1.bf16.msra.mxu0 %v3643_v28  ;;  %v3584_v41 = vpop.permute.xlu1 %3583  ;;  %vm8961_vm5 = vmmov %vm8958_vm2  ;;  %v8356_v28 = vld [vmem:[%s8661_s6 + $0x8] ss:$12 sps:$4 sm:$0xff]  }
 0x76f   : > { %v8321_v22 = vpop.permute.xlu0 %3593  ;;  %3809 = vmatprep.subr.bf16.mxu0 %v3629_v33  ;;  %v3611_v34 = vsel %vm8955_vm1, %v3584_v41, %v3592_v50  ;;  %v3565_v0 = vsel %vm8961_vm5, %v3554_v59, %v8265_v58  ;;  %vm8964_vm0 = vmmov %vm8958_vm2  ;;  %vm8969_vm5 = vcmask 408576  }
 0x770   : > { %v3599_v6 = vsel %vm8954_vm3, %v3592_v50, %v8321_v22  ;;  %vm8962_vm3 = vmmov %vm8959_vm6  ;;  %v3575_v52 = vsel %vm8964_vm0, %v3550_v44, %v3554_v59 }
 0x771   : > { %vm8963_vm1 = vmmov %vm8962_vm3 }
 0x772   : > { %3810 = vmatpush1.bf16.msra.mxu0 %v3639_v13  ;;  %v3560_v38 = vpop.permute.xlu1 %3559  ;;  %v3754_v5 = vsel %vm8963_vm1, %v8285_v37, %v8274_v47  ;;  %vm8972_vm0 = vmmov %vm8969_vm5 }
 0x773   : > { %v8326_v8 = vpop.permute.xlu0 %3561  ;;  %3811 = vmatprep.subr.bf16.mxu0 %v3599_v6 }
 0x774   : > { %v3567_v51 = vsel %vm8958_vm2, %v3560_v38, %v8326_v8  ;;  %vm8966_vm2 = vmmov %vm8963_vm1  ;;  %vm8971_vm1 = vcmask 7168  }
 0x775   : > { %v3753_v23 = vsel %vm8966_vm2, %v8279_v35, %v8285_v37  ;;  %vm8974_vm2 = vcmask 900096  }
 0x776   : > { %3812 = vmatpush1.bf16.msra.mxu0 %v3611_v34  ;;  %v3552_v16 = vpop.permute.xlu1 %3551  ;;  %v3735_v34 = vsel %vm8972_vm0, %v8297_v12, %v8301_v7 }
 0x777   : > { %v3750_v15 = vpop.permute.xlu0 %3749  ;;  %3813 = vmatprep.subr.bf16.mxu0 %v3597_v55  ;;  %v3579_v62 = vsel %vm8960_vm4, %v3552_v16, %v3560_v38 }
 0x77a   : > { %3814 = vmatpush1.bf16.msra.mxu0 %v3607_v48  ;;  %v8332_v27 = vpop.permute.xlu1 %3751 }
 0x77b   : > { %v3528_v11 = vpop.permute.xlu0 %3527  ;;  %3815 = vmatprep.subr.bf16.mxu0 %v3567_v51  ;;  %v3756_v3 = vsel %vm8959_vm6, %v3750_v15, %v8332_v27  ;;  %vm8967_vm6 = vmmov %vm8965_vm13 }
 0x77c   : > { %3862 = vmatprep.subr.bf16.mxu1 %v3756_v3  ;;  %vm8968_vm4 = vmmov %vm8967_vm6 }
 0x77d   : > { %v3533_v41 = vsel %vm8968_vm4, %v8289_v29, %v8281_v54 }
 0x77e   : > { %3816 = vmatpush1.bf16.msra.mxu0 %v3579_v62  ;;  %v3748_v30 = vpop.permute.xlu1 %3747 }
 0x77f   : > { %v3755_v19 = vsel %vm8962_vm3, %v3748_v30, %v3750_v15  ;;  %v3516_v45 = vpop.permute.xlu0 %3515  ;;  %3817 = vmatprep.subr.bf16.mxu0 %v3565_v0  ;;  %vm8970_vm3 = vmmov %vm8968_vm4 }
 0x780   : > { %3863 = vmatpush1.bf16.msra.mxu1 %v3755_v19  ;;  %v3547_v59 = vsel %vm8967_vm6, %v3516_v45, %v3528_v11  ;;  %v3543_v35 = vsel %vm8970_vm3, %v8293_v9, %v8289_v29  ;;  %vm8975_vm6 = vmmov %vm8974_vm2 }
 0x781   : > { %3864 = vmatprep.subr.bf16.mxu1 %v3754_v5  ;;  %vm8976_vm4 = vmmov %vm8974_vm2 }
 0x782   : > { %3818 = vmatpush1.bf16.msra.mxu0 %v3575_v52  ;;  %v8346_v61 = vpop.permute.xlu1 %3529  ;;  %v3722_v9 = vsel %vm8976_vm4, %v8287_v31, %v8297_v12  ;;  %vm8978_vm3 = vmmov %vm8974_vm2 }
 0x783   : > { %v3720_v60 = vpop.permute.xlu0 %3719  ;;  %v3535_v50 = vsel %vm8965_vm13, %v3528_v11, %v8346_v61  ;;  %vm8973_vm13 = vmmov %vm8971_vm1 }
 0x784   : > { %3819 = vmatprep.subr.bf16.mxu0 %v3535_v50  ;;  %3865 = vmatpush1.bf16.msra.mxu1 %v3753_v23 }
 0x786   : > { %3820 = vmatpush1.bf16.msra.mxu0 %v3547_v59  ;;  %v3732_v44 = vpop.permute.xlu1 %3731 }
 0x787   : > { %v3716_v33 = vpop.permute.xlu0 %3715  ;;  %3821 = vmatprep.subr.bf16.mxu0 %v3533_v41  ;;  %v3739_v13 = vsel %vm8969_vm5, %v3720_v60, %v3732_v44  ;;  %4495 = vmatmul.mubr.msk.bf16.vlgmr.msra.gmra.mxu1 %vm2066_vm14, %v8356_v28  ;;  %vm8977_vm5 = vcmask 416768  }
 0x788   : > { %4653 = vmatprep.subr.bf16.mxu1 %v3739_v13  ;;  %3925 = vmatprep.mubr.bf16.mxu1 %v8248_v17  ;;  %v3630_v17 = vsel %vm8973_vm13, %v8252_v2, %v8283_v42  ;;  %v3721_v2 = vsel %vm8978_vm3, %v8291_v49, %v8287_v31  ;;  %vm8980_vm0 = vmmov %vm8977_vm5  ;;  %vm8981_vm13 = vcmask 908288   ;;  %vm8986_vm3 = vcmask 146432  }
 0x789   : > { %v3703_v51 = vsel %vm8980_vm0, %v8307_v43, %v8311_v10  ;;  %vm8988_vm0 = vcmask 1039360  }
 0x78a   : > { %3822 = vmatpush1.bf16.msra.mxu0 %v3543_v35  ;;  %v3628_v37 = vpop.permute.xlu1 %3627 }
 0x78b   : > { %v3632_v38 = vsel %vm8971_vm1, %v3626_v57, %v3628_v37  ;;  %v3700_v6 = vpop.permute.xlu0 %3699  ;;  %vm8979_vm1 = vcmask 138240  }
 0x78c   : > { %4654 = vmatpush3.bf16.msra.mxu1 %v3632_v38 }
 0x78d   : > { %4655 = vmatprep.subr.bf16.mxu1 %v3735_v34 }
 0x78e   : > { %v3718_v16 = vpop.permute.xlu1 %3717 }
 0x78f   : > { %v3723_v55 = vsel %vm8974_vm2, %v3716_v33, %v3718_v16  ;;  %v3596_v15 = vpop.permute.xlu0 %3595  ;;  %v3724_v29 = vsel %vm8975_vm6, %v3718_v16, %v3720_v60  ;;  %vm8982_vm2 = vmmov %vm8981_vm13 }
 0x790   : > { %3823 = vmatprep.subr.bf16.mxu0 %v3724_v29  ;;  %4656 = vmatpush3.bf16.msra.mxu1 %v3630_v17  ;;  %v3600_v42 = vsel %vm8979_vm1, %v8321_v22, %v3596_v15  ;;  %vm8983_vm6 = vmmov %vm8979_vm1 }
 0x791   : > { %3824 = vmatpush2.bf16.msra.mxu0 %v3723_v55  ;;  %v3598_v31 = vsel %vm8983_vm6, %v8259_v40, %v8295_v39  ;;  %vm8984_vm4 = vmmov %vm8982_vm2 }
 0x792   : > { %3825 = vmatprep.subr.bf16.mxu0 %v3722_v9  ;;  %v3688_v7 = vpop.permute.xlu1 %3687  ;;  %v3690_v49 = vsel %vm8984_vm4, %v8299_v25, %v8307_v43  ;;  %vm8991_vm6 = vmmov %vm8988_vm0  ;;  %vm8992_vm4 = vcmask 154624  }
 0x793   : > { %v3684_v57 = vpop.permute.xlu0 %3683  ;;  %v3707_v48 = vsel %vm8977_vm5, %v3688_v7, %v3700_v6  ;;  %vm8985_vm5 = vcmask 547840  }
 0x794   : > { %4657 = vmatprep.subr.bf16.mxu1 %v3707_v48  ;;  %vm8987_vm1 = vmmov %vm8985_vm5 }
 0x795   : > { %3826 = vmatpush2.bf16.msra.mxu0 %v3721_v2  ;;  %4658 = vmatpush3.bf16.msra.mxu1 %v3600_v42  ;;  %v3671_v40 = vsel %vm8987_vm1, %v8313_v1, %v8315_v14  ;;  %vm8995_vm1 = vcmask 400384  }
 0x796   : > { %4659 = vmatprep.subr.bf16.mxu1 %v3703_v51  ;;  %v3686_v12 = vpop.permute.xlu1 %3685 }
 0x797   : > { %v3691_v11 = vsel %vm8981_vm13, %v3684_v57, %v3686_v12  ;;  %v3668_v3 = vpop.permute.xlu0 %3667  ;;  %v3692_v62 = vsel %vm8982_vm2, %v3686_v12, %v3688_v7  ;;  %vm8989_vm13 = vmmov %vm8986_vm3 }
 0x798   : > { %3827 = vmatprep.subr.bf16.mxu0 %v3692_v62  ;;  %v3566_v43 = vsel %vm8989_vm13, %v8265_v58, %v8309_v18  ;;  %vm8990_vm2 = vmmov %vm8988_vm0 }
 0x799   : > { %3828 = vmatpush2.bf16.msra.mxu0 %v3691_v11  ;;  %4660 = vmatpush3.bf16.msra.mxu1 %v3598_v31  ;;  %vm8996_vm13 = vmmov %vm8995_vm1 }
 0x79a   : > { %3829 = vmatprep.subr.bf16.mxu0 %v3690_v49  ;;  %v3656_v10 = vpop.permute.xlu1 %3655 }
 0x79b   : > { %v3564_v22 = vpop.permute.xlu0 %3563  ;;  %v3675_v30 = vsel %vm8985_vm5, %v3656_v10, %v3668_v3  ;;  %vm8993_vm5 = vmmov %vm8988_vm0 }
 0x79c   : > { %v3568_v0 = vsel %vm8986_vm3, %v8326_v8, %v3564_v22  ;;  %4661 = vmatprep.subr.bf16.mxu1 %v3675_v30  ;;  %vm8994_vm3 = vmmov %vm8992_vm4 }
 0x79d   : > { %3830 = vmatpush2.bf16.msra.mxu0 %v8305_v21  ;;  %4662 = vmatpush3.bf16.msra.mxu1 %v3568_v0 }
 0x79e   : > { %4663 = vmatprep.subr.bf16.mxu1 %v3671_v40  ;;  %v3654_v39 = vpop.permute.xlu1 %3653 }
 0x79f   : > { %v3652_v19 = vpop.permute.xlu0 %3651  ;;  %v3660_v25 = vsel %vm8988_vm0, %v3654_v39, %v3656_v10  ;;  %vm5415_vm0 = vmmov 0  }
 0x7a0   : > { %v3659_v45 = vsel %vm8990_vm2, %v3652_v19, %v3654_v39  ;;  %3831 = vmatprep.subr.bf16.mxu0 %v3660_v25  ;;  %vm9001_vm2 = vcmask 15360  }
 0x7a1   : > { %3832 = vmatpush2.bf16.msra.mxu0 %v3659_v45  ;;  %4664 = vmatpush3.bf16.msra.mxu1 %v3566_v43 }
 0x7a2   : > { %4665 = vmatprep.subr.bf16.mxu1 %v8172_v46  ;;  %v3648_v21 = vpop.permute.xlu1 %3647  ;;  %v5372_v46 = vld [vmem:[%s8661_s6] ss:$12 sps:$4 sm:$0xff]  }
 0x7a3   : > { %v3532_v8 = vpop.permute.xlu0 %3531  ;;  %v3658_v14 = vsel %vm8991_vm6, %v3648_v21, %v8313_v1  ;;  %vm9002_vm6 = vmmov %vm9001_vm2 }
 0x7a4   : > { %v3536_v5 = vsel %vm8992_vm4, %v8346_v61, %v3532_v8  ;;  %3833 = vmatprep.subr.bf16.mxu0 %v3658_v14  ;;  %v5414_v61 = vmov 0.0   ;;  %vm9003_vm4 = vcmp.eq.s32.totalorder %v8890_v32, 2 }
 0x7a5   : > { %4666 = vmatpush3.bf16.msra.mxu1 %v3536_v5 }
 0x7a6   : > { %4667 = vmatprep.subr.bf16.mxu1 %v8085_v63  ;;  %v3646_v58 = vpop.permute.xlu1 %3645 }
 0x7a7   : > { %v3657_v18 = vsel %vm8993_vm5, %v3646_v58, %v3648_v21  ;;  %v3526_v52 = vpop.permute.xlu0 %3525  ;;  %vm9004_vm5 = vcmp.eq.s32.totalorder %v8892_v36, 2 }
 0x7a8   : > { %v3534_v60 = vsel %vm8994_vm3, %v8281_v54, %v3526_v52  ;;  %3834 = vmatpush2.bf16.msra.mxu0 %v3657_v18  ;;  %vm9005_vm3 = vcmask 1031168  }
 0x7a9   : > { %3835 = vmatprep.subr.bf16.mxu0 %v8189_v20  ;;  %4668 = vmatpush3.bf16.msra.mxu1 %v3534_v60 }
 0x7aa   : > { %v3764_v1 = vpop.permute.xlu1 %3763  ;;  %4706 = vmatprep.subr.bf16.mxu1 %v5414_v61 }
 0x7ab   : > { %v3771_v63 = vsel %vm8995_vm1, %v8332_v27, %v3764_v1  ;;  %v3762_v50 = vpop.permute.xlu0 %3761  ;;  %vm9006_vm1 = vmmov %vm9005_vm3 }
 0x7ac   : > { %3836 = vmatpush2.bf16.msra.mxu0 %v8157_v53  ;;  %3926 = vmatmul.mubr.bf16.vlgmr.msra.gmra.mxu1 %v5372_v46  ;;  %v3767_v20 = vsel %vm8996_vm13, %v8274_v47, %v3762_v50  ;;  %vm9008_vm13 = vcmp.eq.s32.totalorder %v8890_v32, 1 }
 0x7ad   : > { %3837 = vmatprep.subr.bf16.mxu0 %v8065_v56  ;;  %4707 = vmatpush3.bf16.msra.mxu1 %v3771_v63 }
 0x7ae   : > { %4708 = vmatprep.subr.bf16.mxu1 %v5414_v61  ;;  %4710 = vmatprep.mubr.msk.bf16.mxu1 %vm5415_vm0, %v5414_v61  ;;  %vm9007_vm0 = vcmp.eq.s32.totalorder %v8892_v36, 1 }
 0x7b0   : > { %3838 = vmatpush2.bf16.msra.mxu0 %v8063_v4 }
 0x7b1   : > { %4709 = vmatpush3.bf16.msra.mxu1 %v3767_v20  ;;  %4329 = vmatprep.subr.bf16.mxu0 %v8857_v24 }
 0x7b3   : > { %3840 = vmatmul.mubr.bf16.vlgmr.msra.gmra.mxu0 %v5372_v46 }
 0x7b4   : > { %4711 = vmatmul.mubr.msk.bf16.vlgmr.msra.gmra.mxu1 %vm2066_vm14, %v8356_v28 }
 0x7b7   : > { %v3782_v13 = vpop.permute.xlu1 %3781 }
 0x7b8   : > { %v3787_v34 = vpop.permute.xlu0 %3786 }
 0x847   : > { %v3884_v53 = vpop.f32.mrf.mxu1 }
 0x849   : > { %v3886_v54 = vpop.f32.mrf.mxu1 }
 0x84b   : > { %v3888_v27 = vpop.f32.mrf.mxu1 }
 0x84d   : > { %v3890_v56 = vpop.f32.mrf.mxu1 }
 0x86c   : > { %v4669_v23 = vpop.f32.mrf.mxu1 }
 0x86e   : > { %v4670_v59 = vpop.f32.mrf.mxu1 }
 0x86f   : > { %v4671_v41 = vadd.f32 %v4670_v59, %v4669_v23 }
 0x870   : > { %v4672_v44 = vpop.f32.mrf.mxu1 }
 0x871   : > { %v3928_v38 = vadd.f32 %v4671_v41, %v3782_v13 }
 0x872   : > { %v4673_v33 = vpop.f32.mrf.mxu1 }
 0x873   : > { %v4674_v47 = vadd.f32 %v4673_v33, %v4672_v44  ;;  %v3841_v35 = vpop.f32.mrf.mxu0 }
 0x874   : > { %v3842_v4 = vadd.f32 %v3841_v35, %v3782_v13  ;;  %v3968_v37 = vpop.f32.mrf.mxu1 }
 0x875   : > { %v3843_v6 = vpop.f32.mrf.mxu0  ;;  %v3969_v55 = vadd.f32 %v3968_v37, %v3928_v38  ;;  %v3931_v29 = vadd.f32 %v4674_v47, %v3787_v34 }
 0x876   : > { %v3885_v16 = vadd.f32 %v3884_v53, %v3842_v4  ;;  %v3844_v17 = vadd.f32 %v3843_v6, %v3782_v13  ;;  %v4712_v28 = vpop.f32.mrf.mxu1 }
 0x877   : > { %v3845_v15 = vpop.f32.mrf.mxu0  ;;  %v3977_v62 = vmax.f32 %v3969_v55, 0.0 }
 0x878   : > { %v3887_v9 = vadd.f32 %v3886_v54, %v3844_v17  ;;  %v3846_v7 = vadd.f32 %v3845_v15, %v3787_v34  ;;  %v3971_v57 = vpop.f32.mrf.mxu1  ;;  %v3975_v42 = vmax.f32 %v3885_v16, 0.0 }
 0x879   : > { %v3972_v48 = vadd.f32 %v3971_v57, %v3931_v29  ;;  %v3847_v2 = vpop.f32.mrf.mxu0 }
 0x87a   : > { %v3976_v51 = vmax.f32 %v3887_v9, 0.0  ;;  %v3889_v12 = vadd.f32 %v3888_v27, %v3846_v7  ;;  %v3848_v11 = vadd.f32 %v3847_v2, %v3787_v34  ;;  %v4713_v3 = vpop.f32.mrf.mxu1 }
 0x87b   : > { %v3980_v31 = vmax.f32 %v3972_v48, 0.0 }
 0x87c   : > { %v8433_v49 = vmax.f32 %v3889_v12, 0.0  ;;  %v3891_v10 = vadd.f32 %v3890_v56, %v3848_v11  ;;  %v5238_v22 = vpack.i.bf16 %v3976_v51, %v3975_v42 }
 0x87d   : > { %v5233_v30 = vpack.i.bf16 %v3980_v31, %v3977_v62 }
 0x87e   : > { %5239 = vrot.lane.b32.xlu0 %v5238_v22, %s8997_s1  ;;  %v3979_v0 = vmax.f32 %v3891_v10, 0.0  ;;  %v5253_v40 = vpack.i.bf16 %v8433_v49, %v3977_v62  ;;  %v5268_v19 = vpack.i.bf16 %v8433_v49, %v3975_v42 }
 0x87f   : > { %5234 = vrot.lane.b32.xlu1 %v5233_v30, %s8998_s2  ;;  %s9025_s2 = smov 96  }
 0x880   : > { %v5258_v39 = vpack.i.bf16 %v3980_v31, %v3979_v0 }
 0x882   : > { %5254 = vrot.lane.b32.xlu0 %v5253_v40, %s8999_s0 }
 0x883   : > { %5244 = vrot.lane.b32.xlu1 %v5238_v22, %s8999_s0 }
 0x886   : > { %5259 = vrot.lane.b32.xlu0 %v5258_v39, %s8997_s1 }
 0x887   : > { %5249 = vrot.lane.b32.xlu1 %v5253_v40, %s8997_s1  ;;  %s9011_s1 = smov 36  }
 0x88a   : > { %5269 = vrot.lane.b32.xlu0 %v5268_v19, %s9000_s24 }
 0x88b   : > { %5264 = vrot.lane.b32.xlu1 %v5258_v39, %s8999_s0 }
 0x8f0   : > { %v5240_v25 = vpop.permute.xlu0 %5239 }
 0x8f1   : > { %v5242_v43 = vunpack.i.h.bf16 %v5240_v25  ;;  %v5241_v45 = vunpack.i.l.bf16 %v5240_v25  ;;  %v5235_v21 = vpop.permute.xlu1 %5234 }
 0x8f2   : > { %v5236_v8 = vunpack.i.l.bf16 %v5235_v21  ;;  %v5237_v4 = vunpack.i.h.bf16 %v5235_v21 }
 0x8f3   : > { %v4035_v5 = vsel %vm9001_vm2, %v5241_v45, %v5242_v43 }
 0x8f4   : > { %v5255_v14 = vpop.permute.xlu0 %5254  ;;  %v4045_v58 = vsel %vm9002_vm6, %v5236_v8, %v5241_v45  ;;  %v4048_v1 = vsel %vm9003_vm4, %v4035_v5, %v3976_v51  ;;  %vm9009_vm6 = vmmov %vm9001_vm2 }
 0x8f5   : > { %v5256_v18 = vunpack.i.l.bf16 %v5255_v14  ;;  %v5245_v52 = vpop.permute.xlu1 %5244  ;;  %v4047_v61 = vsel %vm9004_vm5, %v4045_v58, %v3975_v42  ;;  %vm9010_vm4 = vmmov %vm9001_vm2  ;;  %v5257_v6 = vunpack.i.h.bf16 %v5255_v14  ;;  %vm9012_vm5 = vcmp.eq.s32.totalorder %v8895_v26, 2 }
 0x8f6   : > { %v5247_v60 = vunpack.i.h.bf16 %v5245_v52  ;;  %v5246_v46 = vunpack.i.l.bf16 %v5245_v52 }
 0x8f8   : > { %v3999_v63 = vsel %vm9005_vm3, %v5246_v46, %v5247_v60  ;;  %v4000_v50 = vsel %vm9006_vm1, %v5247_v60, %v5256_v18  ;;  %v5260_v20 = vpop.permute.xlu0 %5259  ;;  %vm9013_vm3 = vmmov %vm9001_vm2 }
 0x8f9   : > { %v8455_v53 = vsel %vm9007_vm0, %v3999_v63, %v4047_v61  ;;  %v4054_v54 = vsel %vm9008_vm13, %v4000_v50, %v4048_v1  ;;  %v5262_v27 = vunpack.i.h.bf16 %v5260_v20  ;;  %v5261_v56 = vunpack.i.l.bf16 %v5260_v20  ;;  %v5250_v23 = vpop.permute.xlu1 %5249  ;;  %vm9014_vm1 = vmmov %vm9012_vm5 }
 0x8fa   : > { %v5252_v59 = vunpack.i.h.bf16 %v5250_v23  ;;  %v5251_v44 = vunpack.i.l.bf16 %v5250_v23  ;;  %v5273_v41 = vpack.i.bf16 %v4054_v54, %v8455_v53  ;;  %vm9015_vm0 = vcmp.eq.s32.totalorder %v8890_v32, 2 }
 0x8fb   : > { %v4038_v33 = vsel %vm9001_vm2, %v5261_v56, %v5262_v27  ;;  %vm9016_vm13 = vcmask 539648   ;;  %vm9017_vm2 = vcmask 1031168  }
 0x8fc   : > { %v4036_v13 = vsel %vm9009_vm6, %v5242_v43, %v5251_v44  ;;  %v4037_v47 = vsel %vm9010_vm4, %v5252_v59, %v5261_v56  ;;  %v5270_v35 = vpop.permute.xlu0 %5269  ;;  %5274 = vrot.lane.b32.xlu1 %v5273_v41, %s9011_s1  ;;  %v4052_v28 = vsel %vm9012_vm5, %v4038_v33, %v3980_v31  ;;  %v4046_v55 = vsel %vm9013_vm3, %v5237_v4, %v5252_v59  ;;  %vm9018_vm6 = vmmov %vm9017_vm2 }
 0x8fd   : > { %v5272_v37 = vunpack.i.h.bf16 %v5270_v35  ;;  %v5265_v38 = vpop.permute.xlu1 %5264  ;;  %v5271_v34 = vunpack.i.l.bf16 %v5270_v35  ;;  %v4049_v15 = vsel %vm9014_vm1, %v4036_v13, %v3977_v62  ;;  %v4051_v29 = vsel %vm9015_vm0, %v4037_v47, %v3979_v0  ;;  %vm9019_vm4 = vmmov %vm9016_vm13 }
 0x8fe   : > { %v5267_v16 = vunpack.i.h.bf16 %v5265_v38  ;;  %v5266_v17 = vunpack.i.l.bf16 %v5265_v38  ;;  %vm9021_vm5 = vcmp.eq.s32.totalorder %v8890_v32, 1  ;;  %vm9022_vm3 = vmmov %vm9020_vm12  ;;  %vm9023_vm1 = vcmp.eq.s32.totalorder %v8892_v36, 2 }
 0x8ff   : > { %v4015_v9 = vsel %vm9016_vm13, %v5256_v18, %v5271_v34  ;;  %v4050_v12 = vsel %vm9023_vm1, %v4046_v55, %v8433_v49  ;;  %vm9024_vm0 = vcmp.eq.s32.totalorder %v8892_v36, 1  ;;  %vm9034_vm13 = vcmask 908288  }
 0x900   : > { %v4001_v7 = vsel %vm9017_vm2, %v5257_v6, %v5266_v17  ;;  %v4002_v57 = vsel %vm9018_vm6, %v5266_v17, %v5267_v16  ;;  %v4016_v48 = vsel %vm9019_vm4, %v5267_v16, %v5272_v37  ;;  %v4055_v2 = vsel %vm9020_vm12, %v4015_v9, %v4049_v15  ;;  %vm9036_vm6 = vmmov %vm9034_vm13 }
 0x901   : > { %v4057_v42 = vsel %vm9021_vm5, %v4002_v57, %v4051_v29  ;;  %v4058_v51 = vsel %vm9022_vm3, %v4016_v48, %v4052_v28  ;;  %v5278_v11 = vpack.i.bf16 %v4055_v2, %v4054_v54  ;;  %v4056_v62 = vsel %vm9024_vm0, %v4001_v7, %v4050_v12 }
 0x902   : > { %v5293_v3 = vpack.i.bf16 %v4058_v51, %v4057_v42  ;;  %v5283_v31 = vpack.i.bf16 %v4056_v62, %v4055_v2  ;;  %v5288_v10 = vpack.i.bf16 %v4056_v62, %v8455_v53  ;;  %v5303_v22 = vpack.i.bf16 %v4058_v51, %v4055_v2 }
 0x903   : > { %5279 = vrot.lane.b32.xlu0 %v5278_v11, %s8912_s20  ;;  %vm9035_vm2 = vcmask 416768   ;;  %vm9037_vm4 = vcmask 1039360   ;;  %vm9038_vm5 = vcmask 547840   ;;  %vm9040_vm1 = vcmask 7168  }
 0x904   : > { %5294 = vrot.lane.b32.xlu1 %v5293_v3, %s9011_s1  ;;  %vm9039_vm3 = vmmov %vm9037_vm4 }
 0x905   : > { %vm9041_vm0 = vmmov %vm9040_vm1 }
 0x907   : > { %5284 = vrot.lane.b32.xlu0 %v5283_v31, %s9011_s1 }
 0x908   : > { %5299 = vrot.lane.b32.xlu1 %v5293_v3, %s8912_s20 }
 0x90b   : > { %5289 = vrot.lane.b32.xlu0 %v5288_v10, %s8928_s21 }
 0x90c   : > { %5304 = vrot.lane.b32.xlu1 %v5303_v22, %s9025_s2 }
 0x90f   : > { %5309 = vrot.lane.b32.xlu0 %v5288_v10, %s8912_s20 }
 0x96e   : > { %v5275_v49 = vpop.permute.xlu1 %5274 }
 0x96f   : > { %v5277_v30 = vunpack.i.h.bf16 %v5275_v49  ;;  %v5276_v0 = vunpack.i.l.bf16 %v5275_v49 }
 0x971   : > { %v4113_v43 = vsel %vm2150_vm11, %v5276_v0, %v5277_v30 }
 0x972   : > { %v4126_v46 = vsel %vm2076_vm7, %v4113_v43, %v4054_v54 }
 0x975   : > { %v5280_v40 = vpop.permute.xlu0 %5279 }
 0x976   : > { %v5295_v39 = vpop.permute.xlu1 %5294  ;;  %v5282_v19 = vunpack.i.h.bf16 %v5280_v40  ;;  %v5281_v25 = vunpack.i.l.bf16 %v5280_v40 }
 0x977   : > { %v5297_v21 = vunpack.i.h.bf16 %v5295_v39  ;;  %v5296_v8 = vunpack.i.l.bf16 %v5295_v39 }
 0x978   : > { %v4078_v45 = vsel %vm2001_vm9, %v5281_v25, %v5282_v19 }
 0x979   : > { %v5285_v14 = vpop.permute.xlu0 %5284  ;;  %v4132_v63 = vsel %vm1927_vm10, %v4078_v45, %v4126_v46  ;;  %v4116_v50 = vsel %vm2150_vm11, %v5296_v8, %v5297_v21 }
 0x97a   : > { %v5300_v5 = vpop.permute.xlu1 %5299  ;;  %v5287_v58 = vunpack.i.h.bf16 %v5285_v14  ;;  %v5286_v18 = vunpack.i.l.bf16 %v5285_v14  ;;  %v4130_v47 = vsel %vm2077_vm15, %v4116_v50, %v4058_v51 }
 0x97b   : > { %v5302_v52 = vunpack.i.h.bf16 %v5300_v5  ;;  %v5301_v60 = vunpack.i.l.bf16 %v5300_v5 }
 0x97c   : > { %v4115_v1 = vsel %vm2150_vm11, %v5287_v58, %v5296_v8  ;;  %v4114_v20 = vsel %vm2150_vm11, %v5277_v30, %v5286_v18 }
 0x97d   : > { %v4080_v61 = vsel %vm2001_vm9, %v5301_v60, %v5302_v52  ;;  %v4129_v27 = vsel %vm2076_vm7, %v4115_v1, %v4057_v42  ;;  %v5290_v56 = vpop.permute.xlu0 %5289  ;;  %v4127_v35 = vsel %vm2077_vm15, %v4114_v20, %v4055_v2  ;;  %vm9026_vm7 = vcmp.eq.s32.totalorder %v8895_v26, 3  ;;  %v4272_v2 = vld [vmem:[%s8664_s9] sm:$0xff] }
 0x97e   : > { %v5305_v23 = vpop.permute.xlu1 %5304  ;;  %v4135_v59 = vsel %vm1927_vm10, %v4080_v61, %v4129_v27  ;;  %v5292_v54 = vunpack.i.h.bf16 %v5290_v56  ;;  %v5291_v44 = vunpack.i.l.bf16 %v5290_v56  ;;  %vm9027_vm10 = vmmov %vm9026_vm7 }
 0x97f   : > { %v5307_v41 = vunpack.i.h.bf16 %v5305_v23  ;;  %v8508_v33 = vpack.c.bf16 %v4135_v59, %v4132_v63  ;;  %v5306_v13 = vunpack.i.l.bf16 %v5305_v23 }
 0x980   : > { %v4093_v4 = vsel %vm2066_vm14, %v5282_v19, %v5291_v44  ;;  %v4094_v37 = vsel %vm2066_vm14, %v5302_v52, %v5292_v54  ;;  %vm9032_vm14 = vcmask 408576  }
 0x981   : > { %v4133_v32 = vsel %vm9026_vm7, %v4093_v4, %v4127_v35  ;;  %v4136_v38 = vsel %vm9027_vm10, %v4094_v37, %v4130_v47  ;;  %v4124_v6 = vsel %vm2150_vm11, %v5307_v41, %v5287_v58  ;;  %v4123_v34 = vsel %vm2150_vm11, %v5306_v13, %v5276_v0  ;;  %v5310_v16 = vpop.permute.xlu0 %5309  ;;  %4241 = vrot.lane.b32.xlu1 %v8508_v33, %s8944_s17  ;;  %vm9042_vm7 = vmmov %vm9041_vm0 }
 0x982   : > { %v8524_v17 = vpack.c.bf16 %v4136_v38, %v4133_v32  ;;  %v5312_v28 = vunpack.i.h.bf16 %v5310_v16  ;;  %v5311_v55 = vunpack.i.l.bf16 %v5310_v16  ;;  %v4128_v15 = vsel %vm2075_vm8, %v4124_v6, %v4056_v62 }
 0x983   : > { %v4125_v26 = vsel %vm2075_vm8, %v4123_v34, %v8455_v53  ;;  %vm9028_vm11 = vcmp.eq.s32.totalorder %v8892_v36, 3  ;;  %v8592_v36 = vld [vmem:[%s8663_s8] sm:$0xff]  ;;  %vm4284_vm8 = vcmask 130048   ;;  %vm9043_vm10 = vcmask 138240  }
 0x984   : > { %v4077_v29 = vsel %vm2001_vm9, %v5311_v55, %v5281_v25  ;;  %v4079_v9 = vsel %vm2001_vm9, %v5312_v28, %v5301_v60  ;;  %4243 = vrot.lane.b32.xlu0 %v8524_v17, %s8944_s17  ;;  %vm9029_vm12 = vmmov %vm9028_vm11  ;;  %v4498_v53 = vcombine.high %v8592_v36, %v8592_v36  ;;  %vm9031_vm9 = vcmask 900096  }
 0x985   : > { %v4131_v7 = vsel %vm9028_vm11, %v4077_v29, %v4125_v26  ;;  %v4134_v57 = vsel %vm9029_vm12, %v4079_v9, %v4128_v15  ;;  %vm9033_vm15 = vmmov %vm9031_vm9  ;;  %v4497_v9 = vcombine.low %v8592_v36, %v8592_v36 }
 0x986   : > { %v8539_v48 = vpack.c.bf16 %v4134_v57, %v4131_v7  ;;  %4499 = vmatprep.mubr.msk.bf16.mxu1 %vm4284_vm8, %v4498_v53  ;;  %4500 = vmatprep.mubr.msk.bf16.mxu0 %vm4284_vm8, %v4498_v53  ;;  %vm9044_vm11 = vmmov %vm9043_vm10  ;;  %vm9046_vm8 = vcmask 146432  }
 0x987   : > { %vm9045_vm12 = vmmov %vm9043_vm10 }
 0x988   : > { %4249 = vrot.lane.b32.xlu0 %v8539_v48, %s8809_s23  ;;  %4239 = vrot.lane.b32.xlu1 %v8539_v48, %s8944_s17  ;;  %s9030_s23 = smov 1  }
 0x98c   : > { %4227 = vrot.lane.b32.xlu0 %v8524_v17, %s8797_s12  ;;  %4225 = vrot.lane.b32.xlu1 %v8508_v33, %s8797_s12 }
 0x990   : > { %4233 = vrot.lane.b32.xlu0 %v8539_v48, %s8822_s19  ;;  %4223 = vrot.lane.b32.xlu1 %v8539_v48, %s8797_s12 }
 0x994   : > { %4211 = vrot.lane.b32.xlu0 %v8524_v17, %s8948_s18  ;;  %4209 = vrot.lane.b32.xlu1 %v8508_v33, %s8948_s18 }
 0x998   : > { %4217 = vrot.lane.b32.xlu0 %v8539_v48, %s8810_s22  ;;  %4207 = vrot.lane.b32.xlu1 %v8539_v48, %s8948_s18 }
 0x99c   : > { %4195 = vrot.lane.b32.xlu0 %v8508_v33, %s9030_s23  ;;  %4193 = vrot.lane.b32.xlu1 %v8539_v48, %s9030_s23 }
 0x9a0   : > { %4197 = vrot.lane.b32.xlu0 %v8524_v17, %s9030_s23  ;;  %4191 = vrot.lane.b32.xlu1 %v8524_v17, %s8940_s26 }
 0x9a4   : > { %4179 = vrot.lane.b32.xlu0 %v8508_v33, %s8939_s25  ;;  %4177 = vrot.lane.b32.xlu1 %v8539_v48, %s8939_s25 }
 0x9a8   : > { %4181 = vrot.lane.b32.xlu0 %v8524_v17, %s8939_s25  ;;  %4175 = vrot.lane.b32.xlu1 %v8524_v17, %s8798_s29 }
 0x9ac   : > { %4163 = vrot.lane.b32.xlu0 %v8508_v33, %s8941_s15  ;;  %4161 = vrot.lane.b32.xlu1 %v8539_v48, %s8941_s15 }
 0x9b0   : > { %4165 = vrot.lane.b32.xlu0 %v8524_v17, %s8941_s15  ;;  %4159 = vrot.lane.b32.xlu1 %v8524_v17, %s8943_s30 }
 0x9b4   : > { %4147 = vrot.lane.b32.xlu0 %v8508_v33, %s8942_s11  ;;  %4145 = vrot.lane.b32.xlu1 %v8539_v48, %s8942_s11 }
 0x9b8   : > { %4149 = vrot.lane.b32.xlu0 %v8524_v17, %s8942_s11  ;;  %4141 = vrot.lane.b32.xlu1 %v8524_v17, %s8945_s27  ;;  %s4715_s27 = smul.u32 24, %s9056_s14 }
 0x9bc   : > { %4259 = vrot.lane.b32.xlu0 %v8524_v17, %s8800_s16  ;;  %4257 = vrot.lane.b32.xlu1 %v8508_v33, %s8800_s16 }
 0x9c0   : > { %4265 = vrot.lane.b32.xlu0 %v8539_v48, %s8829_s28  ;;  %4255 = vrot.lane.b32.xlu1 %v8539_v48, %s8800_s16  ;;  %s359_s16 = scalar_lea.vmem %s8665_s10, %s4715_s27 }
 0x9c4   : > { %4275 = vperm.xlu1 %4752, %v4272_v2  }
 0x9f3   : > { %v4242_v42 = vpop.permute.xlu1 %4241 }
 0x9f6   : > { %v4244_v51 = vpop.permute.xlu0 %4243 }
 0x9f7   : > { %v4246_v12 = vsel %vm9031_vm9, %v4242_v42, %v4244_v51  ;;  %vm9047_vm9 = vmmov %vm9046_vm8 }
 0x9f8   : > { %4288 = vmatprep.subr.bf16.mxu1 %v4246_v12 }
 0x9fa   : > { %v4250_v11 = vpop.permute.xlu0 %4249  ;;  %v4240_v3 = vpop.permute.xlu1 %4239 }
 0x9fb   : > { %v4253_v62 = vsel %vm9032_vm14, %v4244_v51, %v4250_v11  ;;  %v4245_v31 = vsel %vm9033_vm15, %v4240_v3, %v4242_v42  ;;  %vm9048_vm14 = vmmov %vm9046_vm8  ;;  %vm9049_vm15 = vcmask 154624  }
 0x9fc   : > { %4289 = vmatpush1.bf16.msra.mxu1 %v4245_v31  ;;  %4330 = vmatpush1.bf16.msra.mxu0 %v4253_v62 }
 0x9fd   : > { %4331 = vmatprep.subr.bf16.mxu0 %v8857_v24 }
 0x9fe   : > { %v4228_v10 = vpop.permute.xlu0 %4227  ;;  %v4226_v22 = vpop.permute.xlu1 %4225 }
 0x9ff   : > { %v4230_v49 = vsel %vm9034_vm13, %v4226_v22, %v4228_v10  ;;  %vm9050_vm13 = vmmov %vm9049_vm15 }
 0xa00   : > { %4290 = vmatprep.subr.bf16.mxu1 %v4230_v49 }
 0xa02   : > { %v4234_v30 = vpop.permute.xlu0 %4233  ;;  %v4224_v0 = vpop.permute.xlu1 %4223 }
 0xa03   : > { %v4237_v40 = vsel %vm9035_vm2, %v4228_v10, %v4234_v30  ;;  %v4229_v39 = vsel %vm9036_vm6, %v4224_v0, %v4226_v22  ;;  %vm9051_vm2 = vmmov %vm9050_vm13  ;;  %vm9052_vm6 = vcmask 891904  }
 0xa04   : > { %4291 = vmatpush1.bf16.msra.mxu1 %v4229_v39  ;;  %4332 = vmatpush1.bf16.msra.mxu0 %v4237_v40 }
 0xa05   : > { %4333 = vmatprep.subr.bf16.mxu0 %v8857_v24 }
 0xa06   : > { %v4212_v19 = vpop.permute.xlu0 %4211  ;;  %v4210_v25 = vpop.permute.xlu1 %4209 }
 0xa07   : > { %v4214_v43 = vsel %vm9037_vm4, %v4210_v25, %v4212_v19  ;;  %vm9053_vm4 = vcmask 400384  }
 0xa08   : > { %4292 = vmatprep.subr.bf16.mxu1 %v4214_v43 }
 0xa0a   : > { %v4218_v45 = vpop.permute.xlu0 %4217  ;;  %v4208_v21 = vpop.permute.xlu1 %4207 }
 0xa0b   : > { %v4221_v8 = vsel %vm9038_vm5, %v4212_v19, %v4218_v45  ;;  %v4213_v14 = vsel %vm9039_vm3, %v4208_v21, %v4210_v25  ;;  %vm9054_vm5 = vmmov %vm9052_vm6  ;;  %vm4374_vm3 = vcmask 556032  }
 0xa0c   : > { %4293 = vmatpush1.bf16.msra.mxu1 %v4213_v14  ;;  %4334 = vmatpush1.bf16.msra.mxu0 %v4221_v8 }
 0xa0d   : > { %4294 = vmatprep.subr.bf16.mxu1 %v8508_v33  ;;  %4335 = vmatprep.subr.bf16.mxu0 %v8857_v24 }
 0xa0e   : > { %v4196_v5 = vpop.permute.xlu0 %4195  ;;  %v4194_v58 = vpop.permute.xlu1 %4193 }
 0xa0f   : > { %v4199_v18 = vsel %vm9040_vm1, %v4194_v58, %v4196_v5 }
 0xa10   : > { %4295 = vmatpush1.bf16.msra.mxu1 %v8539_v48  ;;  %4336 = vmatpush1.bf16.msra.mxu0 %v8524_v17 }
 0xa11   : > { %4296 = vmatprep.subr.bf16.mxu1 %v4199_v18  ;;  %4337 = vmatprep.subr.bf16.mxu0 %v8857_v24 }
 0xa12   : > { %v4198_v52 = vpop.permute.xlu0 %4197  ;;  %v4192_v60 = vpop.permute.xlu1 %4191 }
 0xa13   : > { %v4200_v46 = vsel %vm9041_vm0, %v4196_v5, %v4198_v52  ;;  %v4205_v1 = vsel %vm9042_vm7, %v4192_v60, %v4194_v58 }
 0xa14   : > { %4297 = vmatpush1.bf16.msra.mxu1 %v4205_v1  ;;  %4338 = vmatpush1.bf16.msra.mxu0 %v4200_v46 }
 0xa15   : > { %4339 = vmatprep.subr.bf16.mxu0 %v8857_v24 }
 0xa16   : > { %v4180_v61 = vpop.permute.xlu0 %4179  ;;  %v4178_v63 = vpop.permute.xlu1 %4177 }
 0xa17   : > { %v4183_v50 = vsel %vm9043_vm10, %v4178_v63, %v4180_v61 }
 0xa18   : > { %4298 = vmatprep.subr.bf16.mxu1 %v4183_v50 }
 0xa1a   : > { %v4182_v20 = vpop.permute.xlu0 %4181  ;;  %v4176_v27 = vpop.permute.xlu1 %4175 }
 0xa1b   : > { %v4184_v56 = vsel %vm9044_vm11, %v4180_v61, %v4182_v20  ;;  %v4189_v23 = vsel %vm9045_vm12, %v4176_v27, %v4178_v63 }
 0xa1c   : > { %4299 = vmatpush1.bf16.msra.mxu1 %v4189_v23  ;;  %4340 = vmatpush1.bf16.msra.mxu0 %v4184_v56 }
 0xa1d   : > { %4341 = vmatprep.subr.bf16.mxu0 %v8857_v24 }
 0xa1e   : > { %v4164_v59 = vpop.permute.xlu0 %4163  ;;  %v4162_v54 = vpop.permute.xlu1 %4161 }
 0xa1f   : > { %v4167_v44 = vsel %vm9046_vm8, %v4162_v54, %v4164_v59 }
 0xa20   : > { %4300 = vmatprep.subr.bf16.mxu1 %v4167_v44 }
 0xa22   : > { %v4166_v41 = vpop.permute.xlu0 %4165  ;;  %v4160_v33 = vpop.permute.xlu1 %4159 }
 0xa23   : > { %v4168_v13 = vsel %vm9047_vm9, %v4164_v59, %v4166_v41  ;;  %v4173_v47 = vsel %vm9048_vm14, %v4160_v33, %v4162_v54 }
 0xa24   : > { %4301 = vmatpush1.bf16.msra.mxu1 %v4173_v47  ;;  %4342 = vmatpush1.bf16.msra.mxu0 %v4168_v13 }
 0xa25   : > { %4343 = vmatprep.subr.bf16.mxu0 %v8857_v24 }
 0xa26   : > { %v4148_v35 = vpop.permute.xlu0 %4147  ;;  %v4146_v4 = vpop.permute.xlu1 %4145 }
 0xa27   : > { %v4151_v37 = vsel %vm9049_vm15, %v4146_v4, %v4148_v35 }
 0xa28   : > { %4302 = vmatprep.subr.bf16.mxu1 %v4151_v37 }
 0xa2a   : > { %v4150_v32 = vpop.permute.xlu0 %4149  ;;  %v4142_v38 = vpop.permute.xlu1 %4141 }
 0xa2b   : > { %v4152_v6 = vsel %vm9050_vm13, %v4148_v35, %v4150_v32  ;;  %v4157_v34 = vsel %vm9051_vm2, %v4142_v38, %v4146_v4 }
 0xa2c   : > { %4303 = vmatpush1.bf16.msra.mxu1 %v4157_v34  ;;  %4344 = vmatpush1.bf16.msra.mxu0 %v4152_v6 }
 0xa2d   : > { %4359 = vmatprep.subr.bf16.mxu0 %v8857_v24 }
 0xa2e   : > { %v4260_v16 = vpop.permute.xlu0 %4259  ;;  %v4258_v17 = vpop.permute.xlu1 %4257 }
 0xa2f   : > { %v4262_v28 = vsel %vm9052_vm6, %v4258_v17, %v4260_v16 }
 0xa30   : > { %4318 = vmatprep.subr.bf16.mxu1 %v4262_v28 }
 0xa32   : > { %v4266_v55 = vpop.permute.xlu0 %4265  ;;  %v4256_v15 = vpop.permute.xlu1 %4255 }
 0xa33   : > { %v4269_v26 = vsel %vm9053_vm4, %v4260_v16, %v4266_v55  ;;  %v4261_v29 = vsel %vm9054_vm5, %v4256_v15, %v4258_v17 }
 0xa34   : > { %4319 = vmatpush2.bf16.msra.mxu1 %v4261_v29  ;;  %4360 = vmatpush2.bf16.msra.mxu0 %v4269_v26 }
 0xa37   : > { %4321 = vmatmul.mubr.bf16.vlgmr.msra.gmra.mxu1 %v4497_v9  ;;  %4362 = vmatmul.mubr.bf16.vlgmr.msra.gmra.mxu0 %v4497_v9 }
 0xa3f   : > { %v4276_v24 = vpop.permute.xlu1 %4275 }
 0xaf7   : > { %v4322_v7 = vpop.f32.mrf.mxu1  ;;  %v4363_v57 = vpop.f32.mrf.mxu0 }
 0xaf8   : > { %v4323_v48 = vadd.f32 %v4322_v7, %v4276_v24  ;;  %v4364_v53 = vadd.f32 %v4363_v57, %v4276_v24 }
 0xaf9   : > { %v4324_v2 = vpop.f32.mrf.mxu1  ;;  %v4365_v42 = vpop.f32.mrf.mxu0 }
 0xafa   : > { %v4369_v51 = vmax.f32 %v4323_v48, 0.0  ;;  %v4371_v12 = vmax.f32 %v4364_v53, 0.0  ;;  %v4325_v36 = vadd.f32 %v4324_v2, %v4276_v24 }
 0xafb   : > { %v4326_v11 = vpop.f32.mrf.mxu1  ;;  %v4366_v3 = vpop.f32.mrf.mxu0 }
 0xafc   : > { %4372 = vst [vmem:[%s359_s16] sm:$0xff] %v4369_v51  ;;  %4375 = vst.msk [vmem:[%s359_s16 + $0x10] sm:$0xff] %vm4374_vm3, %v4371_v12  ;;  %v4370_v62 = vmax.f32 %v4325_v36, 0.0 }
 0xafd   : > { %v4327_v31 = vpop.f32.mrf.mxu1  ;;  %v4367_v10 = vpop.f32.mrf.mxu0 }
 0xafe   : > { %4373 = vst [vmem:[%s359_s16 + $0x8] sm:$0xff] %v4370_v62 }
 0xaff PF: > { %s20_s13 = sadd.s32 1, %s5387_s13  }
 0xb00   : > { %p17_p4 = scmp.ge.s32.totalorder %s20_s13, 4  }
 0xb02   :  { %19 = sbr.rel (!%p17_p4) target bundleno = 4 (0x4), region = 90 }

</bundles_post_ra>
